<compile_context>
chip_gen: v7x
topology: tpu7x:2x2x1
jax: 0.10.0
libtpu: 0.0.40
codegen_flags: <defaults>
</compile_context>

<pallas_src>
import functools

import jax
import jax.numpy as jnp
import numpy as np
from jax.experimental import pallas as pl
from jax.experimental.pallas import tpu as pltpu

LANE = 128      # TPU lane width: channel dims are zero-padded to this inside the kernels.
PAD_OFF = 8     # sublane-aligned offset of the first interior column in the halo scratch
VMEM_LIMIT = 32 * 1024 * 1024   # explicit scoped-VMEM budget (fits v7x's 64 MiB part)


def _pick_th(H, W):
    """Spatial tile height.  Aim for th*W >= 256 (fills a 256-wide v6e/v7x MXU row block and
    amortises per-grid-step overhead) while keeping th a divisor of H."""
    if H % 8 != 0:
        # TODO(synk): pad H for real shapes instead of falling back to one whole-image tile.
        return H
    th = 8
    for cand in (16, 32, 64):
        if H % cand == 0 and th * W < 512:
            th = cand
    return th


# ------------------ fused conv3x3 (+ optional input BN/ReLU) + BN statistics ------------------

def _conv3x3_fused_kernel(x_ref, w_ref, scale_ref, bias_ref,
                          y_ref, stats_ref, xpad_ref, *, th, input_relu):
    """One (batch n, H-tile h) grid step.

    x_ref     : (1, H, W, 128)   full image, bf16, channel-padded; resident across the h axis
    w_ref     : (9*128, 128)     bf16 weights, 3x3 taps stacked along the contraction dim
    scale_ref : (1, 128)         folded-BN affine applied to the *input* (identity for conv1)
    bias_ref  : (1, 128)
    y_ref     : (1, th, W, 128)  raw conv output tile (bf16)
    stats_ref : (1, 2, 128)      per-image [sum; sum_sq] of the raw f32 conv output,
                                 accumulated across the h axis (single-pass BN statistics)
    xpad_ref  : (H+2, W+2*PAD_OFF, 128) bf16 VMEM halo scratch (zero border = conv padding=1)
    """
    H = x_ref.shape[1]
    W = x_ref.shape[2]
    cp = x_ref.shape[3]           # lane-padded channel width (128)
    h = pl.program_id(1)

    @pl.when(h == 0)
    def _():
        # Zero ONLY the halo border (the interior is fully overwritten right below).
        zrow = jnp.zeros((xpad_ref.shape[1], cp), xpad_ref.dtype)
        xpad_ref[0] = zrow                       # top conv-padding row
        xpad_ref[H + 1] = zrow                   # bottom conv-padding row
        zcol = jnp.zeros((H + 2, PAD_OFF, cp), xpad_ref.dtype)
        xpad_ref[:, :PAD_OFF, :] = zcol          # left column strip (sublane-aligned)
        xpad_ref[:, PAD_OFF + W:, :] = zcol      # right column strip (sublane-aligned)

        # Input affine (previous layer's folded BN) + ReLU in f32, stored once as bf16.
        # Padded lanes stay exactly zero because the padded scale/bias entries are zero.
        x = x_ref[0].astype(jnp.float32)
        x = x * scale_ref[...].reshape(1, 1, cp) + bias_ref[...].reshape(1, 1, cp)
        if input_relu:
            x = jnp.maximum(x, 0.0)
        xpad_ref[1:H + 1, PAD_OFF:PAD_OFF + W, :] = x.astype(xpad_ref.dtype)

        stats_ref[...] = jnp.zeros_like(stats_ref)

    # 9 accumulating bf16 MXU matmuls (one per 3x3 tap); f32 accumulator held in vregs.
    # TODO(synk): when 9*Cin_real <= 128 (tiny channels), pack all taps' real channels into a
    # single 128-wide contraction block (1 MXU pass instead of 9).
    # TODO(synk): generate the +/-1 column taps with pltpu.roll (XLU) instead of the two
    # sublane-misaligned slices per kh.
    row0 = pl.multiple_of(h * th, th)
    acc = None
    t = 0
    for kh in range(3):
        for kw in range(3):
            tap = xpad_ref[pl.ds(row0 + kh, th), pl.ds(PAD_OFF - 1 + kw, W), :]
            part = jnp.dot(tap.reshape(th * W, cp),
                           w_ref[t * LANE:(t + 1) * LANE, :],
                           preferred_element_type=jnp.float32)
            acc = part if acc is None else acc + part
            t += 1

    # Fused single-pass BN statistics of the raw (f32) conv output.
    # TODO(synk): E[x^2]-E[x]^2 can cancel for very large N*H*W; use a compensated scheme there.
    s1 = jnp.sum(acc, axis=0, keepdims=True)
    s2 = jnp.sum(acc * acc, axis=0, keepdims=True)
    stats_ref[0] += jnp.concatenate([s1, s2], axis=0)                    # (2, 128)

    y_ref[0] = acc.reshape(th, W, cp).astype(y_ref.dtype)


def _conv3x3_bn_stats(x_nhwc, w_flat, scale, bias, *, input_relu, th):
    """y = conv3x3(maybe_relu(x*scale+bias)), stride 1 / pad 1, plus per-image BN sums of y."""
    N, H, W, cp = x_nhwc.shape
    nh = H // th
    kernel = functools.partial(_conv3x3_fused_kernel, th=th, input_relu=input_relu)
    # TODO(synk): for ResNet-scale H*W*C on v7x (64 MiB VMEM), replace the full-image-resident
    # input + per-image halo build with a per-tile halo fetched via manual make_async_copy
    # double-buffering (memory_space=pl.ANY), and emit per-h-tile partial stats so the h axis
    # can be marked "parallel".
    return pl.pallas_call(
        kernel,
        out_shape=(
            jax.ShapeDtypeStruct((N, H, W, cp), jnp.bfloat16),   # raw conv output (bf16)
            jax.ShapeDtypeStruct((N, 2, cp), jnp.float32),       # per-image [sum, sum_sq]
        ),
        grid=(N, nh),
        in_specs=[
            pl.BlockSpec((1, H, W, cp), lambda n, h: (n, 0, 0, 0)),   # full image, resident over h
            pl.BlockSpec((9 * LANE, LANE), lambda n, h: (0, 0)),      # weights, resident
            pl.BlockSpec((1, cp), lambda n, h: (0, 0)),
            pl.BlockSpec((1, cp), lambda n, h: (0, 0)),
        ],
        out_specs=(
            pl.BlockSpec((1, th, W, cp), lambda n, h: (n, h, 0, 0)),
            pl.BlockSpec((1, 2, cp), lambda n, h: (n, 0, 0)),         # accumulated across h
        ),
        scratch_shapes=[pltpu.VMEM((H + 2, W + 2 * PAD_OFF, cp), jnp.bfloat16)],
        compiler_params=pltpu.CompilerParams(
            dimension_semantics=("parallel", "arbitrary"),
            vmem_limit_bytes=VMEM_LIMIT),
    )(x_nhwc, w_flat, scale, bias)


# ------------------------------ BN2 + ReLU epilogue kernel ------------------------------

def _bn_relu_slice_kernel(x_ref, scale_ref, bias_ref, o_ref):
    """Whole-image BN+ReLU; writes only the real (unpadded) channels."""
    cp = x_ref.shape[3]
    c_out = o_ref.shape[3]
    x = x_ref[...].astype(jnp.float32)
    y = jnp.maximum(x * scale_ref[...].reshape(1, 1, 1, cp)
                    + bias_ref[...].reshape(1, 1, 1, cp), 0.0)
    o_ref[...] = y[:, :, :, :c_out].astype(o_ref.dtype)


def _bn_relu(x_nhwc, scale, bias, c_out):
    N, H, W, cp = x_nhwc.shape
    return pl.pallas_call(
        _bn_relu_slice_kernel,
        out_shape=jax.ShapeDtypeStruct((N, H, W, c_out), jnp.float32),
        grid=(N,),
        in_specs=[
            pl.BlockSpec((1, H, W, cp), lambda n: (n, 0, 0, 0)),   # whole image per step
            pl.BlockSpec((1, cp), lambda n: (0, 0)),
            pl.BlockSpec((1, cp), lambda n: (0, 0)),
        ],
        out_specs=pl.BlockSpec((1, H, W, c_out), lambda n: (n, 0, 0, 0)),
        compiler_params=pltpu.CompilerParams(
            dimension_semantics=("parallel",),
            vmem_limit_bytes=VMEM_LIMIT),
    )(x_nhwc, scale, bias)


# ---------------------------------- BN folding (tiny glue) ----------------------------------

def _fold_bn(stats, gamma_p, beta_p, count, eps):
    """stats: (N, 2, C) in-kernel [sum, sum_sq] -> folded per-channel scale/bias (1, C)."""
    s = jnp.sum(stats, axis=0)                              # (2, C)
    mean = s[0] / count
    var = jnp.maximum(s[1] / count - mean * mean, 0.0)      # biased batch variance (one pass)
    scale = gamma_p / jnp.sqrt(var + eps)
    bias = beta_p - mean * scale
    return scale.reshape(1, -1), bias.reshape(1, -1)


# --------------------------------------- Basic2DBlock ---------------------------------------

def basic2d_block_forward(x_nchw, params, eps=1e-5):
    """Matches Basic2DBlock.forward (training-mode BN, no residual add)."""
    # TODO(synk): stride > 1 conv path not implemented; Basic2DBlock defaults to stride=1.
    assert params.get("stride", 1) == 1, "only stride=1 supported"

    w1, w2 = params["w1"], params["w2"]        # HWIO: (3, 3, Cin, Cmid), (3, 3, Cmid, Cmid)
    N, c_in, H, W = x_nchw.shape
    c_mid = w1.shape[-1]
    assert c_in <= LANE and c_mid <= LANE, "channel tiling beyond 128 not implemented"
    assert W % 8 == 0, "W must be a multiple of 8"   # TODO(synk): pad W for e.g. 14x14 stages
    th = _pick_th(H, W)
    assert H % th == 0

    # ---- boundary glue (tiny, one-time): NCHW -> lane-dense NHWC bf16, channels padded ----
    # TODO(synk): in a real model keep NHWC end-to-end to drop these boundary transposes/pads.
    x = jnp.transpose(x_nchw, (0, 2, 3, 1))
    x = jnp.pad(x, ((0, 0), (0, 0), (0, 0), (0, LANE - c_in))).astype(jnp.bfloat16)

    # Weights: zero-pad channels, flatten HWIO -> (9*128, 128), cast to bf16 (MXU-native).
    w1f = jnp.pad(w1, ((0, 0), (0, 0), (0, LANE - c_in), (0, LANE - c_mid)))
    w1f = w1f.reshape(9 * LANE, LANE).astype(jnp.bfloat16)
    w2f = jnp.pad(w2, ((0, 0), (0, 0), (0, LANE - c_mid), (0, LANE - c_mid)))
    w2f = w2f.reshape(9 * LANE, LANE).astype(jnp.bfloat16)

    # gamma/beta zero-padded: this keeps the padded lanes of the folded affine exactly
    # (scale=0, bias=0), so padded lanes stay zero through BN/ReLU and conv2's contraction.
    g1 = jnp.pad(params["gamma1"].astype(jnp.float32), (0, LANE - c_mid))
    b1 = jnp.pad(params["beta1"].astype(jnp.float32), (0, LANE - c_mid))
    g2 = jnp.pad(params["gamma2"].astype(jnp.float32), (0, LANE - c_mid))
    b2 = jnp.pad(params["beta2"].astype(jnp.float32), (0, LANE - c_mid))

    ident_s = jnp.ones((1, LANE), jnp.float32)
    ident_b = jnp.zeros((1, LANE), jnp.float32)

    count = N * H * W   # BatchNorm2d per-channel element count (stride 1 -> HxW output)

    # conv1 (identity input affine) + fused BN1 sums.
    y1, st1 = _conv3x3_bn_stats(x, w1f, ident_s, ident_b, input_relu=False, th=th)
    s1, bi1 = _fold_bn(st1, g1, b1, count, eps)

    # BN1 + ReLU applied to conv2's input inside the conv2 kernel; fused BN2 sums.
    y2, st2 = _conv3x3_bn_stats(y1, w2f, s1, bi1, input_relu=True, th=th)
    s2, bi2 = _fold_bn(st2, g2, b2, count, eps)

    # Final BN2 + ReLU epilogue: whole-image blocks, writes the *unpadded* NHWC output.
    out = _bn_relu(y2, s2, bi2, c_mid)

    # ---- boundary glue: NHWC -> NCHW (PyTorch layout); reads only real (unpadded) bytes ----
    return jnp.transpose(out, (0, 3, 1, 2))


# ------------------------------------ pure-JAX reference ------------------------------------

def _reference_forward(x_nchw, params, eps=1e-5):
    def conv(x, w):
        return jax.lax.conv_general_dilated(
            x, w, window_strides=(1, 1), padding=((1, 1), (1, 1)),
            dimension_numbers=("NCHW", "HWIO", "NCHW"))

    def bnrelu(x, gamma, beta):
        mean = jnp.mean(x, axis=(0, 2, 3), keepdims=True)
        var = jnp.mean(jnp.square(x - mean), axis=(0, 2, 3), keepdims=True)
        y = (x - mean) / jnp.sqrt(var + eps)
        y = y * gamma.reshape(1, -1, 1, 1) + beta.reshape(1, -1, 1, 1)
        return jnp.maximum(y, 0.0)

    out = conv(x_nchw, params["w1"])
    out = bnrelu(out, params["gamma1"], params["beta1"])
    out = conv(out, params["w2"])
    out = bnrelu(out, params["gamma2"], params["beta2"])
    return out


if __name__ == "__main__":
    key = jax.random.PRNGKey(0)
    k1, k2, k3, k4, k5 = jax.random.split(key, 5)

    N, inplanes, H, W = 2, 4, 16, 16
    planes = 8

    x = jax.random.normal(k1, (N, inplanes, H, W), dtype=jnp.float32)

    params = {
        # conv weights stored directly in HWIO (3, 3, Cin, Cout)
        "w1": 0.1 * jax.random.normal(k2, (3, 3, inplanes, planes), jnp.float32),
        "w2": 0.1 * jax.random.normal(k3, (3, 3, planes, planes), jnp.float32),
        "gamma1": 1.0 + 0.1 * jax.random.normal(k4, (planes,), jnp.float32),
        "beta1": 0.1 * jax.random.normal(k5, (planes,), jnp.float32),
        "gamma2": jnp.ones((planes,), jnp.float32),
        "beta2": jnp.zeros((planes,), jnp.float32),
        "stride": 1,
    }

    out = jax.block_until_ready(basic2d_block_forward(x, params))
    ref = _reference_forward(x, params)
    # bf16 input/intermediates/matmul operands with f32 accumulation & f32 BN statistics;
    # the reference is pure f32, so allow ~4e-2 through two conv+BN stages.
    np.testing.assert_allclose(np.asarray(out), np.asarray(ref), rtol=4e-2, atol=4e-2)
    print("KERNEL_OK")
</pallas_src>

<mosaic_0001>
module attributes {stable_mosaic.version = 11 : i64} {
  func.func @_conv3x3_fused_kernel(%arg0: i32, %arg1: i32, %arg2: memref<1x16x16x128xbf16, #tpu.memory_space<vmem>>, %arg3: memref<1152x128xbf16, #tpu.memory_space<vmem>>, %arg4: memref<1x128xf32, #tpu.memory_space<vmem>>, %arg5: memref<1x128xf32, #tpu.memory_space<vmem>>, %arg6: memref<1x16x16x128xbf16, #tpu.memory_space<vmem>>, %arg7: memref<1x2x128xf32, #tpu.memory_space<vmem>>, %arg8: memref<18x32x128xbf16, #tpu.memory_space<vmem>>) attributes {dimension_semantics = [#tpu.dimension_semantics<parallel>, #tpu.dimension_semantics<arbitrary>], iteration_bounds = array<i64: 2, 1>, scalar_prefetch = 0 : i64, scratch_operands = 1 : i64, tpu.core_type = #tpu.core_type<tc>, window_params = [{transform_indices = @transform_0, window_bounds = array<i64: 1, 16, 16, 128>}, {pipeline_mode = #tpu.pipeline_mode<synchronous>, transform_indices = @transform_1, window_bounds = array<i64: 1152, 128>}, {pipeline_mode = #tpu.pipeline_mode<synchronous>, transform_indices = @transform_2, window_bounds = array<i64: 1, 128>}, {pipeline_mode = #tpu.pipeline_mode<synchronous>, transform_indices = @transform_3, window_bounds = array<i64: 1, 128>}, {transform_indices = @transform_4, window_bounds = array<i64: 1, 16, 16, 128>}, {transform_indices = @transform_5, window_bounds = array<i64: 1, 2, 128>}]} {
    %c0_i32 = arith.constant 0 : i32
    %0 = arith.cmpi eq, %arg1, %c0_i32 : i32
    %1 = arith.extui %0 : i1 to i32
    %c0_i32_0 = arith.constant 0 : i32
    %2 = arith.cmpi ne, %1, %c0_i32_0 : i32
    scf.if %2 {
      %cst_52 = arith.constant 0.000000e+00 : bf16
      %84 = vector.broadcast %cst_52 : bf16 to vector<32x128xbf16>
      %c0_53 = arith.constant 0 : index
      %c0_54 = arith.constant 0 : index
      %c0_55 = arith.constant 0 : index
      %85 = vector.load %arg8[%c0_53, %c0_54, %c0_55] : memref<18x32x128xbf16, #tpu.memory_space<vmem>>, vector<1x32x128xbf16>
      %86 = vector.shape_cast %85 : vector<1x32x128xbf16> to vector<32x128xbf16>
      %87 = vector.shape_cast %84 : vector<32x128xbf16> to vector<1x32x128xbf16>
      tpu.vector_store %arg8[%c0_53, %c0_54, %c0_55], %87 {strides = array<i32>} : memref<18x32x128xbf16, #tpu.memory_space<vmem>>, vector<1x32x128xbf16>,
      %c17 = arith.constant 17 : index
      %c0_56 = arith.constant 0 : index
      %c0_57 = arith.constant 0 : index
      %88 = vector.load %arg8[%c17, %c0_56, %c0_57] : memref<18x32x128xbf16, #tpu.memory_space<vmem>>, vector<1x32x128xbf16>
      %89 = vector.shape_cast %88 : vector<1x32x128xbf16> to vector<32x128xbf16>
      %90 = vector.shape_cast %84 : vector<32x128xbf16> to vector<1x32x128xbf16>
      tpu.vector_store %arg8[%c17, %c0_56, %c0_57], %90 {strides = array<i32>} : memref<18x32x128xbf16, #tpu.memory_space<vmem>>, vector<1x32x128xbf16>,
      %cst_58 = arith.constant 0.000000e+00 : bf16
      %91 = vector.broadcast %cst_58 : bf16 to vector<18x8x128xbf16>
      %c0_59 = arith.constant 0 : index
      %c0_60 = arith.constant 0 : index
      %c0_61 = arith.constant 0 : index
      %92 = vector.load %arg8[%c0_59, %c0_60, %c0_61] : memref<18x32x128xbf16, #tpu.memory_space<vmem>>, vector<18x8x128xbf16>
      tpu.vector_store %arg8[%c0_59, %c0_60, %c0_61], %91 {strides = array<i32>} : memref<18x32x128xbf16, #tpu.memory_space<vmem>>, vector<18x8x128xbf16>,
      %c0_62 = arith.constant 0 : index
      %c24 = arith.constant 24 : index
      %c0_63 = arith.constant 0 : index
      %93 = vector.load %arg8[%c0_62, %c24, %c0_63] : memref<18x32x128xbf16, #tpu.memory_space<vmem>>, vector<18x8x128xbf16>
      tpu.vector_store %arg8[%c0_62, %c24, %c0_63], %91 {strides = array<i32>} : memref<18x32x128xbf16, #tpu.memory_space<vmem>>, vector<18x8x128xbf16>,
      %c0_64 = arith.constant 0 : index
      %c0_65 = arith.constant 0 : index
      %c0_66 = arith.constant 0 : index
      %c0_67 = arith.constant 0 : index
      %94 = vector.load %arg2[%c0_64, %c0_65, %c0_66, %c0_67] : memref<1x16x16x128xbf16, #tpu.memory_space<vmem>>, vector<1x16x16x128xbf16>
      %95 = vector.shape_cast %94 : vector<1x16x16x128xbf16> to vector<16x16x128xbf16>
      %96 = arith.extf %95 : vector<16x16x128xbf16> to vector<16x16x128xf32>
      %c0_68 = arith.constant 0 : index
      %c0_69 = arith.constant 0 : index
      %97 = vector.load %arg4[%c0_68, %c0_69] : memref<1x128xf32, #tpu.memory_space<vmem>>, vector<1x128xf32>
      %98 = vector.shape_cast %97 : vector<1x128xf32> to vector<1x1x128xf32>
      %99 = vector.broadcast %98 : vector<1x1x128xf32> to vector<16x16x128xf32>
      %100 = arith.mulf %96, %99 : vector<16x16x128xf32>
      %c0_70 = arith.constant 0 : index
      %c0_71 = arith.constant 0 : index
      %101 = vector.load %arg5[%c0_70, %c0_71] : memref<1x128xf32, #tpu.memory_space<vmem>>, vector<1x128xf32>
      %102 = vector.shape_cast %101 : vector<1x128xf32> to vector<1x1x128xf32>
      %103 = vector.broadcast %102 : vector<1x1x128xf32> to vector<16x16x128xf32>
      %104 = arith.addf %100, %103 : vector<16x16x128xf32>
      %105 = arith.truncf %104 : vector<16x16x128xf32> to vector<16x16x128xbf16>
      %c1 = arith.constant 1 : index
      %c8_72 = arith.constant 8 : index
      %c0_73 = arith.constant 0 : index
      %106 = vector.load %arg8[%c1, %c8_72, %c0_73] : memref<18x32x128xbf16, #tpu.memory_space<vmem>>, vector<16x16x128xbf16>
      tpu.vector_store %arg8[%c1, %c8_72, %c0_73], %105 {strides = array<i32>} : memref<18x32x128xbf16, #tpu.memory_space<vmem>>, vector<16x16x128xbf16>,
      %cst_74 = arith.constant 0.000000e+00 : f32
      %107 = vector.broadcast %cst_74 : f32 to vector<1x2x128xf32>
      %c0_75 = arith.constant 0 : index
      %c0_76 = arith.constant 0 : index
      %c0_77 = arith.constant 0 : index
      %108 = vector.load %arg7[%c0_75, %c0_76, %c0_77] : memref<1x2x128xf32, #tpu.memory_space<vmem>>, vector<1x2x128xf32>
      tpu.vector_store %arg7[%c0_75, %c0_76, %c0_77], %107 {strides = array<i32>} : memref<1x2x128xf32, #tpu.memory_space<vmem>>, vector<1x2x128xf32>,
    } else {
    }
    %c16_i32 = arith.constant 16 : i32
    %3 = arith.muli %arg1, %c16_i32 : i32
    %4 = tpu.assume_multiple %3, 16 : i32
    %c0_i32_1 = arith.constant 0 : i32
    %5 = arith.addi %4, %c0_i32_1 : i32
    %6 = arith.index_cast %5 : i32 to index
    %c7 = arith.constant 7 : index
    %c0 = arith.constant 0 : index
    %7 = vector.load %arg8[%6, %c7, %c0] : memref<18x32x128xbf16, #tpu.memory_space<vmem>>, vector<16x16x128xbf16>
    %8 = vector.shape_cast %7 : vector<16x16x128xbf16> to vector<256x128xbf16>
    %c0_2 = arith.constant 0 : index
    %c0_3 = arith.constant 0 : index
    %9 = vector.load %arg3[%c0_2, %c0_3] : memref<1152x128xbf16, #tpu.memory_space<vmem>>, vector<128x128xbf16>
    %cst = arith.constant dense<0.000000e+00> : vector<256x128xf32>
    %10 = tpu.matmul %8, %9, %cst {dimension_numbers = #tpu.dot_dimension_numbers<[1], [0], [0], [1], [0, 0, 1, 1], [], []>} : vector<256x128xbf16>, vector<128x128xbf16>, vector<256x128xf32> -> vector<256x128xf32>
    %c0_i32_4 = arith.constant 0 : i32
    %11 = arith.addi %4, %c0_i32_4 : i32
    %12 = arith.index_cast %11 : i32 to index
    %c8 = arith.constant 8 : index
    %c0_5 = arith.constant 0 : index
    %13 = vector.load %arg8[%12, %c8, %c0_5] : memref<18x32x128xbf16, #tpu.memory_space<vmem>>, vector<16x16x128xbf16>
    %14 = vector.shape_cast %13 : vector<16x16x128xbf16> to vector<256x128xbf16>
    %c128 = arith.constant 128 : index
    %c0_6 = arith.constant 0 : index
    %15 = vector.load %arg3[%c128, %c0_6] : memref<1152x128xbf16, #tpu.memory_space<vmem>>, vector<128x128xbf16>
    %cst_7 = arith.constant dense<0.000000e+00> : vector<256x128xf32>
    %16 = tpu.matmul %14, %15, %cst_7 {dimension_numbers = #tpu.dot_dimension_numbers<[1], [0], [0], [1], [0, 0, 1, 1], [], []>} : vector<256x128xbf16>, vector<128x128xbf16>, vector<256x128xf32> -> vector<256x128xf32>
    %17 = arith.addf %10, %16 : vector<256x128xf32>
    %c0_i32_8 = arith.constant 0 : i32
    %18 = arith.addi %4, %c0_i32_8 : i32
    %19 = arith.index_cast %18 : i32 to index
    %c9 = arith.constant 9 : index
    %c0_9 = arith.constant 0 : index
    %20 = vector.load %arg8[%19, %c9, %c0_9] : memref<18x32x128xbf16, #tpu.memory_space<vmem>>, vector<16x16x128xbf16>
    %21 = vector.shape_cast %20 : vector<16x16x128xbf16> to vector<256x128xbf16>
    %c256 = arith.constant 256 : index
    %c0_10 = arith.constant 0 : index
    %22 = vector.load %arg3[%c256, %c0_10] : memref<1152x128xbf16, #tpu.memory_space<vmem>>, vector<128x128xbf16>
    %cst_11 = arith.constant dense<0.000000e+00> : vector<256x128xf32>
    %23 = tpu.matmul %21, %22, %cst_11 {dimension_numbers = #tpu.dot_dimension_numbers<[1], [0], [0], [1], [0, 0, 1, 1], [], []>} : vector<256x128xbf16>, vector<128x128xbf16>, vector<256x128xf32> -> vector<256x128xf32>
    %24 = arith.addf %17, %23 : vector<256x128xf32>
    %c1_i32 = arith.constant 1 : i32
    %25 = arith.addi %4, %c1_i32 : i32
    %26 = arith.index_cast %25 : i32 to index
    %c7_12 = arith.constant 7 : index
    %c0_13 = arith.constant 0 : index
    %27 = vector.load %arg8[%26, %c7_12, %c0_13] : memref<18x32x128xbf16, #tpu.memory_space<vmem>>, vector<16x16x128xbf16>
    %28 = vector.shape_cast %27 : vector<16x16x128xbf16> to vector<256x128xbf16>
    %c384 = arith.constant 384 : index
    %c0_14 = arith.constant 0 : index
    %29 = vector.load %arg3[%c384, %c0_14] : memref<1152x128xbf16, #tpu.memory_space<vmem>>, vector<128x128xbf16>
    %cst_15 = arith.constant dense<0.000000e+00> : vector<256x128xf32>
    %30 = tpu.matmul %28, %29, %cst_15 {dimension_numbers = #tpu.dot_dimension_numbers<[1], [0], [0], [1], [0, 0, 1, 1], [], []>} : vector<256x128xbf16>, vector<128x128xbf16>, vector<256x128xf32> -> vector<256x128xf32>
    %31 = arith.addf %24, %30 : vector<256x128xf32>
    %c1_i32_16 = arith.constant 1 : i32
    %32 = arith.addi %4, %c1_i32_16 : i32
    %33 = arith.index_cast %32 : i32 to index
    %c8_17 = arith.constant 8 : index
    %c0_18 = arith.constant 0 : index
    %34 = vector.load %arg8[%33, %c8_17, %c0_18] : memref<18x32x128xbf16, #tpu.memory_space<vmem>>, vector<16x16x128xbf16>
    %35 = vector.shape_cast %34 : vector<16x16x128xbf16> to vector<256x128xbf16>
    %c512 = arith.constant 512 : index
    %c0_19 = arith.constant 0 : index
    %36 = vector.load %arg3[%c512, %c0_19] : memref<1152x128xbf16, #tpu.memory_space<vmem>>, vector<128x128xbf16>
    %cst_20 = arith.constant dense<0.000000e+00> : vector<256x128xf32>
    %37 = tpu.matmul %35, %36, %cst_20 {dimension_numbers = #tpu.dot_dimension_numbers<[1], [0], [0], [1], [0, 0, 1, 1], [], []>} : vector<256x128xbf16>, vector<128x128xbf16>, vector<256x128xf32> -> vector<256x128xf32>
    %38 = arith.addf %31, %37 : vector<256x128xf32>
    %c1_i32_21 = arith.constant 1 : i32
    %39 = arith.addi %4, %c1_i32_21 : i32
    %40 = arith.index_cast %39 : i32 to index
    %c9_22 = arith.constant 9 : index
    %c0_23 = arith.constant 0 : index
    %41 = vector.load %arg8[%40, %c9_22, %c0_23] : memref<18x32x128xbf16, #tpu.memory_space<vmem>>, vector<16x16x128xbf16>
    %42 = vector.shape_cast %41 : vector<16x16x128xbf16> to vector<256x128xbf16>
    %c640 = arith.constant 640 : index
    %c0_24 = arith.constant 0 : index
    %43 = vector.load %arg3[%c640, %c0_24] : memref<1152x128xbf16, #tpu.memory_space<vmem>>, vector<128x128xbf16>
    %cst_25 = arith.constant dense<0.000000e+00> : vector<256x128xf32>
    %44 = tpu.matmul %42, %43, %cst_25 {dimension_numbers = #tpu.dot_dimension_numbers<[1], [0], [0], [1], [0, 0, 1, 1], [], []>} : vector<256x128xbf16>, vector<128x128xbf16>, vector<256x128xf32> -> vector<256x128xf32>
    %45 = arith.addf %38, %44 : vector<256x128xf32>
    %c2_i32 = arith.constant 2 : i32
    %46 = arith.addi %4, %c2_i32 : i32
    %47 = arith.index_cast %46 : i32 to index
    %c7_26 = arith.constant 7 : index
    %c0_27 = arith.constant 0 : index
    %48 = vector.load %arg8[%47, %c7_26, %c0_27] : memref<18x32x128xbf16, #tpu.memory_space<vmem>>, vector<16x16x128xbf16>
    %49 = vector.shape_cast %48 : vector<16x16x128xbf16> to vector<256x128xbf16>
    %c768 = arith.constant 768 : index
    %c0_28 = arith.constant 0 : index
    %50 = vector.load %arg3[%c768, %c0_28] : memref<1152x128xbf16, #tpu.memory_space<vmem>>, vector<128x128xbf16>
    %cst_29 = arith.constant dense<0.000000e+00> : vector<256x128xf32>
    %51 = tpu.matmul %49, %50, %cst_29 {dimension_numbers = #tpu.dot_dimension_numbers<[1], [0], [0], [1], [0, 0, 1, 1], [], []>} : vector<256x128xbf16>, vector<128x128xbf16>, vector<256x128xf32> -> vector<256x128xf32>
    %52 = arith.addf %45, %51 : vector<256x128xf32>
    %c2_i32_30 = arith.constant 2 : i32
    %53 = arith.addi %4, %c2_i32_30 : i32
    %54 = arith.index_cast %53 : i32 to index
    %c8_31 = arith.constant 8 : index
    %c0_32 = arith.constant 0 : index
    %55 = vector.load %arg8[%54, %c8_31, %c0_32] : memref<18x32x128xbf16, #tpu.memory_space<vmem>>, vector<16x16x128xbf16>
    %56 = vector.shape_cast %55 : vector<16x16x128xbf16> to vector<256x128xbf16>
    %c896 = arith.constant 896 : index
    %c0_33 = arith.constant 0 : index
    %57 = vector.load %arg3[%c896, %c0_33] : memref<1152x128xbf16, #tpu.memory_space<vmem>>, vector<128x128xbf16>
    %cst_34 = arith.constant dense<0.000000e+00> : vector<256x128xf32>
    %58 = tpu.matmul %56, %57, %cst_34 {dimension_numbers = #tpu.dot_dimension_numbers<[1], [0], [0], [1], [0, 0, 1, 1], [], []>} : vector<256x128xbf16>, vector<128x128xbf16>, vector<256x128xf32> -> vector<256x128xf32>
    %59 = arith.addf %52, %58 : vector<256x128xf32>
    %c2_i32_35 = arith.constant 2 : i32
    %60 = arith.addi %4, %c2_i32_35 : i32
    %61 = arith.index_cast %60 : i32 to index
    %c9_36 = arith.constant 9 : index
    %c0_37 = arith.constant 0 : index
    %62 = vector.load %arg8[%61, %c9_36, %c0_37] : memref<18x32x128xbf16, #tpu.memory_space<vmem>>, vector<16x16x128xbf16>
    %63 = vector.shape_cast %62 : vector<16x16x128xbf16> to vector<256x128xbf16>
    %c1024 = arith.constant 1024 : index
    %c0_38 = arith.constant 0 : index
    %64 = vector.load %arg3[%c1024, %c0_38] : memref<1152x128xbf16, #tpu.memory_space<vmem>>, vector<128x128xbf16>
    %cst_39 = arith.constant dense<0.000000e+00> : vector<256x128xf32>
    %65 = tpu.matmul %63, %64, %cst_39 {dimension_numbers = #tpu.dot_dimension_numbers<[1], [0], [0], [1], [0, 0, 1, 1], [], []>} : vector<256x128xbf16>, vector<128x128xbf16>, vector<256x128xf32> -> vector<256x128xf32>
    %66 = arith.addf %59, %65 : vector<256x128xf32>
    %cst_40 = arith.constant dense<0.000000e+00> : vector<128xf32>
    %67 = vector.multi_reduction <add>, %66, %cst_40 [0] : vector<256x128xf32> to vector<128xf32>
    %68 = vector.shape_cast %67 : vector<128xf32> to vector<1x128xf32>
    %69 = arith.mulf %66, %66 : vector<256x128xf32>
    %cst_41 = arith.constant dense<0.000000e+00> : vector<128xf32>
    %70 = vector.multi_reduction <add>, %69, %cst_41 [0] : vector<256x128xf32> to vector<128xf32>
    %71 = vector.shape_cast %70 : vector<128xf32> to vector<1x128xf32>
    %c0_42 = arith.constant 0 : index
    %c0_43 = arith.constant 0 : index
    %c0_44 = arith.constant 0 : index
    %72 = vector.load %arg7[%c0_42, %c0_43, %c0_44] : memref<1x2x128xf32, #tpu.memory_space<vmem>>, vector<1x2x128xf32>
    %73 = vector.shape_cast %72 : vector<1x2x128xf32> to vector<2x128xf32>
    %74 = tpu.concatenate %68, %71 in 0 : vector<1x128xf32>, vector<1x128xf32> -> vector<2x128xf32>
    %75 = arith.addf %73, %74 : vector<2x128xf32>
    %c0_45 = arith.constant 0 : index
    %c0_46 = arith.constant 0 : index
    %c0_47 = arith.constant 0 : index
    %76 = vector.load %arg7[%c0_45, %c0_46, %c0_47] : memref<1x2x128xf32, #tpu.memory_space<vmem>>, vector<1x2x128xf32>
    %77 = vector.shape_cast %76 : vector<1x2x128xf32> to vector<2x128xf32>
    %78 = vector.shape_cast %75 : vector<2x128xf32> to vector<1x2x128xf32>
    tpu.vector_store %arg7[%c0_45, %c0_46, %c0_47], %78 {strides = array<i32>} : memref<1x2x128xf32, #tpu.memory_space<vmem>>, vector<1x2x128xf32>,
    %79 = vector.shape_cast %66 : vector<256x128xf32> to vector<16x16x128xf32>
    %80 = arith.truncf %79 : vector<16x16x128xf32> to vector<16x16x128xbf16>
    %c0_48 = arith.constant 0 : index
    %c0_49 = arith.constant 0 : index
    %c0_50 = arith.constant 0 : index
    %c0_51 = arith.constant 0 : index
    %81 = vector.load %arg6[%c0_48, %c0_49, %c0_50, %c0_51] : memref<1x16x16x128xbf16, #tpu.memory_space<vmem>>, vector<1x16x16x128xbf16>
    %82 = vector.shape_cast %81 : vector<1x16x16x128xbf16> to vector<16x16x128xbf16>
    %83 = vector.shape_cast %80 : vector<16x16x128xbf16> to vector<1x16x16x128xbf16>
    tpu.vector_store %arg6[%c0_48, %c0_49, %c0_50, %c0_51], %83 {strides = array<i32>} : memref<1x16x16x128xbf16, #tpu.memory_space<vmem>>, vector<1x16x16x128xbf16>,
    return
  }
  func.func @transform_0(%arg0: i32, %arg1: i32) -> (i32, i32, i32, i32) {
    %c0_i32 = arith.constant 0 : i32
    %c0_i32_0 = arith.constant 0 : i32
    %c0_i32_1 = arith.constant 0 : i32
    %c0_i32_2 = arith.constant 0 : i32
    return %arg0, %c0_i32, %c0_i32_0, %c0_i32_1 : i32, i32, i32, i32
  }
  func.func @transform_1(%arg0: i32, %arg1: i32) -> (i32, i32) {
    %c0_i32 = arith.constant 0 : i32
    %c0_i32_0 = arith.constant 0 : i32
    %c0_i32_1 = arith.constant 0 : i32
    return %c0_i32, %c0_i32_0 : i32, i32
  }
  func.func @transform_2(%arg0: i32, %arg1: i32) -> (i32, i32) {
    %c0_i32 = arith.constant 0 : i32
    %c0_i32_0 = arith.constant 0 : i32
    %c0_i32_1 = arith.constant 0 : i32
    return %c0_i32, %c0_i32_0 : i32, i32
  }
  func.func @transform_3(%arg0: i32, %arg1: i32) -> (i32, i32) {
    %c0_i32 = arith.constant 0 : i32
    %c0_i32_0 = arith.constant 0 : i32
    %c0_i32_1 = arith.constant 0 : i32
    return %c0_i32, %c0_i32_0 : i32, i32
  }
  func.func @transform_4(%arg0: i32, %arg1: i32) -> (i32, i32, i32, i32) {
    %c0_i32 = arith.constant 0 : i32
    %c0_i32_0 = arith.constant 0 : i32
    %c0_i32_1 = arith.constant 0 : i32
    return %arg0, %arg1, %c0_i32, %c0_i32_0 : i32, i32, i32, i32
  }
  func.func @transform_5(%arg0: i32, %arg1: i32) -> (i32, i32, i32) {
    %c0_i32 = arith.constant 0 : i32
    %c0_i32_0 = arith.constant 0 : i32
    %c0_i32_1 = arith.constant 0 : i32
    return %arg0, %c0_i32, %c0_i32_0 : i32, i32, i32
  }
}

</mosaic_0001>

<bundles_post_ra>
// kernel: tpu_custom_call.1
= control target key start
LH: loop header
LB: loop body
LE: loop exit
PB: predicated region body
PF: predicated region fallthrough
CT: control target
= control target key end

     0   :  { %11 = vsyncpa [#allocation4], 0  ;;  %s8248_s0 = inlined_call_operand.hbm [shape: bf16[2,16,16,128], index: 0, kind: input, shape index: {}]   ;;  %s8249_s1 = inlined_call_operand.hbm [shape: bf16[1152,128], index: 1, kind: input, shape index: {}]   ;;  %s8250_s2 = inlined_call_operand.vmem [shape: f32[1,128], index: 2, kind: input, shape index: {}]   ;;  %s8251_s3 = inlined_call_operand.vmem [shape: f32[1,128], index: 3, kind: input, shape index: {}]   ;;  %s8252_s4 = inlined_call_operand.hbm [shape: bf16[2,16,16,128], index: 4, kind: output, shape index: {0}]   ;;  %s8253_s5 = inlined_call_operand.hbm [shape: f32[2,2,128], index: 5, kind: output, shape index: {1}]  }
   0x1   :  { %13 = vsyncpa [#allocation4 + $0x1], 0 }
   0x2   :  { %14 = vsyncpa [#allocation7], 0 }
   0x3   :  { %15 = vsyncpa [#allocation5], 0 }
   0x4   :  { %17 = vsyncpa [#allocation5 + $0x1], 0 }
   0x5   :  { %18 = vsyncpa [#allocation10], 0 }
   0x6   :  { %20 = vsyncpa [#allocation10 + $0x1], 0  ;;  %s7282_s18 = smov 0   ;;  %s7284_s19 = smov 0  }
   0x7   :  { %s7286_s20 = smov 0   ;;  %s7288_s21 = smov 0  }
   0x8   :  { %s7290_s22 = smov 0   ;;  %s7292_s23 = smov 0  }
   0x9 LB: > { %s5484_s24 = sadd.s32 4294967295, %s7240_s23   ;;  %s5485_s25 = sadd.s32 4294967294, %s7240_s23   ;;  %s7240_s23 = sphi %s7292_s23, %s26_s23   ;;  %s7236_s22 = sphi %s7290_s22, %s8279_s22   ;;  %s7232_s21 = sphi %s7288_s21, %s8278_s21   ;;  %s7228_s20 = sphi %s7286_s20, %s8277_s20   ;;  %s7224_s19 = sphi %s7284_s19, %s8276_s19   ;;  %s7220_s18 = sphi %s7282_s18, %s8275_s18  }
   0xa   : > { %p58_p0 = scmp.ne.s32.totalorder %s7224_s19, %s7220_s18  ;;  %p7316_p1 = scmp.eq.s32.totalorder %s5484_s24, 0 }
   0xb   : > { %p7320_p2 = scmp.eq.s32.totalorder %s5484_s24, 1  ;;  %p153_p3 = scmp.eq.s32.totalorder %s5485_s25, 1 }
   0xc   : > { %s8259_s26 = scalar_select %p7316_p1, 1, 0 }
   0xd   : > { %s8260_s27 = scalar_select %p7320_p2, 1, 0 }
   0xe   : > { %p7326_p4 = por %p7316_p1, %p58_p0  ;;  %p5486_p5 = scmp.ge.s32.totalorder %s7240_s23, 1 }
   0xf   : > { %p7331_p6 = por %p153_p3, %p58_p0  ;;  %p186_p7 = scmp.lt.s32.totalorder %s7240_s23, 3 }
  0x10   : > { %s8261_s28 = scalar_select %p7326_p4, 1, 0 }
  0x11   : > { %s8262_s29 = scalar_select %p7331_p6, 1, 0 }
  0x12   : > { %p7336_p8 = pnand %p5486_p5, %p186_p7  ;;  %s7242_s6 = smov [#allocation6]  }
  0x13   : > { %s198_s7 = sshll.u32 %s7242_s6, 4  ;;  %s38_s9 = sadd.s32 1, %s7236_s22  ;;  %s199_s7 = int_to_ptr.vmem [resolvable:$true] %s198_s7 }
  0x14   : > { %s8263_s30 = scalar_select %p7336_p8, 1, 0 }
  0x15   : > { %p6876_p9 = pneg %p7336_p8  ;;  %s7064_s12 = scalar_lea.hbm %s8249_s1, 9216 }
  0x16   : > { %p7065_p12 = scmp.ne.s32.totalorder %s8249_s1, %s7064_s12  ;;  %p7071_p5 = scmp.lt.u32.totalorder %s7064_s12, %s8249_s1 }
  0x17   : > { %p7345_p11 = pnand %p6876_p9, %p7316_p1 }
  0x19   : > { %p7066_p13 = pneg %p7345_p11 }
  0x1b   : > { %p7067_p0 = pnand %p7066_p13, %p7065_p12 }
  0x1d   : > { %p7068_p3 = pneg %p7067_p0 }
  0x1f   : > { %p7073_p7 = pnand %p7071_p5, %p7068_p3 }
  0x21   : > { %7076 = shalt.err (!%p7073_p7)
}
  0x22   : > { %s7077_s17 = scalar_lea.vmem %s199_s7, 9216  ;;  %p7085_p1 = scmp.lt.s32.totalorder %s199_s7, %s199_s7 }
  0x23   : > { %p7078_p9 = scmp.ne.s32.totalorder %s199_s7, %s7077_s17  ;;  %p7086_p4 = scmp.lt.s32.totalorder %s7077_s17, %s7077_s17 }
  0x25   : > { %p7080_p10 = pnand %p7078_p9, %p7066_p13  ;;  %p7087_p8 = por %p7086_p4, %p7085_p1 }
  0x27   : > { %p7081_p6 = pneg %p7080_p10 }
  0x29   : > { %p7088_p2 = pnand %p7087_p8, %p7081_p6 }
  0x2b   : > { %7091 = shalt.err (!%p7088_p2)
}
  0x2c   : > { %s8258_s24 = smov 64   ;;  %s7244_s25 = smov 4  }
  0x2d   : > { %6879 = dma.hbm_to_vmem [thread:$0]  (!%p7345_p11), %s8249_s1, 9216, %s199_s7, [#allocation7], %s8258_s24, %s8258_s24, %s7244_s25  }
  0x2e   : > { %p40_p1 = scmp.ge.s32.totalorder %s38_s9, 2  ;;  %s45_s11 = sadd.s32 1, %s7228_s20 }
  0x2f   : > { %p52_p2 = scmp.ne.s32.totalorder %s7228_s20, %s7224_s19  ;;  %p53_p4 = scmp.eq.s32.totalorder %s7240_s23, 0 }
  0x30   : > { %s8281_s9 = smov (%p40_p1, %s38_s9), 0  ;;  %p8266_p8 = scmp.ne.s32.totalorder %s8260_s27, 0 }
  0x31   : > { %p7375_p6 = por %p53_p4, %p52_p2  ;;  %s42_s13 = ssub.s32 %s7236_s22, %s8281_s9 }
  0x32   : > { %p7381_p10 = por %p8266_p8, %p52_p2  ;;  %p6892_p12 = scmp.lt.s32.totalorder %s7240_s23, 2 }
  0x33   : > { %p43_p11 = scmp.eq.s32.totalorder %s42_s13, 0  ;;  %s218_s7 = sand.u32 1, %s7228_s20  }
  0x34   : > { %s5489_s14 = sshll.u32 %s218_s7, 7  ;;  %s5738_s16 = sshll.u32 %s7236_s22, 11 }
  0x35   : > { %s7390_s15 = scalar_select %p43_p11, %s7228_s20, %s45_s11  }
  0x36   : > { %s7396_s10 = scalar_lea.hbm %s8248_s0, %s5738_s16  ;;  %s222_s27 = scalar_lea.vmem [#allocation3], %s5489_s14 }
  0x37   : > { %s229_s24 = sshll.u32 %s222_s27, 4  ;;  %p7402_p13 = pnand %p6892_p12, %p7375_p6  ;;  %s7398_s24 = int_to_ptr.vmem [resolvable:$true] %s229_s24 }
  0x38   : > { %s7406_s11 = scalar_lea.sflag [#allocation4], %s218_s7  ;;  %s7092_s17 = scalar_lea.hbm %s7396_s10, 2048 }
  0x39   : > { %p7093_p0 = scmp.ne.s32.totalorder %s7396_s10, %s7092_s17  ;;  %p7094_p3 = pneg %p7402_p13 }
  0x3a   : > { %s7097_s12 = scalar_lea.hbm %s8248_s0, 4096  ;;  %p7098_p9 = scmp.lt.u32.totalorder %s7396_s10, %s8248_s0 }
  0x3b   : > { %p7095_p5 = pnand %p7094_p3, %p7093_p0  ;;  %p7099_p1 = scmp.lt.u32.totalorder %s7097_s12, %s7092_s17 }
  0x3c   : > { %p7101_p4 = scmp.lt.u32.totalorder %s7092_s17, %s7396_s10 }
  0x3d   : > { %p7096_p7 = pneg %p7095_p5  ;;  %p7100_p2 = por %p7099_p1, %p7098_p9 }
  0x3f   : > { %p7102_p6 = por %p7101_p4, %p7100_p2 }
  0x41   : > { %p7103_p8 = pnand %p7102_p6, %p7096_p7 }
  0x43   : > { %7106 = shalt.err (!%p7103_p8)
}
  0x44   : > { %s7107_s7 = scalar_lea.vmem %s7398_s24, 2048  ;;  %s7245_s14 = smov [#allocation3]  }
  0x45   : > { %p7108_p12 = scmp.ne.s32.totalorder %s7398_s24, %s7107_s7  ;;  %s7112_s16 = sshll.u32 %s7245_s14, 4  ;;  %s7113_s16 = int_to_ptr.vmem [resolvable:$false] %s7112_s16 }
  0x46   : > { %s7114_s6 = scalar_lea.vmem %s7113_s16, 4096  ;;  %p7115_p5 = scmp.lt.s32.totalorder %s7398_s24, %s7113_s16 }
  0x47   : > { %p7110_p11 = pnand %p7108_p12, %p7094_p3  ;;  %p7116_p9 = scmp.lt.s32.totalorder %s7114_s6, %s7107_s7 }
  0x49   : > { %p7111_p0 = pneg %p7110_p11  ;;  %p7117_p1 = por %p7116_p9, %p7115_p5 }
  0x4b   : > { %p7118_p2 = pnand %p7117_p1, %p7111_p0 }
  0x4d   : > { %7121 = shalt.err (!%p7118_p2)
}
  0x4e   : > { %s8269_s17 = smov 64   ;;  %p8270_p3 = scmp.ne.s32.totalorder %s8263_s30, 0 }
  0x4f   : > { %6883 = dma.hbm_to_vmem [thread:$0]  (!%p7402_p13), %s7396_s10, 2048, %s7398_s24, %s7406_s11, %s8269_s17, %s8269_s17, %s7244_s25  }
  0x50   : > { %241 = sbr.rel (%p8270_p3) target bundleno = 710 (0x2c6), region = 36  ;;  %s7440_s12 = sand.u32 (!%p8270_p3), 1, %s7224_s19  }
  0x51   : > { %s5493_s27 = sshll.u32 (!%p8270_p3), %s7440_s12, 7  ;;  %s244_s7 = scalar_lea.sflag (!%p8270_p3), [#allocation4], %s7440_s12 }
  0x52   : > { %s7446_s13 = scalar_lea.vmem (!%p8270_p3), [#allocation3], %s5493_s27  ;;  %p8271_p7 = scmp.ne.s32.totalorder (!%p8270_p3), %s8261_s28, 0 }
  0x57   : > { %7203 = dma.done.wait (%p8271_p7), %s244_s7, 2048  }
  0x58   : > { %7205 = vsyncadd (%p8271_p7), %s244_s7, 4294965248  ;;  %p8272_p13 = scmp.ne.s32.totalorder %s8259_s26, 0 }
  0x5a   : > { %7207 = dma.done.wait (%p8272_p13), [#allocation7], 9216  }
  0x5b   : > { %7209 = vsyncadd (%p8272_p13), [#allocation7], 4294958080  ;;  %v7246_v0 = vmov 0   ;;  %v6950_v1 = vld [vmem:[#allocation6 + $0x40] sm:$0xff]   ;;  %v6952_v3 = vld [vmem:[#allocation6 + $0x48] sm:$0xff]   ;;  %vm959_vm0 = vcmask 1043456  }
  0x5c   : > { %289 = vst [vmem:[#allocation2] sm:$0xff] %v7246_v0  ;;  %290 = vst [vmem:[#allocation2 + $0x8] sm:$0xff] %v7246_v0  ;;  %v6951_v2 = vld [vmem:[#allocation6 + $0x100] sm:$0xff]   ;;  %6162 = vmatprep.subr.bf16.mxu1 %v6950_v1  ;;  %v6953_v4 = vld [vmem:[#allocation6 + $0x108] sm:$0xff]   ;;  %vm1474_vm1 = vsmask.f32 3328 }
  0x5d   : > { %292 = vst [vmem:[#allocation2 + $0x110] sm:$0xff] %v7246_v0  ;;  %293 = vst [vmem:[#allocation2 + $0x118] sm:$0xff] %v7246_v0  ;;  %6354 = vmatprep.subr.bf16.mxu0 %v6951_v2  ;;  %6163 = vmatpush3.bf16.msra.mxu1 %v6950_v1  ;;  %v6954_v5 = vld [vmem:[#allocation6 + $0x50] sm:$0xff]   ;;  %v6956_v7 = vld [vmem:[#allocation6 + $0x58] sm:$0xff]   ;;  %vm606_vm2 = vsmask.f32 4352 }
  0x5e   : > { %295 = vst [vmem:[#allocation2 + $0x10] sm:$0xf] %v7246_v0  ;;  %296 = vst [vmem:[#allocation2 + $0x20] sm:$0xf] %v7246_v0  ;;  %6355 = vmatpush3.bf16.msra.mxu0 %v6951_v2  ;;  %6164 = vmatprep.subr.bf16.mxu1 %v6952_v3  ;;  %v6955_v6 = vld [vmem:[#allocation6 + $0x110] sm:$0xff]   ;;  %v6957_v8 = vld [vmem:[#allocation6 + $0x118] sm:$0xff]  }
  0x5f   : > { %297 = vst [vmem:[#allocation2 + $0x30] sm:$0xf] %v7246_v0  ;;  %298 = vst [vmem:[#allocation2 + $0x40] sm:$0xf] %v7246_v0  ;;  %6356 = vmatprep.subr.bf16.mxu0 %v6953_v4  ;;  %v6958_v9 = vld [vmem:[#allocation6 + $0x60] sm:$0xff]   ;;  %v6960_v11 = vld [vmem:[#allocation6 + $0x68] sm:$0xff]  }
  0x60   : > { %299 = vst [vmem:[#allocation2 + $0x50] sm:$0xf] %v7246_v0  ;;  %300 = vst [vmem:[#allocation2 + $0x60] sm:$0xf] %v7246_v0  ;;  %v6959_v10 = vld [vmem:[#allocation6 + $0x120] sm:$0xff]   ;;  %v6961_v15 = vld [vmem:[#allocation6 + $0x128] sm:$0xff]  }
  0x61   : > { %301 = vst [vmem:[#allocation2 + $0x70] sm:$0xf] %v7246_v0  ;;  %302 = vst [vmem:[#allocation2 + $0x80] sm:$0xf] %v7246_v0  ;;  %6165 = vmatpush3.bf16.msra.mxu1 %v6952_v3  ;;  %v5773_v14 = vld [vmem:[%s7446_s13] sm:$0xff]   ;;  %v5916_v25 = vld [vmem:[%s7446_s13 + $0x8] sm:$0xff]  }
  0x62   : > { %303 = vst [vmem:[#allocation2 + $0x90] sm:$0xf] %v7246_v0  ;;  %304 = vst [vmem:[#allocation2 + $0xa0] sm:$0xf] %v7246_v0  ;;  %6357 = vmatpush3.bf16.msra.mxu0 %v6953_v4  ;;  %6166 = vmatprep.subr.bf16.mxu1 %v6954_v5  ;;  %v5774_v18 = vunpack.c.l.bf16 %v5773_v14  ;;  %v5775_v19 = vunpack.c.h.bf16 %v5773_v14  ;;  %v7460_v20 = vld [vmem:[%s8250_s2] ss:$0 sm:$0xff]  ;;  %v5778_v28 = vunpack.c.l.bf16 %v5916_v25  ;;  %v5779_v29 = vunpack.c.h.bf16 %v5916_v25 }
  0x63   : > { %305 = vst [vmem:[#allocation2 + $0xb0] sm:$0xf] %v7246_v0  ;;  %306 = vst [vmem:[#allocation2 + $0xc0] sm:$0xf] %v7246_v0  ;;  %6358 = vmatprep.subr.bf16.mxu0 %v6955_v6  ;;  %v575_v12 = vld [vmem:[#allocation2 + $0x8] sm:$0xf] }
  0x64   : > { %307 = vst [vmem:[#allocation2 + $0xd0] sm:$0xf] %v7246_v0  ;;  %308 = vst [vmem:[#allocation2 + $0xe0] sm:$0xf] %v7246_v0  ;;  %v911_v13 = vld [vmem:[#allocation2] sm:$0xf0]  ;;  %v401_v23 = vmul.f32 %v5774_v18, %v7460_v20  ;;  %v402_v24 = vmul.f32 %v5775_v19, %v7460_v20  ;;  %v403_v35 = vmul.f32 %v5778_v28, %v7460_v20 }
  0x65   : > { %309 = vst [vmem:[#allocation2 + $0xf0] sm:$0xf] %v7246_v0  ;;  %310 = vst [vmem:[#allocation2 + $0x100] sm:$0xf] %v7246_v0  ;;  %6167 = vmatpush3.bf16.msra.mxu1 %v6954_v5  ;;  %v960_v16 = vrot.slane %v911_v13, 4  ;;  %v961_v17 = vrot.slane %v575_v12, 4  ;;  %v404_v36 = vmul.f32 %v5779_v29, %v7460_v20 }
  0x66   : > { %313 = vst [vmem:[#allocation2 + $0x18] sm:$0xf0] %v7246_v0  ;;  %314 = vst [vmem:[#allocation2 + $0x28] sm:$0xf0] %v7246_v0  ;;  %6359 = vmatpush3.bf16.msra.mxu0 %v6955_v6  ;;  %6168 = vmatprep.subr.bf16.mxu1 %v6956_v7  ;;  %v7465_v21 = vld [vmem:[%s8251_s3] ss:$0 sm:$0xff] }
  0x67   : > { %315 = vst [vmem:[#allocation2 + $0x38] sm:$0xf0] %v7246_v0  ;;  %316 = vst [vmem:[#allocation2 + $0x48] sm:$0xf0] %v7246_v0  ;;  %6360 = vmatprep.subr.bf16.mxu0 %v6957_v8  ;;  %v962_v22 = vsel %vm959_vm0, %v960_v16, %v961_v17  ;;  %v616_v26 = vshrl.u32 %v575_v12, 16  ;;  %v6962_v27 = vld [vmem:[#allocation6 + $0x70] sm:$0xff]   ;;  %v440_v32 = vadd.f32 %v7465_v21, %v401_v23 }
  0x68   : > { %317 = vst [vmem:[#allocation2 + $0x58] sm:$0xf0] %v7246_v0  ;;  %318 = vst [vmem:[#allocation2 + $0x68] sm:$0xf0] %v7246_v0  ;;  %v619_v30 = vshll.u32 %v575_v12, 16  ;;  %v6963_v31 = vld [vmem:[#allocation6 + $0x130] sm:$0xff]   ;;  %6178 = vmatprep.mubr.bf16.mxu1 %v962_v22  ;;  %v441_v33 = vadd.f32 %v7465_v21, %v402_v24  ;;  %v442_v46 = vadd.f32 %v7465_v21, %v403_v35 }
  0x69   : > { %319 = vst [vmem:[#allocation2 + $0x78] sm:$0xf0] %v7246_v0  ;;  %320 = vst [vmem:[#allocation2 + $0x88] sm:$0xf0] %v7246_v0  ;;  %6169 = vmatpush3.bf16.msra.mxu1 %v6956_v7  ;;  %v5917_v34 = vld [vmem:[%s7446_s13 + $0x10] sm:$0xff]   ;;  %v5918_v39 = vld [vmem:[%s7446_s13 + $0x18] sm:$0xff]   ;;  %v443_v47 = vadd.f32 %v7465_v21, %v404_v36 }
  0x6a   : > { %321 = vst [vmem:[#allocation2 + $0x98] sm:$0xf0] %v7246_v0  ;;  %322 = vst [vmem:[#allocation2 + $0xa8] sm:$0xf0] %v7246_v0  ;;  %6361 = vmatpush3.bf16.msra.mxu0 %v6957_v8  ;;  %6170 = vmatprep.subr.bf16.mxu1 %v6958_v9  ;;  %v5782_v37 = vunpack.c.l.bf16 %v5917_v34  ;;  %v5783_v38 = vunpack.c.h.bf16 %v5917_v34  ;;  %v6964_v40 = vld [vmem:[#allocation6 + $0x78] sm:$0xff]   ;;  %v472_v41 = vpack.c.bf16 %v441_v33, %v440_v32  ;;  %v5786_v42 = vunpack.c.l.bf16 %v5918_v39  ;;  %v5919_v54 = vld [vmem:[%s7446_s13 + $0x20] sm:$0xff]  }
  0x6b   : > { %323 = vst [vmem:[#allocation2 + $0xb8] sm:$0xf0] %v7246_v0  ;;  %324 = vst [vmem:[#allocation2 + $0xc8] sm:$0xf0] %v7246_v0  ;;  %6362 = vmatprep.subr.bf16.mxu0 %v6959_v10  ;;  %v5787_v43 = vunpack.c.h.bf16 %v5918_v39  ;;  %v7477_v44 = vrot.slane %v616_v26, 3  ;;  %v6965_v45 = vld [vmem:[#allocation6 + $0x138] sm:$0xff]   ;;  %v473_v55 = vpack.c.bf16 %v443_v47, %v442_v46  ;;  %v5790_v57 = vunpack.c.l.bf16 %v5919_v54 }
  0x6c   : > { %325 = vst [vmem:[#allocation2 + $0xd8] sm:$0xf0] %v7246_v0  ;;  %326 = vst [vmem:[#allocation2 + $0xe8] sm:$0xf0] %v7246_v0  ;;  %v405_v48 = vmul.f32 %v5782_v37, %v7460_v20  ;;  %v7482_v49 = vrot.slane %v619_v30, 4  ;;  %v504_v50 = vrot.slane %v472_v41, 4  ;;  %v406_v51 = vmul.f32 %v5783_v38, %v7460_v20 }
  0x6d   : > { %327 = vst [vmem:[#allocation2 + $0xf8] sm:$0xf0] %v7246_v0  ;;  %328 = vst [vmem:[#allocation2 + $0x108] sm:$0xf0] %v7246_v0  ;;  %6171 = vmatpush3.bf16.msra.mxu1 %v6958_v9  ;;  %v407_v52 = vmul.f32 %v5786_v42, %v7460_v20  ;;  %v408_v53 = vmul.f32 %v5787_v43, %v7460_v20  ;;  %v5791_v58 = vunpack.c.h.bf16 %v5919_v54  ;;  %v5920_v59 = vld [vmem:[%s7446_s13 + $0x28] sm:$0xff]   ;;  %v505_v1 = vrot.slane %v473_v55, 4 }
  0x6e   : > { %294 = vst [vmem:[#allocation2] sm:$0xf] %v7246_v0  ;;  %312 = vst [vmem:[#allocation2 + $0x8] sm:$0xf0] %v7246_v0  ;;  %6363 = vmatpush3.bf16.msra.mxu0 %v6959_v10  ;;  %6172 = vmatprep.subr.bf16.mxu1 %v6960_v11  ;;  %v444_v56 = vadd.f32 %v7465_v21, %v405_v48  ;;  %v445_v60 = vadd.f32 %v7465_v21, %v406_v51  ;;  %v5794_v63 = vunpack.c.l.bf16 %v5920_v59  ;;  %v5921_v5 = vld [vmem:[%s7446_s13 + $0x30] sm:$0xff]   ;;  %v7498_v6 = vld [vmem:[#allocation6 + $0x140] sm:$0xff]  }
  0x6f   : > { %311 = vst [vmem:[#allocation2 + $0x110] sm:$0xf] %v7246_v0  ;;  %329 = vst [vmem:[#allocation2 + $0x118] sm:$0xf0] %v7246_v0  ;;  %6364 = vmatprep.subr.bf16.mxu0 %v6961_v15  ;;  %v446_v61 = vadd.f32 %v7465_v21, %v407_v52  ;;  %v447_v62 = vadd.f32 %v7465_v21, %v408_v53  ;;  %v7493_v0 = vld [vmem:[#allocation6] sm:$0xff]   ;;  %v409_v2 = vmul.f32 %v5790_v57, %v7460_v20  ;;  %v6969_v48 = vld [vmem:[#allocation6 + $0x8] sm:$0xff]  }
  0x70   : > { %537 = vst [vmem:[#allocation2 + $0x18] ss:$-4 sps:$4 sm:$0xff] %v504_v50   ;;  %v410_v3 = vmul.f32 %v5791_v58, %v7460_v20  ;;  %v5795_v4 = vunpack.c.h.bf16 %v5920_v59  ;;  %v474_v7 = vpack.c.bf16 %v445_v60, %v444_v56  ;;  %v411_v9 = vmul.f32 %v5794_v63, %v7460_v20  ;;  %539 = vst [vmem:[#allocation2 + $0x28] ss:$-4 sps:$4 sm:$0xff] %v505_v1   ;;  %v7522_v25 = vld [vmem:[%s7446_s13 + $0x40] sm:$0xff]   ;;  %v6968_v60 = vld [vmem:[#allocation6 + $0x148] sm:$0xff]  }
  0x71   : > { %6173 = vmatpush3.bf16.msra.mxu1 %v6960_v11  ;;  %v475_v8 = vpack.c.bf16 %v447_v62, %v446_v61  ;;  %v5798_v10 = vunpack.c.l.bf16 %v5921_v5  ;;  %v7502_v11 = vadd.f32 %v7465_v21, %v409_v2  ;;  %v5799_v14 = vunpack.c.h.bf16 %v5921_v5  ;;  %s5496_s16 = sshll.u32 %s7440_s12, 1  ;;  %s8137_s17 = scalar_lea.vmem [#allocation8], %s5493_s27 }
  0x72   : > { %6365 = vmatpush3.bf16.msra.mxu0 %v6961_v15  ;;  %6174 = vmatprep.subr.bf16.mxu1 %v6962_v27  ;;  %v7505_v12 = vadd.f32 %v7465_v21, %v410_v3  ;;  %v412_v13 = vmul.f32 %v5795_v4, %v7460_v20  ;;  %v7509_v15 = vld [vmem:[%s7446_s13 + $0x38] sm:$0xff]   ;;  %v506_v16 = vrot.slane %v474_v7, 4  ;;  %v7512_v18 = vadd.f32 %v7465_v21, %v411_v9  ;;  %s8124_s6 = scalar_lea.vmem [#allocation9], %s5496_s16  ;;  %s5771_s27 = sshll.u32 %s7232_s21, 11 }
  0x73   : > { %6366 = vmatprep.subr.bf16.mxu0 %v6963_v31  ;;  %v507_v17 = vrot.slane %v475_v8, 4  ;;  %v413_v19 = vmul.f32 %v5798_v10, %v7460_v20  ;;  %v414_v23 = vmul.f32 %v5799_v14, %v7460_v20  ;;  %v5802_v24 = vunpack.c.l.bf16 %v7509_v15  ;;  %s5335_s7 = sshll.u32 %s8137_s17, 4  ;;  %s8162_s28 = scalar_lea.hbm %s8252_s4, %s5771_s27  ;;  %s8164_s7 = int_to_ptr.vmem [resolvable:$true] %s5335_s7 }
  0x74   : > { %v7517_v22 = vadd.f32 %v7465_v21, %v412_v13  ;;  %v622_v26 = vor.u32 %v7482_v49, %v7477_v44  ;;  %541 = vst [vmem:[#allocation2 + $0x38] ss:$-4 sps:$4 sm:$0xff] %v506_v16   ;;  %v5803_v29 = vunpack.c.h.bf16 %v7509_v15  ;;  %v5806_v30 = vunpack.c.l.bf16 %v7522_v25  ;;  %s5314_s30 = scalar_lea.sflag [#allocation5], %s7440_s12  ;;  %s7122_s24 = scalar_lea.vmem %s8164_s7, 2048 }
  0x75   : > { %6175 = vmatpush3.bf16.msra.mxu1 %v6962_v27  ;;  %543 = vst [vmem:[#allocation2 + $0x48] ss:$-4 sps:$4 sm:$0xff] %v507_v17   ;;  %v476_v27 = vpack.c.bf16 %v7505_v12, %v7502_v11  ;;  %v7530_v28 = vadd.f32 %v7465_v21, %v413_v19  ;;  %v7539_v35 = vadd.f32 %v7465_v21, %v414_v23  ;;  %v5807_v37 = vunpack.c.h.bf16 %v7522_v25  ;;  %v6972_v17 = vld [vmem:[#allocation6 + $0x10] sm:$0xff]   ;;  %p7123_p4 = scmp.ne.s32.totalorder %s8164_s7, %s7122_s24  ;;  %s7248_s25 = smov [#allocation8]  }
  0x76   : > { %6367 = vmatpush3.bf16.msra.mxu0 %v6963_v31  ;;  %6176 = vmatprep.subr.bf16.mxu1 %v6964_v40  ;;  %v477_v34 = vpack.c.bf16 %v7517_v22, %v7512_v18  ;;  %v415_v36 = vmul.f32 %v5802_v24, %v7460_v20  ;;  %s7126_s10 = sshll.u32 %s7248_s25, 4  ;;  %s7127_s10 = int_to_ptr.vmem [resolvable:$false] %s7126_s10 }
  0x77   : > { %6368 = vmatprep.subr.bf16.mxu0 %v6965_v45  ;;  %v5524_v31 = vld [vmem:[#allocation2 + $0x18] sm:$0xf]  ;;  %v7534_v32 = vld [vmem:[#allocation2 + $0x10] sm:$0xf0]  ;;  %v5526_v53 = vld [vmem:[#allocation2 + $0x28] sm:$0xf]  ;;  %v478_v55 = vpack.c.bf16 %v7539_v35, %v7530_v28  ;;  %p7124_p6 = pnand %p7123_p4, %p7381_p10  ;;  %p7129_p12 = scmp.lt.s32.totalorder %s8164_s7, %s7127_s10 }
  0x78   : > { %v577_v33 = vld [vmem:[#allocation2 + $0x18] sm:$0xf]  ;;  %v2649_v38 = vrot.slane %v7534_v32, 4  ;;  %v2650_v39 = vrot.slane %v5524_v31, 4  ;;  %v912_v42 = vld [vmem:[#allocation2 + $0x10] sm:$0xf0] }
  0x79   : > { %6177 = vmatpush3.bf16.msra.mxu1 %v6964_v40  ;;  %v633_v40 = vshrl.u32 %v577_v33, 16  ;;  %v636_v41 = vshll.u32 %v577_v33, 16  ;;  %v963_v43 = vrot.slane %v912_v42, 4  ;;  %v1493_v46 = vshrl.u32 %v912_v42, 16  ;;  %v5564_v54 = vld [vmem:[#allocation2 + $0x20] sm:$0xf0]  ;;  %p7125_p8 = pneg %p7124_p6 }
  0x7a   : > { %6369 = vmatpush3.bf16.msra.mxu0 %v6965_v45  ;;  %6210 = vmatprep.subr.bf16.mxu1 %v7493_v0  ;;  %v964_v45 = vrot.slane %v577_v33, 4  ;;  %v1496_v47 = vshll.u32 %v912_v42, 16  ;;  %v2651_v50 = vsel %vm959_vm0, %v2649_v38, %v2650_v39  ;;  %v2082_v59 = vshrl.u32 %v5526_v53, 16  ;;  %v7556_v61 = vld [vmem:[#allocation2 + $0x28] sm:$0xf]  ;;  %v6970_v31 = vld [vmem:[#allocation6 + $0x150] sm:$0xff]  }
  0x7b   : > { %6402 = vmatprep.subr.bf16.mxu0 %v7498_v6  ;;  %v7545_v51 = vrot.slane %v633_v40, 3  ;;  %v7547_v52 = vrot.slane %v636_v41, 4  ;;  %6370 = vmatprep.mubr.bf16.mxu0 %v2651_v50  ;;  %v7552_v57 = vrot.slane %v1493_v46, 4  ;;  %v2085_v62 = vshll.u32 %v5526_v53, 16  ;;  %v913_v3 = vld [vmem:[#allocation2 + $0x20] sm:$0xf0] }
  0x7c   : > { %v965_v56 = vsel %vm959_vm0, %v963_v43, %v964_v45  ;;  %v7554_v58 = vrot.slane %v1496_v47, 5  ;;  %v2652_v63 = vrot.slane %v5564_v54, 4  ;;  %v2653_v1 = vrot.slane %v5526_v53, 4  ;;  %v5528_v9 = vld [vmem:[#allocation2 + $0x38] sm:$0xf]  ;;  %s7128_s11 = scalar_lea.vmem %s7127_s10, 4096 }
  0x7d   : > { %6179 = vmatmul.mubr.bf16.vlgmr.msra.gmra.mrb[0].mxu1 %v965_v56  ;;  %v3004_v2 = vshrl.u32 %v5564_v54, 16  ;;  %v7558_v4 = vrot.slane %v2082_v59, 3  ;;  %v3007_v5 = vshll.u32 %v5564_v54, 16  ;;  %v966_v7 = vrot.slane %v913_v3, 4  ;;  %v7567_v15 = vld [vmem:[#allocation2 + $0x30] sm:$0xf0]  ;;  %p7130_p11 = scmp.lt.s32.totalorder %s7128_s11, %s7122_s24 }
  0x7e   : > { %6211 = vmatpush3.bf16.msra.mxu1 %v7493_v0  ;;  %v967_v8 = vrot.slane %v7556_v61, 4  ;;  %v7562_v10 = vrot.slane %v2085_v62, 4  ;;  %v2654_v13 = vsel %vm959_vm0, %v2652_v63, %v2653_v1  ;;  %v2656_v16 = vrot.slane %v5528_v9, 4  ;;  %v7573_v24 = vld [vmem:[#allocation2 + $0x38] sm:$0xf] }
  0x7f   : > { %v7565_v14 = vrot.slane %v3004_v2, 4  ;;  %6212 = vmatprep.subr.bf16.mxu1 %v6969_v48  ;;  %6371 = vmatmul.mubr.bf16.vlgmr.msra.gmra.mrb[0].mxu0 %v2654_v13  ;;  %v7569_v19 = vrot.slane %v3007_v5, 5  ;;  %v2655_v23 = vrot.slane %v7567_v15, 4  ;;  %v914_v28 = vld [vmem:[#allocation2 + $0x30] sm:$0xf0]  ;;  %v416_v33 = vmul.f32 %v5803_v29, %v7460_v20  ;;  %v6975_v56 = vld [vmem:[#allocation6 + $0x18] sm:$0xff]   ;;  %p7131_p0 = por %p7130_p11, %p7129_p12 }
  0x80   : > { %v968_v0 = vsel %vm959_vm0, %v966_v7, %v967_v8  ;;  %v5587_v35 = vld [vmem:[#allocation2 + $0x18] sm:$0x1f]  ;;  %6403 = vmatpush3.bf16.msra.mxu0 %v7498_v6  ;;  %v969_v38 = vrot.slane %v914_v28, 4  ;;  %v970_v39 = vrot.slane %v7573_v24, 4  ;;  %v5530_v40 = vld [vmem:[#allocation2 + $0x48] sm:$0xf]  ;;  %v454_v42 = vadd.f32 %v7465_v21, %v415_v36 }
  0x81   : > { %6182 = vmatprep.mubr.bf16.mxu1 %v968_v0  ;;  %v7578_v41 = vld [vmem:[#allocation2 + $0x40] sm:$0xf0]  ;;  %v417_v43 = vmul.f32 %v5806_v30, %v7460_v20  ;;  %6404 = vmatprep.subr.bf16.mxu0 %v6968_v60  ;;  %v2657_v29 = vsel %vm959_vm0, %v2655_v23, %v2656_v16  ;;  %v2659_v6 = vrot.slane %v5530_v40, 4  ;;  %v7586_v46 = vld [vmem:[#allocation2 + $0x48] sm:$0xf]  ;;  %v455_v50 = vadd.f32 %v7465_v21, %v416_v33  ;;  %v6971_v3 = vld [vmem:[#allocation6 + $0x158] sm:$0xff]   ;;  %p7132_p5 = pnand %p7131_p0, %p7125_p8 }
  0x82   : > { %v2658_v45 = vrot.slane %v7578_v41, 4  ;;  %6213 = vmatpush3.bf16.msra.mxu1 %v6969_v48  ;;  %v915_v47 = vld [vmem:[#allocation2 + $0x40] sm:$0xf0]  ;;  %6374 = vmatprep.mubr.bf16.mxu0 %v2657_v29  ;;  %v971_v36 = vsel %vm959_vm0, %v969_v38, %v970_v39  ;;  %v973_v54 = vrot.slane %v7586_v46, 4  ;;  %v508_v30 = vrot.slane %v476_v27, 4  ;;  %v5925_v33 = vld [vmem:[%s7446_s13 + $0x50] sm:$0xff]  }
  0x83   : > { %v972_v53 = vrot.slane %v915_v47, 4  ;;  %6214 = vmatprep.subr.bf16.mxu1 %v6972_v17  ;;  %v509_v48 = vrot.slane %v477_v34, 4  ;;  %v510_v62 = vrot.slane %v478_v55, 4  ;;  %v479_v63 = vpack.c.bf16 %v455_v50, %v454_v42  ;;  %v5588_v1 = vld [vmem:[#allocation2 + $0x28] sm:$0x1f]  ;;  %v6978_v16 = vld [vmem:[#allocation6 + $0x20] sm:$0xff]  }
  0x84   : > { %v2660_v59 = vsel %vm959_vm0, %v2658_v45, %v2659_v6  ;;  %6405 = vmatpush3.bf16.msra.mxu0 %v6968_v60  ;;  %545 = vst [vmem:[#allocation2 + $0x58] ss:$-4 sps:$4 sm:$0xff] %v508_v30   ;;  %v2987_v11 = vshrl.u32 %v7534_v32, 16  ;;  %v2990_v12 = vshll.u32 %v7534_v32, 16  ;;  %v2995_v27 = vshrl.u32 %v5587_v35, 16  ;;  %v5924_v60 = vld [vmem:[%s7446_s13 + $0x48] sm:$0xff]  }
  0x85   : > { %6183 = vmatmul.mubr.bf16.gmra.mrb[4].mxu1 %v971_v36  ;;  %v974_v2 = vsel %vm959_vm0, %v972_v53, %v973_v54  ;;  %6406 = vmatprep.subr.bf16.mxu0 %v6970_v31  ;;  %547 = vst [vmem:[#allocation2 + $0x68] ss:$-4 sps:$4 sm:$0xff] %v509_v48   ;;  %549 = vst [vmem:[#allocation2 + $0x78] ss:$-4 sps:$4 sm:$0xff] %v510_v62   ;;  %v511_v18 = vrot.slane %v479_v63, 4  ;;  %v2998_v22 = vshll.u32 %v5587_v35, 16  ;;  %v5810_v23 = vunpack.c.l.bf16 %v5924_v60 }
  0x86   : > { %6186 = vmatprep.mubr.bf16.mxu1 %v974_v2  ;;  %v418_v34 = vmul.f32 %v5807_v37, %v7460_v20  ;;  %v456_v55 = vadd.f32 %v7465_v21, %v417_v43  ;;  %6215 = vmatpush3.bf16.msra.mxu1 %v6972_v17  ;;  %v2989_v5 = vrot.slane %v2987_v11, 4  ;;  %v2992_v7 = vrot.slane %v2990_v12, 5  ;;  %v6973_v35 = vld [vmem:[#allocation6 + $0x160] sm:$0xff]   ;;  %v7616_v29 = vld [vmem:[#allocation6 + $0x28] sm:$0xff]  }
  0x87   : > { %v2997_v32 = vrot.slane %v2995_v27, 4  ;;  %v3010_v8 = vor.u32 %v7569_v19, %v7565_v14  ;;  %6375 = vmatmul.mubr.bf16.gmra.mrb[4].mxu0 %v2660_v59  ;;  %6216 = vmatprep.subr.bf16.mxu1 %v6975_v56  ;;  %551 = vst [vmem:[#allocation2 + $0x88] ss:$-4 sps:$4 sm:$0xff] %v511_v18   ;;  %v3000_v9 = vrot.slane %v2998_v22, 5  ;;  %v3012_v25 = vshrl.u32 %v5588_v1, 16  ;;  %v7622_v50 = vld [vmem:[#allocation6 + $0x168] sm:$0xff]  }
  0x88   : > { %v457_v13 = vadd.f32 %v7465_v21, %v418_v34  ;;  %v3015_v37 = vshll.u32 %v5588_v1, 16  ;;  %6407 = vmatpush3.bf16.msra.mxu0 %v6970_v31  ;;  %v2993_v0 = vor.u32 %v2992_v7, %v2989_v5  ;;  %v5811_v17 = vunpack.c.h.bf16 %v5924_v60 }
  0x89   : > { %v3021_v28 = vshrl.u32 %v7567_v15, 16  ;;  %6408 = vmatprep.subr.bf16.mxu0 %v6971_v3  ;;  %v3001_v38 = vor.u32 %v3000_v9, %v2997_v32  ;;  %v3014_v19 = vrot.slane %v3012_v25, 4  ;;  %v419_v40 = vmul.f32 %v5810_v23, %v7460_v20  ;;  %v5589_v23 = vld [vmem:[#allocation2 + $0x38] sm:$0x1f] }
  0x8a   : > { %v480_v14 = vpack.c.bf16 %v457_v13, %v456_v55  ;;  %v3017_v39 = vrot.slane %v3015_v37, 5  ;;  %6217 = vmatpush3.bf16.msra.mxu1 %v6975_v56  ;;  %v420_v42 = vmul.f32 %v5811_v17, %v7460_v20  ;;  %v3024_v31 = vshll.u32 %v7567_v15, 16  ;;  %v6976_v37 = vld [vmem:[#allocation6 + $0x170] sm:$0xff]  }
  0x8b   : > { %v7613_v43 = vrot.slane %v3021_v28, 4  ;;  %v5532_v45 = vld [vmem:[#allocation2 + $0x58] sm:$0xf]  ;;  %v7618_v6 = vld [vmem:[#allocation2 + $0x50] sm:$0xf0]  ;;  %v7625_v36 = vsel %vm1474_vm1, %v2993_v0, %v3001_v38  ;;  %6218 = vmatprep.subr.bf16.mxu1 %v6978_v16  ;;  %v5814_v54 = vunpack.c.l.bf16 %v5925_v33  ;;  %v5815_v30 = vunpack.c.h.bf16 %v5925_v33 }
  0x8c   : > { %v7620_v47 = vld [vmem:[#allocation2 + $0x58] sm:$0xf]  ;;  %v3018_v53 = vor.u32 %v3017_v39, %v3014_v19  ;;  %6409 = vmatpush3.bf16.msra.mxu0 %v6971_v3  ;;  %v2661_v56 = vrot.slane %v7618_v6, 4  ;;  %v2662_v59 = vrot.slane %v5532_v45, 4  ;;  %v916_v48 = vld [vmem:[#allocation2 + $0x50] sm:$0xf0]  ;;  %v458_v27 = vadd.f32 %v7465_v21, %v419_v40 }
  0x8d   : > { %v976_v62 = vrot.slane %v7620_v47, 4  ;;  %v512_v63 = vrot.slane %v480_v14, 4  ;;  %v975_v1 = vrot.slane %v916_v48, 4  ;;  %v5534_v2 = vld [vmem:[#allocation2 + $0x68] sm:$0xf]  ;;  %6410 = vmatprep.subr.bf16.mxu0 %v6973_v35  ;;  %v459_v18 = vadd.f32 %v7465_v21, %v420_v42  ;;  %v7636_v3 = vld [vmem:[#allocation6 + $0x30] sm:$0xff]  }
  0x8e   : > { %v7629_v11 = vld [vmem:[#allocation2 + $0x60] sm:$0xf0]  ;;  %v7632_v12 = vsel %vm1474_vm1, %v3010_v8, %v3018_v53  ;;  %v2663_v22 = vsel %vm959_vm0, %v2661_v56, %v2662_v59  ;;  %v2665_v55 = vrot.slane %v5534_v2, 4  ;;  %v7640_v60 = vld [vmem:[#allocation2 + $0x68] sm:$0xf]  ;;  %6219 = vmatpush3.bf16.msra.mxu1 %v6978_v16  ;;  %v421_v7 = vmul.f32 %v5814_v54, %v7460_v20 }
  0x8f   : > { %v2664_v34 = vrot.slane %v7629_v11, 4  ;;  %v917_v5 = vld [vmem:[#allocation2 + $0x60] sm:$0xf0]  ;;  %553 = vst [vmem:[#allocation2 + $0x98] ss:$-4 sps:$4 sm:$0xff] %v512_v63   ;;  %6378 = vmatprep.mubr.bf16.mxu0 %v2663_v22  ;;  %v977_v32 = vsel %vm959_vm0, %v975_v1, %v976_v62  ;;  %v979_v9 = vrot.slane %v7640_v60, 4  ;;  %v481_v0 = vpack.c.bf16 %v459_v18, %v458_v27  ;;  %6220 = vmatprep.subr.bf16.mxu1 %v7616_v29 }
  0x90   : > { %v978_v8 = vrot.slane %v917_v5, 4  ;;  %v5536_v13 = vld [vmem:[#allocation2 + $0x78] sm:$0xf]  ;;  %v7645_v25 = vld [vmem:[#allocation2 + $0x70] sm:$0xf0]  ;;  %6187 = vmatmul.mubr.bf16.gmra.mrb[8].mxu1 %v977_v32  ;;  %6411 = vmatpush3.bf16.msra.mxu0 %v6973_v35  ;;  %v422_v14 = vmul.f32 %v5815_v30, %v7460_v20  ;;  %v460_v35 = vadd.f32 %v7465_v21, %v421_v7 }
  0x91   : > { %v2666_v17 = vsel %vm959_vm0, %v2664_v34, %v2665_v55  ;;  %v2667_v16 = vrot.slane %v7645_v25, 4  ;;  %v2668_v28 = vrot.slane %v5536_v13, 4  ;;  %v7650_v33 = vld [vmem:[#allocation2 + $0x78] sm:$0xf]  ;;  %v918_v38 = vld [vmem:[#allocation2 + $0x70] sm:$0xf0]  ;;  %6412 = vmatprep.subr.bf16.mxu0 %v7622_v50 }
  0x92   : > { %6379 = vmatmul.mubr.bf16.gmra.mrb[8].mxu0 %v2666_v17  ;;  %v980_v19 = vsel %vm959_vm0, %v978_v8, %v979_v9  ;;  %v981_v39 = vrot.slane %v918_v38, 4  ;;  %v982_v40 = vrot.slane %v7650_v33, 4  ;;  %v5538_v42 = vld [vmem:[#allocation2 + $0x88] sm:$0xf]  ;;  %v7656_v45 = vld [vmem:[#allocation2 + $0x80] sm:$0xf0]  ;;  %v461_v48 = vadd.f32 %v7465_v21, %v422_v14  ;;  %6221 = vmatpush3.bf16.msra.mxu1 %v7616_v29 }
  0x93   : > { %6190 = vmatprep.mubr.bf16.mxu1 %v980_v19  ;;  %v2669_v53 = vsel %vm959_vm0, %v2667_v16, %v2668_v28  ;;  %v2670_v54 = vrot.slane %v7656_v45, 4  ;;  %v2671_v56 = vrot.slane %v5538_v42, 4  ;;  %v7661_v30 = vld [vmem:[#allocation2 + $0x88] sm:$0xf]  ;;  %v919_v59 = vld [vmem:[#allocation2 + $0x80] sm:$0xf0]  ;;  %6222 = vmatprep.subr.bf16.mxu1 %v7636_v3 }
  0x94   : > { %6382 = vmatprep.mubr.bf16.mxu0 %v2669_v53  ;;  %v983_v62 = vsel %vm959_vm0, %v981_v39, %v982_v40  ;;  %v6977_v63 = vld [vmem:[#allocation6 + $0x178] sm:$0xff]   ;;  %v984_v1 = vrot.slane %v919_v59, 4  ;;  %v985_v2 = vrot.slane %v7661_v30, 4  ;;  %v513_v27 = vrot.slane %v481_v0, 4  ;;  %6413 = vmatpush3.bf16.msra.mxu0 %v7622_v50  ;;  %v5590_v5 = vld [vmem:[#allocation2 + $0x48] sm:$0x1f] }
  0x95   : > { %v6984_v18 = vld [vmem:[#allocation6 + $0x38] sm:$0xff]   ;;  %v2672_v22 = vsel %vm959_vm0, %v2670_v54, %v2671_v56  ;;  %v3026_v34 = vrot.slane %v3024_v31, 5  ;;  %v3029_v55 = vshrl.u32 %v5589_v23, 16  ;;  %v3032_v29 = vshll.u32 %v5589_v23, 16  ;;  %6414 = vmatprep.subr.bf16.mxu0 %v6976_v37 }
  0x96   : > { %v5926_v7 = vld [vmem:[%s7446_s13 + $0x58] sm:$0xff]   ;;  %v986_v32 = vsel %vm959_vm0, %v984_v1, %v985_v2  ;;  %v920_v9 = vld [vmem:[#allocation2 + $0x90] sm:$0xf0]  ;;  %555 = vst [vmem:[#allocation2 + $0xa8] ss:$-4 sps:$4 sm:$0xff] %v513_v27   ;;  %v482_v13 = vpack.c.bf16 %v461_v48, %v460_v35  ;;  %v3038_v0 = vshrl.u32 %v7578_v41, 16  ;;  %6223 = vmatpush3.bf16.msra.mxu1 %v7636_v3 }
  0x97   : > { %v7674_v8 = vld [vmem:[#allocation2 + $0x98] sm:$0xf]  ;;  %v3041_v50 = vshll.u32 %v7578_v41, 16  ;;  %v987_v17 = vrot.slane %v920_v9, 4  ;;  %v3027_v31 = vor.u32 %v3026_v34, %v7613_v43  ;;  %v3031_v23 = vrot.slane %v3029_v55, 4  ;;  %6224 = vmatprep.subr.bf16.mxu1 %v6984_v18  ;;  %v7682_v35 = vld [vmem:[#allocation6 + $0x80] sm:$0xff]  }
  0x98   : > { %v988_v15 = vrot.slane %v7674_v8, 4  ;;  %v5591_v16 = vld [vmem:[#allocation2 + $0x58] sm:$0x1f]  ;;  %v3034_v28 = vrot.slane %v3032_v29, 5  ;;  %v514_v38 = vrot.slane %v482_v13, 4  ;;  %v3040_v14 = vrot.slane %v3038_v0, 4  ;;  %6191 = vmatmul.mubr.bf16.gmra.mrb[12].mxu1 %v983_v62  ;;  %6415 = vmatpush3.bf16.msra.mxu0 %v6976_v37 }
  0x99   : > { %v3043_v19 = vrot.slane %v3041_v50, 5  ;;  %v3046_v40 = vshrl.u32 %v5590_v5, 16  ;;  %v3049_v41 = vshll.u32 %v5590_v5, 16  ;;  %v5818_v42 = vunpack.c.l.bf16 %v5926_v7  ;;  %6416 = vmatprep.subr.bf16.mxu0 %v6977_v63  ;;  %v6979_v43 = vld [vmem:[#allocation6 + $0x180] sm:$0xff]   ;;  %6194 = vmatprep.mubr.bf16.mxu1 %v986_v32  ;;  %v5592_v50 = vld [vmem:[#allocation2 + $0x68] sm:$0x1f] }
  0x9a   : > { %v989_v39 = vsel %vm959_vm0, %v987_v17, %v988_v15  ;;  %6383 = vmatmul.mubr.bf16.gmra.mrb[12].mxu0 %v2672_v22  ;;  %v3035_v53 = vor.u32 %v3034_v28, %v3031_v23  ;;  %557 = vst [vmem:[#allocation2 + $0xb8] ss:$-4 sps:$4 sm:$0xff] %v514_v38   ;;  %v5819_v54 = vunpack.c.h.bf16 %v5926_v7  ;;  %v3055_v56 = vshrl.u32 %v7618_v6, 16  ;;  %v5927_v34 = vld [vmem:[%s7446_s13 + $0x60] sm:$0xff]   ;;  %6225 = vmatpush3.bf16.msra.mxu1 %v6984_v18  ;;  %v6981_v23 = vld [vmem:[#allocation6 + $0x188] sm:$0xff]  }
  0x9b   : > { %v3044_v3 = vor.u32 %v3043_v19, %v3040_v14  ;;  %6418 = vmatprep.mubr.bf16.mxu0 %v7625_v36  ;;  %v3048_v37 = vrot.slane %v3046_v40, 4  ;;  %v3051_v59 = vrot.slane %v3049_v41, 5  ;;  %v423_v48 = vmul.f32 %v5818_v42, %v7460_v20  ;;  %6258 = vmatprep.subr.bf16.mxu1 %v7682_v35 }
  0x9c   : > { %v3058_v62 = vshll.u32 %v7618_v6, 16  ;;  %v3036_v1 = vsel %vm1474_vm1, %v3027_v31, %v3035_v53  ;;  %v424_v2 = vmul.f32 %v5819_v54, %v7460_v20  ;;  %v3057_v27 = vrot.slane %v3055_v56, 4  ;;  %6417 = vmatpush3.bf16.msra.mxu0 %v6977_v63 }
  0x9d   : > { %v3063_v22 = vshrl.u32 %v5591_v16, 16  ;;  %v7691_v55 = vld [vmem:[#allocation2 + $0xa8] sm:$0xf]  ;;  %v921_v29 = vld [vmem:[#allocation2 + $0xa0] sm:$0xf0]  ;;  %v3052_v5 = vor.u32 %v3051_v59, %v3048_v37  ;;  %v462_v36 = vadd.f32 %v7465_v21, %v423_v48  ;;  %v3066_v32 = vshll.u32 %v5591_v16, 16  ;;  %6450 = vmatprep.subr.bf16.mxu0 %v6979_v43 }
  0x9e   : > { %v3060_v7 = vrot.slane %v3058_v62, 5  ;;  %v990_v6 = vrot.slane %v921_v29, 4  ;;  %v991_v9 = vrot.slane %v7691_v55, 4  ;;  %v463_v13 = vadd.f32 %v7465_v21, %v424_v2  ;;  %v5928_v59 = vld [vmem:[%s7446_s13 + $0x68] sm:$0xff]   ;;  %v6983_v29 = vld [vmem:[#allocation6 + $0x190] sm:$0xff]  }
  0x9f   : > { %v3065_v0 = vrot.slane %v3063_v22, 4  ;;  %v3053_v63 = vsel %vm1474_vm1, %v3044_v3, %v3052_v5  ;;  %v3068_v17 = vrot.slane %v3066_v32, 5  ;;  %v5822_v15 = vunpack.c.l.bf16 %v5927_v34 }
  0xa0   : > { %v3061_v18 = vor.u32 %v3060_v7, %v3057_v27  ;;  %v992_v31 = vsel %vm959_vm0, %v990_v6, %v991_v9  ;;  %v483_v28 = vpack.c.bf16 %v463_v13, %v462_v36  ;;  %v5823_v16 = vunpack.c.h.bf16 %v5927_v34  ;;  %6195 = vmatmul.mubr.bf16.gmra.mrb[16].mxu1 %v989_v39  ;;  %v5929_v13 = vld [vmem:[%s7446_s13 + $0x70] sm:$0xff]  }
  0xa1   : > { %v3072_v38 = vshrl.u32 %v7629_v11, 16  ;;  %v7700_v14 = vld [vmem:[#allocation2 + $0xb8] sm:$0xf]  ;;  %v922_v19 = vld [vmem:[#allocation2 + $0xb0] sm:$0xf0]  ;;  %v3069_v40 = vor.u32 %v3068_v17, %v3065_v0  ;;  %v425_v41 = vmul.f32 %v5822_v15, %v7460_v20  ;;  %v3075_v42 = vshll.u32 %v7629_v11, 16  ;;  %6198 = vmatprep.mubr.bf16.mxu1 %v992_v31 }
  0xa2   : > { %v3080_v53 = vshrl.u32 %v5592_v50, 16  ;;  %6419 = vmatmul.mubr.bf16.vlgmr.msra.gmra.mrb[0].mxu0 %v7632_v12  ;;  %v993_v3 = vrot.slane %v922_v19, 4  ;;  %v994_v54 = vrot.slane %v7700_v14, 4  ;;  %v515_v56 = vrot.slane %v483_v28, 4  ;;  %v5593_v11 = vld [vmem:[#allocation2 + $0x78] sm:$0x1f] }
  0xa3   : > { %v426_v37 = vmul.f32 %v5823_v16, %v7460_v20  ;;  %6451 = vmatpush3.bf16.msra.mxu0 %v6979_v43  ;;  %6422 = vmatprep.mubr.bf16.mxu0 %v3036_v1  ;;  %v3070_v39 = vsel %vm1474_vm1, %v3061_v18, %v3069_v40  ;;  %v464_v48 = vadd.f32 %v7465_v21, %v425_v41  ;;  %v3074_v62 = vrot.slane %v3072_v38, 4  ;;  %v6985_v38 = vld [vmem:[#allocation6 + $0x198] sm:$0xff]  }
  0xa4   : > { %v3077_v2 = vrot.slane %v3075_v42, 5  ;;  %v995_v12 = vsel %vm959_vm0, %v993_v3, %v994_v54  ;;  %6452 = vmatprep.subr.bf16.mxu0 %v6981_v23  ;;  %559 = vst [vmem:[#allocation2 + $0xc8] ss:$-4 sps:$4 sm:$0xff] %v515_v56   ;;  %v3082_v22 = vrot.slane %v3080_v53, 4  ;;  %v3083_v34 = vshll.u32 %v5592_v50, 16 }
  0xa5   : > { %v465_v27 = vadd.f32 %v7465_v21, %v426_v37  ;;  %v5826_v43 = vunpack.c.l.bf16 %v5928_v59  ;;  %v5827_v1 = vunpack.c.h.bf16 %v5928_v59  ;;  %v3089_v36 = vshrl.u32 %v7645_v25, 16  ;;  %v574_v56 = vld [vmem:[#allocation2] sm:$0xf8] }
  0xa6   : > { %v3078_v5 = vor.u32 %v3077_v2, %v3074_v62  ;;  %v3085_v32 = vrot.slane %v3083_v34, 5  ;;  %v3092_v6 = vshll.u32 %v7645_v25, 16  ;;  %v3097_v9 = vshrl.u32 %v5593_v11, 16  ;;  %v5571_v34 = vld [vmem:[#allocation2 + $0x90] sm:$0xf0] }
  0xa7   : > { %v484_v7 = vpack.c.bf16 %v465_v27, %v464_v48  ;;  %6453 = vmatpush3.bf16.msra.mxu0 %v6981_v23  ;;  %v427_v0 = vmul.f32 %v5826_v43, %v7460_v20  ;;  %v428_v18 = vmul.f32 %v5827_v1, %v7460_v20  ;;  %v3091_v17 = vrot.slane %v3089_v36, 4  ;;  %v5594_v23 = vld [vmem:[#allocation2 + $0x88] sm:$0x1f] }
  0xa8   : > { %v3100_v15 = vshll.u32 %v5593_v11, 16  ;;  %v3086_v31 = vor.u32 %v3085_v32, %v3082_v22  ;;  %6454 = vmatprep.subr.bf16.mxu0 %v6983_v29  ;;  %v3094_v28 = vrot.slane %v3092_v6, 5  ;;  %v3099_v16 = vrot.slane %v3097_v9, 4  ;;  %6199 = vmatmul.mubr.bf16.gmra.mrb[20].mxu1 %v995_v12  ;;  %v5595_v6 = vld [vmem:[#allocation2 + $0x98] sm:$0x1f] }
  0xa9   : > { %v516_v50 = vrot.slane %v484_v7, 4  ;;  %v466_v19 = vadd.f32 %v7465_v21, %v427_v0  ;;  %v467_v25 = vadd.f32 %v7465_v21, %v428_v18  ;;  %v5830_v41 = vunpack.c.l.bf16 %v5929_v13  ;;  %v7732_v9 = vld [vmem:[%s7446_s13 + $0x78] sm:$0xff]  }
  0xaa   : > { %v3102_v40 = vrot.slane %v3100_v15, 5  ;;  %6423 = vmatmul.mubr.bf16.gmra.mrb[4].mxu0 %v3053_v63  ;;  %v3087_v42 = vsel %vm1474_vm1, %v3078_v5, %v3086_v31  ;;  %v3095_v53 = vor.u32 %v3094_v28, %v3091_v17  ;;  %v5831_v3 = vunpack.c.h.bf16 %v5929_v13  ;;  %v6987_v5 = vld [vmem:[#allocation6 + $0x1a0] sm:$0xff]   ;;  %v576_v17 = vld [vmem:[#allocation2 + $0x10] sm:$0xf8] }
  0xab   : > { %561 = vst [vmem:[#allocation2 + $0xd8] ss:$-4 sps:$4 sm:$0xff] %v516_v50   ;;  %v3106_v54 = vshrl.u32 %v7656_v45, 16  ;;  %v7721_v37 = vld [vmem:[#allocation2 + $0xc8] sm:$0xf]  ;;  %6426 = vmatprep.mubr.bf16.mxu0 %v3070_v39  ;;  %6455 = vmatpush3.bf16.msra.mxu0 %v6983_v29  ;;  %v485_v48 = vpack.c.bf16 %v467_v25, %v466_v19  ;;  %v429_v2 = vmul.f32 %v5830_v41, %v7460_v20  ;;  %v3109_v63 = vshll.u32 %v7656_v45, 16 }
  0xac   : > { %v923_v59 = vld [vmem:[#allocation2 + $0xc0] sm:$0xf0]  ;;  %v3103_v62 = vor.u32 %v3102_v40, %v3099_v16  ;;  %v997_v12 = vrot.slane %v7721_v37, 4  ;;  %v430_v27 = vmul.f32 %v5831_v3, %v7460_v20  ;;  %6456 = vmatprep.subr.bf16.mxu0 %v6985_v38  ;;  %v3114_v7 = vshrl.u32 %v5594_v23, 16  ;;  %v6989_v16 = vld [vmem:[#allocation6 + $0x1a8] sm:$0xff]  }
  0xad   : > { %v996_v11 = vrot.slane %v923_v59, 4  ;;  %v3108_v22 = vrot.slane %v3106_v54, 4  ;;  %v517_v43 = vrot.slane %v485_v48, 4  ;;  %v468_v29 = vadd.f32 %v7465_v21, %v429_v2  ;;  %v5572_v2 = vld [vmem:[#allocation2 + $0xa0] sm:$0xf0] }
  0xae   : > { %v3104_v39 = vsel %vm1474_vm1, %v3095_v53, %v3103_v62  ;;  %v3111_v1 = vrot.slane %v3109_v63, 5  ;;  %v469_v45 = vadd.f32 %v7465_v21, %v430_v27  ;;  %v3117_v32 = vshll.u32 %v5594_v23, 16  ;;  %v6991_v63 = vld [vmem:[#allocation6 + $0x1b0] sm:$0xff]  }
  0xaf   : > { %v998_v36 = vsel %vm959_vm0, %v996_v11, %v997_v12  ;;  %563 = vst [vmem:[#allocation2 + $0xe8] ss:$-4 sps:$4 sm:$0xff] %v517_v43   ;;  %6457 = vmatpush3.bf16.msra.mxu0 %v6985_v38  ;;  %v608_v13 = vshrl.u32 %v574_v56, 16  ;;  %v611_v0 = vshll.u32 %v574_v56, 16  ;;  %v3123_v18 = vshrl.u32 %v5571_v34, 16 }
  0xb0   : > { %6202 = vmatprep.mubr.bf16.mxu1 %v998_v36  ;;  %v3112_v20 = vor.u32 %v3111_v1, %v3108_v22  ;;  %v486_v15 = vpack.c.bf16 %v469_v45, %v468_v29  ;;  %v3116_v50 = vrot.slane %v3114_v7, 4  ;;  %v3119_v31 = vrot.slane %v3117_v32, 5  ;;  %6458 = vmatprep.subr.bf16.mxu0 %v6987_v5  ;;  %v578_v43 = vld [vmem:[#allocation2 + $0x20] sm:$0xf8]  ;;  %v7022_v7 = vld [vmem:[%s8250_s2] ss:$0 sm:$0xff] }
  0xb1   : > { %v3126_v28 = vshll.u32 %v5571_v34, 16  ;;  %v610_v25 = vrot.slane %v608_v13, 3  ;;  %v613_v40 = vrot.slane %v611_v0, 4  ;;  %v639_v41 = vor.u32 %v7547_v52, %v7545_v51 }
  0xb2   : > { %v7734_v21 = vld [vmem:[#allocation2 + $0xd8] sm:$0xf]  ;;  %v924_v19 = vld [vmem:[#allocation2 + $0xd0] sm:$0xf0]  ;;  %v5834_v38 = vunpack.c.l.bf16 %v7732_v9  ;;  %6427 = vmatmul.mubr.bf16.gmra.mrb[8].mxu0 %v3087_v42  ;;  %v518_v3 = vrot.slane %v486_v15, 4  ;;  %v3120_v54 = vor.u32 %v3119_v31, %v3116_v50  ;;  %v3125_v59 = vrot.slane %v3123_v18, 4 }
  0xb3   : > { %v999_v23 = vrot.slane %v924_v19, 4  ;;  %v1000_v53 = vrot.slane %v7734_v21, 4  ;;  %6430 = vmatprep.mubr.bf16.mxu0 %v3104_v39  ;;  %v614_v56 = vor.u32 %v613_v40, %v610_v25  ;;  %v3128_v48 = vrot.slane %v3126_v28, 5  ;;  %6459 = vmatpush3.bf16.msra.mxu0 %v6987_v5  ;;  %v5596_v5 = vld [vmem:[#allocation2 + $0xa8] sm:$0x1f] }
  0xb4   : > { %v3131_v62 = vshrl.u32 %v5595_v6, 16  ;;  %565 = vst [vmem:[#allocation2 + $0xf8] ss:$-4 sps:$4 sm:$0xff] %v518_v3   ;;  %v3121_v51 = vsel %vm1474_vm1, %v3112_v20, %v3120_v54  ;;  %v3134_v52 = vshll.u32 %v5595_v6, 16  ;;  %v625_v12 = vshrl.u32 %v576_v17, 16  ;;  %6460 = vmatprep.subr.bf16.mxu0 %v6989_v16 }
  0xb5   : > { %v1001_v11 = vsel %vm959_vm0, %v999_v23, %v1000_v53  ;;  %v7746_v42 = vsel %vm606_vm2, %v614_v56, %v622_v26  ;;  %v3129_v27 = vor.u32 %v3128_v48, %v3125_v59  ;;  %v628_v34 = vshll.u32 %v576_v17, 16  ;;  %v6993_v17 = vld [vmem:[#allocation6 + $0x1b8] sm:$0xff]   ;;  %v5573_v28 = vld [vmem:[#allocation2 + $0xb0] sm:$0xf0] }
  0xb6   : > { %6203 = vmatmul.mubr.bf16.gmra.mrb[24].mxu1 %v1001_v11  ;;  %v3133_v22 = vrot.slane %v3131_v62, 4  ;;  %v7748_v39 = vld [vmem:[#allocation2 + $0xe8] sm:$0xf]  ;;  %v925_v29 = vld [vmem:[#allocation2 + $0xe0] sm:$0xf0]  ;;  %v3136_v1 = vrot.slane %v3134_v52, 5  ;;  %v5835_v45 = vunpack.c.h.bf16 %v7732_v9  ;;  %v7754_v44 = vmul.f32 %v7022_v7, %v5834_v38 }
  0xb7   : > { %v627_v36 = vrot.slane %v625_v12, 3  ;;  %v1002_v49 = vrot.slane %v925_v29, 4  ;;  %v1003_v26 = vrot.slane %v7748_v39, 4  ;;  %v630_v32 = vrot.slane %v628_v34, 4  ;;  %6461 = vmatpush3.bf16.msra.mxu0 %v6989_v16  ;;  %v5597_v19 = vld [vmem:[#allocation2 + $0xb8] sm:$0x1f] }
  0xb8   : > { %v3140_v6 = vshrl.u32 %v5572_v2, 16  ;;  %v3137_v20 = vor.u32 %v3136_v1, %v3133_v22  ;;  %v3143_v13 = vshll.u32 %v5572_v2, 16  ;;  %v3148_v0 = vshrl.u32 %v5596_v5, 16  ;;  %6462 = vmatprep.subr.bf16.mxu0 %v6991_v63  ;;  %v7765_v52 = vld [vmem:[#allocation6 + $0x1c0] sm:$0xff]  }
  0xb9   : > { %v3151_v18 = vshll.u32 %v5596_v5, 16  ;;  %v1004_v9 = vsel %vm959_vm0, %v1002_v49, %v1003_v26  ;;  %v631_v15 = vor.u32 %v630_v32, %v627_v36  ;;  %v642_v31 = vshrl.u32 %v578_v43, 16  ;;  %v5574_v29 = vld [vmem:[#allocation2 + $0xc0] sm:$0xf0] }
  0xba   : > { %v3142_v50 = vrot.slane %v3140_v6, 4  ;;  %6206 = vmatprep.mubr.bf16.mxu1 %v1004_v9  ;;  %6431 = vmatmul.mubr.bf16.gmra.mrb[12].mxu0 %v3121_v51  ;;  %v3138_v25 = vsel %vm1474_vm1, %v3129_v27, %v3137_v20  ;;  %v3145_v40 = vrot.slane %v3143_v13, 5  ;;  %v3150_v38 = vrot.slane %v3148_v0, 4  ;;  %v580_v51 = vld [vmem:[#allocation2 + $0x30] sm:$0xf8] }
  0xbb   : > { %v3153_v16 = vrot.slane %v3151_v18, 5  ;;  %v7759_v23 = vld [vmem:[#allocation2 + $0xf8] sm:$0xf]  ;;  %v926_v53 = vld [vmem:[#allocation2 + $0xf0] sm:$0xf0]  ;;  %6434 = vmatprep.mubr.bf16.mxu0 %v3138_v25  ;;  %v640_v3 = vsel %vm606_vm2, %v631_v15, %v639_v41  ;;  %v644_v54 = vrot.slane %v642_v31, 3  ;;  %6463 = vmatpush3.bf16.msra.mxu0 %v6991_v63  ;;  %v7762_v59 = vmul.f32 %v7022_v7, %v5835_v45 }
  0xbc   : > { %v645_v56 = vshll.u32 %v578_v43, 16  ;;  %v1005_v48 = vrot.slane %v926_v53, 4  ;;  %v1006_v62 = vrot.slane %v7759_v23, 4  ;;  %v3146_v2 = vor.u32 %v3145_v40, %v3142_v50  ;;  %6464 = vmatprep.subr.bf16.mxu0 %v6993_v17  ;;  %v5598_v18 = vld [vmem:[#allocation2 + $0xc8] sm:$0x1f] }
  0xbd   : > { %v3154_v11 = vor.u32 %v3153_v16, %v3150_v38  ;;  %v650_v27 = vshrl.u32 %v7556_v61, 16  ;;  %v653_v22 = vshll.u32 %v7556_v61, 16  ;;  %v3157_v41 = vshrl.u32 %v5573_v28, 16  ;;  %v582_v31 = vld [vmem:[#allocation2 + $0x40] sm:$0xf8]  ;;  %v6988_v38 = vld [vmem:[#allocation6 + $0x88] sm:$0xff]  }
  0xbe   : > { %v647_v12 = vrot.slane %v645_v56, 4  ;;  %v1007_v34 = vsel %vm959_vm0, %v1005_v48, %v1006_v62  ;;  %v3160_v5 = vshll.u32 %v5573_v28, 16  ;;  %v3165_v43 = vshrl.u32 %v5597_v19, 16  ;;  %v5575_v56 = vld [vmem:[#allocation2 + $0xd0] sm:$0xf0] }
  0xbf   : > { %v3155_v63 = vsel %vm1474_vm1, %v3146_v2, %v3154_v11  ;;  %6207 = vmatmul.mubr.bf16.gmra.mrb[28].mxu1 %v1007_v34  ;;  %v652_v36 = vrot.slane %v650_v27, 3  ;;  %v655_v45 = vrot.slane %v653_v22, 4  ;;  %v3159_v7 = vrot.slane %v3157_v41, 4  ;;  %6465 = vmatpush3.bf16.msra.mxu0 %v6993_v17  ;;  %v5599_v22 = vld [vmem:[#allocation2 + $0xd8] sm:$0x1f] }
  0xc0   : > { %v648_v1 = vor.u32 %v647_v12, %v644_v54  ;;  %6226 = vmatprep.mubr.bf16.mxu1 %v7746_v42  ;;  %v3162_v49 = vrot.slane %v3160_v5, 5  ;;  %v3167_v26 = vrot.slane %v3165_v43, 4  ;;  %v3168_v32 = vshll.u32 %v5597_v19, 16  ;;  %6498 = vmatprep.subr.bf16.mxu0 %v7765_v52  ;;  %v584_v43 = vld [vmem:[#allocation2 + $0x50] sm:$0xf8] }
  0xc1   : > { %v659_v61 = vshrl.u32 %v580_v51, 16  ;;  %v656_v6 = vor.u32 %v655_v45, %v652_v36  ;;  %v662_v20 = vshll.u32 %v580_v51, 16  ;;  %v667_v13 = vshrl.u32 %v7573_v24, 16 }
  0xc2   : > { %v670_v0 = vshll.u32 %v7573_v24, 16  ;;  %6435 = vmatmul.mubr.bf16.gmra.mrb[16].mxu0 %v3155_v63  ;;  %v3163_v9 = vor.u32 %v3162_v49, %v3159_v7  ;;  %v3170_v15 = vrot.slane %v3168_v32, 5  ;;  %v3174_v17 = vshrl.u32 %v5574_v29, 16  ;;  %v6990_v32 = vld [vmem:[#allocation6 + $0x90] sm:$0xff]  }
  0xc3   : > { %v661_v50 = vrot.slane %v659_v61, 3  ;;  %v657_v42 = vsel %vm606_vm2, %v648_v1, %v656_v6  ;;  %v664_v28 = vrot.slane %v662_v20, 4  ;;  %v669_v19 = vrot.slane %v667_v13, 3 }
  0xc4   : > { %v672_v25 = vrot.slane %v670_v0, 4  ;;  %v3171_v40 = vor.u32 %v3170_v15, %v3167_v26  ;;  %v3176_v16 = vrot.slane %v3174_v17, 4  ;;  %v3177_v53 = vshll.u32 %v5574_v29, 16  ;;  %v5576_v0 = vld [vmem:[#allocation2 + $0xe0] sm:$0xf0] }
  0xc5   : > { %v3182_v54 = vshrl.u32 %v5598_v18, 16  ;;  %v665_v48 = vor.u32 %v664_v28, %v661_v50  ;;  %v3185_v62 = vshll.u32 %v5598_v18, 16  ;;  %v676_v2 = vshrl.u32 %v582_v31, 16 }
  0xc6   : > { %v673_v24 = vor.u32 %v672_v25, %v669_v19  ;;  %v3172_v11 = vsel %vm1474_vm1, %v3163_v9, %v3171_v40  ;;  %v3179_v51 = vrot.slane %v3177_v53, 5  ;;  %v679_v27 = vshll.u32 %v582_v31, 16  ;;  %v6992_v53 = vld [vmem:[#allocation6 + $0x98] sm:$0xff]  }
  0xc7   : > { %v3184_v12 = vrot.slane %v3182_v54, 4  ;;  %6227 = vmatmul.mubr.bf16.vlgmr.msra.gmra.mrb[0].mxu1 %v640_v3  ;;  %6438 = vmatprep.mubr.bf16.mxu0 %v3172_v11  ;;  %v3187_v34 = vrot.slane %v3185_v62, 5  ;;  %v678_v63 = vrot.slane %v676_v2, 3  ;;  %v684_v5 = vshrl.u32 %v7586_v46, 16 }
  0xc8   : > { %v674_v41 = vsel %vm606_vm2, %v665_v48, %v673_v24  ;;  %6259 = vmatpush3.bf16.msra.mxu1 %v7682_v35  ;;  %6230 = vmatprep.mubr.bf16.mxu1 %v657_v42  ;;  %v3180_v29 = vor.u32 %v3179_v51, %v3176_v16  ;;  %v681_v1 = vrot.slane %v679_v27, 4  ;;  %v687_v36 = vshll.u32 %v7586_v46, 16  ;;  %v5600_v42 = vld [vmem:[#allocation2 + $0xe8] sm:$0x1f]  ;;  %v586_v16 = vld [vmem:[#allocation2 + $0x60] sm:$0xf8] }
  0xc9   : > { %v3191_v45 = vshrl.u32 %v5575_v56, 16  ;;  %6260 = vmatprep.subr.bf16.mxu1 %v6988_v38  ;;  %v3188_v7 = vor.u32 %v3187_v34, %v3184_v12  ;;  %v686_v49 = vrot.slane %v684_v5, 3  ;;  %v3194_v3 = vshll.u32 %v5575_v56, 16 }
  0xca   : > { %v3199_v26 = vshrl.u32 %v5599_v22, 16  ;;  %v682_v61 = vor.u32 %v681_v1, %v678_v63  ;;  %v689_v6 = vrot.slane %v687_v36, 4  ;;  %v3202_v13 = vshll.u32 %v5599_v22, 16  ;;  %v5577_v22 = vld [vmem:[#allocation2 + $0xf0] sm:$0xf0] }
  0xcb   : > { %v3193_v20 = vrot.slane %v3191_v45, 4  ;;  %v3189_v18 = vsel %vm1474_vm1, %v3180_v29, %v3188_v7  ;;  %v3196_v35 = vrot.slane %v3194_v3, 5  ;;  %v693_v15 = vshrl.u32 %v584_v43, 16  ;;  %v6994_v29 = vld [vmem:[#allocation6 + $0xa0] sm:$0xff]   ;;  %v5601_v7 = vld [vmem:[#allocation2 + $0xf8] sm:$0x1f] }
  0xcc   : > { %v3201_v9 = vrot.slane %v3199_v26, 4  ;;  %6439 = vmatmul.mubr.bf16.gmra.mrb[20].mxu0 %v3189_v18  ;;  %6261 = vmatpush3.bf16.msra.mxu1 %v6988_v38  ;;  %v690_v46 = vor.u32 %v689_v6, %v686_v49  ;;  %v3204_v50 = vrot.slane %v3202_v13, 5  ;;  %v696_v17 = vshll.u32 %v584_v43, 16 }
  0xcd   : > { %v701_v31 = vshrl.u32 %v7620_v47, 16  ;;  %v3197_v28 = vor.u32 %v3196_v35, %v3193_v20  ;;  %v695_v19 = vrot.slane %v693_v15, 3  ;;  %v704_v25 = vshll.u32 %v7620_v47, 16  ;;  %6262 = vmatprep.subr.bf16.mxu1 %v6990_v32 }
  0xce   : > { %v3208_v40 = vshrl.u32 %v5576_v0, 16  ;;  %v691_v54 = vsel %vm606_vm2, %v682_v61, %v690_v46  ;;  %v3205_v56 = vor.u32 %v3204_v50, %v3201_v9  ;;  %v698_v48 = vrot.slane %v696_v17, 4  ;;  %v588_v61 = vld [vmem:[#allocation2 + $0x70] sm:$0xf8]  ;;  %v6996_v46 = vld [vmem:[#allocation6 + $0xa8] sm:$0xff]  }
  0xcf   : > { %v703_v24 = vrot.slane %v701_v31, 3  ;;  %6231 = vmatmul.mubr.bf16.gmra.mrb[4].mxu1 %v674_v41  ;;  %v706_v38 = vrot.slane %v704_v25, 4  ;;  %v3211_v2 = vshll.u32 %v5576_v0, 16  ;;  %v3216_v11 = vshrl.u32 %v5600_v42, 16 }
  0xd0   : > { %v3210_v62 = vrot.slane %v3208_v40, 4  ;;  %6234 = vmatprep.mubr.bf16.mxu1 %v691_v54  ;;  %v3206_v51 = vsel %vm1474_vm1, %v3197_v28, %v3205_v56  ;;  %v699_v12 = vor.u32 %v698_v48, %v695_v19  ;;  %v3219_v27 = vshll.u32 %v5600_v42, 16  ;;  %6263 = vmatpush3.bf16.msra.mxu1 %v6990_v32  ;;  %v590_v40 = vld [vmem:[#allocation2 + $0x80] sm:$0xf8] }
  0xd1   : > { %v710_v47 = vshrl.u32 %v586_v16, 16  ;;  %6442 = vmatprep.mubr.bf16.mxu0 %v3206_v51  ;;  %v707_v34 = vor.u32 %v706_v38, %v703_v24  ;;  %v3213_v63 = vrot.slane %v3211_v2, 5  ;;  %v3218_v5 = vrot.slane %v3216_v11, 4  ;;  %6264 = vmatprep.subr.bf16.mxu1 %v6992_v53  ;;  %v6998_v11 = vld [vmem:[#allocation6 + $0xb0] sm:$0xff]  }
  0xd2   : > { %v713_v43 = vshll.u32 %v586_v16, 16  ;;  %v3221_v41 = vrot.slane %v3219_v27, 5  ;;  %v718_v36 = vshrl.u32 %v7640_v60, 16  ;;  %v721_v45 = vshll.u32 %v7640_v60, 16 }
  0xd3   : > { %v712_v1 = vrot.slane %v710_v47, 3  ;;  %v708_v49 = vsel %vm606_vm2, %v699_v12, %v707_v34  ;;  %v3214_v3 = vor.u32 %v3213_v63, %v3210_v62  ;;  %v3225_v32 = vshrl.u32 %v5577_v22, 16  ;;  %v7023_v62 = vld [vmem:[%s8251_s3] ss:$0 sm:$0xff] }
  0xd4   : > { %v715_v26 = vrot.slane %v713_v43, 4  ;;  %v3222_v6 = vor.u32 %v3221_v41, %v3218_v5  ;;  %v720_v20 = vrot.slane %v718_v36, 3  ;;  %v723_v13 = vrot.slane %v721_v45, 4  ;;  %6265 = vmatpush3.bf16.msra.mxu1 %v6992_v53  ;;  %v5612_v43 = vld [vmem:[#allocation2 + $0x28] sm:$0xf]  ;;  %v7000_v36 = vld [vmem:[#allocation6 + $0xb8] sm:$0xff]  }
  0xd5   : > { %v3228_v0 = vshll.u32 %v5577_v22, 16  ;;  %v3227_v35 = vrot.slane %v3225_v32, 4  ;;  %v3233_v9 = vshrl.u32 %v5601_v7, 16  ;;  %v3236_v15 = vshll.u32 %v5601_v7, 16  ;;  %6266 = vmatprep.subr.bf16.mxu1 %v6994_v29  ;;  %v5611_v22 = vld [vmem:[#allocation2 + $0x20] sm:$0xf8] }
  0xd6   : > { %v716_v18 = vor.u32 %v715_v26, %v712_v1  ;;  %v3223_v60 = vsel %vm1474_vm1, %v3214_v3, %v3222_v6  ;;  %v724_v50 = vor.u32 %v723_v13, %v720_v20  ;;  %v727_v31 = vshrl.u32 %v588_v61, 16  ;;  %v592_v3 = vld [vmem:[#allocation2 + $0x90] sm:$0xf8] }
  0xd7   : > { %v3230_v17 = vrot.slane %v3228_v0, 5  ;;  %6235 = vmatmul.mubr.bf16.gmra.mrb[8].mxu1 %v708_v49  ;;  %6443 = vmatmul.mubr.bf16.gmra.mrb[24].mxu0 %v3223_v60  ;;  %v3235_v42 = vrot.slane %v3233_v9, 4  ;;  %v3238_v28 = vrot.slane %v3236_v15, 5  ;;  %v730_v19 = vshll.u32 %v588_v61, 16  ;;  %v5614_v60 = vld [vmem:[#allocation2 + $0x38] sm:$0xf] }
  0xd8   : > { %v735_v25 = vshrl.u32 %v7650_v33, 16  ;;  %v725_v16 = vsel %vm606_vm2, %v716_v18, %v724_v50  ;;  %v729_v54 = vrot.slane %v727_v31, 3  ;;  %v738_v56 = vshll.u32 %v7650_v33, 16  ;;  %6267 = vmatpush3.bf16.msra.mxu1 %v6994_v29  ;;  %v5613_v18 = vld [vmem:[#allocation2 + $0x30] sm:$0xf8] }
  0xd9   : > { %v3231_v53 = vor.u32 %v3230_v17, %v3227_v35  ;;  %6238 = vmatprep.mubr.bf16.mxu1 %v725_v16  ;;  %v3239_v48 = vor.u32 %v3238_v28, %v3235_v42  ;;  %v732_v24 = vrot.slane %v730_v19, 4  ;;  %v470_v2 = vadd.f32 %v7023_v62, %v7754_v44  ;;  %6268 = vmatprep.subr.bf16.mxu1 %v6996_v46  ;;  %v594_v28 = vld [vmem:[#allocation2 + $0xa0] sm:$0xf8] }
  0xda   : > { %v737_v38 = vrot.slane %v735_v25, 3  ;;  %v740_v51 = vrot.slane %v738_v56, 4  ;;  %v471_v12 = vadd.f32 %v7023_v62, %v7762_v59  ;;  %v744_v27 = vshrl.u32 %v590_v40, 16  ;;  %v7805_v19 = vld [vmem:[#allocation6 + $0xc0] sm:$0xff]  }
  0xdb   : > { %v747_v47 = vshll.u32 %v590_v40, 16  ;;  %v3240_v33 = vsel %vm1474_vm1, %v3231_v53, %v3239_v48  ;;  %v733_v34 = vor.u32 %v732_v24, %v729_v54  ;;  %v752_v63 = vshrl.u32 %v7661_v30, 16 }
  0xdc   : > { %v755_v5 = vshll.u32 %v7661_v30, 16  ;;  %6446 = vmatprep.mubr.bf16.mxu0 %v3240_v33  ;;  %v741_v29 = vor.u32 %v740_v51, %v737_v38  ;;  %v487_v41 = vpack.c.bf16 %v471_v12, %v470_v2  ;;  %v746_v44 = vrot.slane %v744_v27, 3  ;;  %6269 = vmatpush3.bf16.msra.mxu1 %v6996_v46  ;;  %v5615_v51 = vld [vmem:[#allocation2 + $0x40] sm:$0xf8] }
  0xdd   : > { %v749_v1 = vrot.slane %v747_v47, 4  ;;  %v754_v45 = vrot.slane %v752_v63, 3  ;;  %v3568_v7 = vshrl.u32 %v5611_v22, 16  ;;  %v3571_v49 = vshll.u32 %v5611_v22, 16  ;;  %6270 = vmatprep.subr.bf16.mxu1 %v6998_v11 }
  0xde   : > { %v757_v59 = vrot.slane %v755_v5, 4  ;;  %v742_v26 = vsel %vm606_vm2, %v733_v34, %v741_v29  ;;  %v519_v32 = vrot.slane %v487_v41, 4  ;;  %v3576_v6 = vshrl.u32 %v5612_v43, 16 }
  0xdf   : > { %v750_v61 = vor.u32 %v749_v1, %v746_v44  ;;  %6239 = vmatmul.mubr.bf16.gmra.mrb[12].mxu1 %v742_v26  ;;  %v3570_v20 = vrot.slane %v3568_v7, 3  ;;  %v3573_v13 = vrot.slane %v3571_v49, 4  ;;  %v3579_v0 = vshll.u32 %v5612_v43, 16 }
  0xe0   : > { %v758_v30 = vor.u32 %v757_v59, %v754_v45  ;;  %567 = vst [vmem:[#allocation2 + $0x108] ss:$-4 sps:$4 sm:$0xff] %v519_v32   ;;  %v3578_v35 = vrot.slane %v3576_v6, 3  ;;  %v761_v9 = vshrl.u32 %v592_v3, 16  ;;  %v764_v15 = vshll.u32 %v592_v3, 16  ;;  %6271 = vmatpush3.bf16.msra.mxu1 %v6998_v11 }
  0xe1   : > { %v769_v46 = vshrl.u32 %v7674_v8, 16  ;;  %v3574_v17 = vor.u32 %v3573_v13, %v3570_v20  ;;  %v3581_v31 = vrot.slane %v3579_v0, 4  ;;  %v772_v42 = vshll.u32 %v7674_v8, 16  ;;  %6272 = vmatprep.subr.bf16.mxu1 %v7000_v36  ;;  %v596_v0 = vld [vmem:[#allocation2 + $0xb0] sm:$0xf8] }
  0xe2   : > { %v759_v50 = vsel %vm606_vm2, %v750_v61, %v758_v30  ;;  %v763_v25 = vrot.slane %v761_v9, 3  ;;  %v766_v40 = vrot.slane %v764_v15, 4  ;;  %v3585_v53 = vshrl.u32 %v5613_v18, 16  ;;  %v7812_v61 = vld [vmem:[#allocation2 + $0x48] sm:$0xf] }
  0xe3   : > { %6242 = vmatprep.mubr.bf16.mxu1 %v759_v50  ;;  %v771_v16 = vrot.slane %v769_v46, 3  ;;  %v3582_v54 = vor.u32 %v3581_v31, %v3578_v35  ;;  %v774_v56 = vrot.slane %v772_v42, 4  ;;  %v3588_v48 = vshll.u32 %v5613_v18, 16  ;;  %v5617_v15 = vld [vmem:[#allocation2 + $0x50] sm:$0xf8] }
  0xe4   : > { %v3593_v24 = vshrl.u32 %v5614_v60, 16  ;;  %v767_v38 = vor.u32 %v766_v40, %v763_v25  ;;  %v3587_v62 = vrot.slane %v3585_v53, 3  ;;  %v3596_v2 = vshll.u32 %v5614_v60, 16  ;;  %6273 = vmatpush3.bf16.msra.mxu1 %v7000_v36  ;;  %v7816_v31 = vld [vmem:[#allocation2 + $0x58] sm:$0xf] }
  0xe5   : > { %v778_v11 = vshrl.u32 %v594_v28, 16  ;;  %v3583_v8 = vsel %vm606_vm2, %v3574_v17, %v3582_v54  ;;  %v775_v12 = vor.u32 %v774_v56, %v771_v16  ;;  %v3590_v27 = vrot.slane %v3588_v48, 4  ;;  %6306 = vmatprep.subr.bf16.mxu1 %v7805_v19  ;;  %v598_v16 = vld [vmem:[#allocation2 + $0xc0] sm:$0xf8] }
  0xe6   : > { %v3595_v47 = vrot.slane %v3593_v24, 3  ;;  %v3598_v22 = vrot.slane %v3596_v2, 4  ;;  %v781_v34 = vshll.u32 %v594_v28, 16  ;;  %v786_v63 = vshrl.u32 %v7691_v55, 16 }
  0xe7   : > { %v780_v33 = vrot.slane %v778_v11, 3  ;;  %v5578_v5 = vld [vmem:[#allocation2 + $0x100] sm:$0xf0]  ;;  %v5602_v43 = vld [vmem:[#allocation2 + $0x108] sm:$0x1f]  ;;  %v776_v29 = vsel %vm606_vm2, %v767_v38, %v775_v12  ;;  %v3591_v41 = vor.u32 %v3590_v27, %v3587_v62  ;;  %v789_v44 = vshll.u32 %v7691_v55, 16 }
  0xe8   : > { %v3602_v1 = vshrl.u32 %v5615_v51, 16  ;;  %v3242_v36 = vshrl.u32 %v5578_v5, 16  ;;  %v3245_v45 = vshll.u32 %v5578_v5, 16  ;;  %v3250_v59 = vshrl.u32 %v5602_v43, 16  ;;  %6243 = vmatmul.mubr.bf16.gmra.mrb[16].mxu1 %v776_v29 }
  0xe9   : > { %v3253_v7 = vshll.u32 %v5602_v43, 16  ;;  %v3599_v49 = vor.u32 %v3598_v22, %v3595_v47  ;;  %v783_v3 = vrot.slane %v781_v34, 4  ;;  %v788_v26 = vrot.slane %v786_v63, 3  ;;  %v5619_v63 = vld [vmem:[#allocation2 + $0x60] sm:$0xf8] }
  0xea   : > { %v791_v32 = vrot.slane %v789_v44, 4  ;;  %v3244_v6 = vrot.slane %v3242_v36, 4  ;;  %v3247_v30 = vrot.slane %v3245_v45, 5  ;;  %v3252_v20 = vrot.slane %v3250_v59, 4  ;;  %v7825_v44 = vld [vmem:[#allocation2 + $0x68] sm:$0xf] }
  0xeb   : > { %v3255_v13 = vrot.slane %v3253_v7, 5  ;;  %v3600_v18 = vsel %vm606_vm2, %v3591_v41, %v3599_v49  ;;  %v784_v55 = vor.u32 %v783_v3, %v780_v33  ;;  %v3604_v9 = vrot.slane %v3602_v1, 3  ;;  %v600_v3 = vld [vmem:[#allocation2 + $0xd0] sm:$0xf8] }
  0xec   : > { %v792_v35 = vor.u32 %v791_v32, %v788_v26  ;;  %v3248_v46 = vor.u32 %v3247_v30, %v3244_v6  ;;  %v3605_v50 = vshll.u32 %v5615_v51, 16  ;;  %v3610_v17 = vshrl.u32 %v7812_v61, 16  ;;  %v6997_v32 = vld [vmem:[#allocation6 + $0x1c8] sm:$0xff]  }
  0xed   : > { %v3256_v60 = vor.u32 %v3255_v13, %v3252_v20  ;;  %v3613_v28 = vshll.u32 %v7812_v61, 16  ;;  %v795_v25 = vshrl.u32 %v596_v0, 16  ;;  %v798_v40 = vshll.u32 %v596_v0, 16  ;;  %v5621_v13 = vld [vmem:[#allocation2 + $0x70] sm:$0xf8] }
  0xee   : > { %v793_v42 = vsel %vm606_vm2, %v784_v55, %v792_v35  ;;  %v3607_v54 = vrot.slane %v3605_v50, 4  ;;  %v3612_v56 = vrot.slane %v3610_v17, 3  ;;  %v803_v48 = vshrl.u32 %v7700_v14, 16 }
  0xef   : > { %v3257_v53 = vsel %vm1474_vm1, %v3248_v46, %v3256_v60  ;;  %6246 = vmatprep.mubr.bf16.mxu1 %v793_v42  ;;  %v3615_v24 = vrot.slane %v3613_v28, 4  ;;  %v797_v38 = vrot.slane %v795_v25, 3  ;;  %v800_v62 = vrot.slane %v798_v40, 4 }
  0xf0   : > { %6447 = vmatmul.mubr.bf16.gmra.mrb[28].mxu0 %v3257_v53  ;;  %v806_v2 = vshll.u32 %v7700_v14, 16  ;;  %v3608_v11 = vor.u32 %v3607_v54, %v3604_v9  ;;  %v805_v51 = vrot.slane %v803_v48, 3  ;;  %v3619_v12 = vshrl.u32 %v5617_v15, 16  ;;  %v6999_v54 = vld [vmem:[#allocation6 + $0x1d0] sm:$0xff]  }
  0xf1   : > { %6466 = vmatprep.mubr.bf16.mxu0 %v3583_v8  ;;  %v3622_v27 = vshll.u32 %v5617_v15, 16  ;;  %v3616_v47 = vor.u32 %v3615_v24, %v3612_v56  ;;  %v801_v22 = vor.u32 %v800_v62, %v797_v38  ;;  %v3627_v34 = vshrl.u32 %v7816_v31, 16  ;;  %v602_v38 = vld [vmem:[#allocation2 + $0xe0] sm:$0xf8] }
  0xf2   : > { %v808_v33 = vrot.slane %v806_v2, 4  ;;  %v3621_v5 = vrot.slane %v3619_v12, 3  ;;  %v3630_v29 = vshll.u32 %v7816_v31, 16  ;;  %v812_v41 = vshrl.u32 %v598_v16, 16  ;;  %v7001_v12 = vld [vmem:[#allocation6 + $0x1d8] sm:$0xff]  }
  0xf3   : > { %v3624_v43 = vrot.slane %v3622_v27, 4  ;;  %v3617_v14 = vsel %vm606_vm2, %v3608_v11, %v3616_v47  ;;  %v3629_v1 = vrot.slane %v3627_v34, 3  ;;  %v815_v36 = vshll.u32 %v598_v16, 16  ;;  %v5623_v34 = vld [vmem:[#allocation2 + $0x80] sm:$0xf8] }
  0xf4   : > { %v809_v8 = vor.u32 %v808_v33, %v805_v51  ;;  %v3632_v59 = vrot.slane %v3630_v29, 4  ;;  %v814_v7 = vrot.slane %v812_v41, 3  ;;  %v820_v49 = vshrl.u32 %v7721_v37, 16 }
  0xf5   : > { %v3625_v45 = vor.u32 %v3624_v43, %v3621_v5  ;;  %v817_v6 = vrot.slane %v815_v36, 4  ;;  %v823_v30 = vshll.u32 %v7721_v37, 16  ;;  %v3636_v20 = vshrl.u32 %v5619_v63, 16 }
  0xf6   : > { %v810_v26 = vsel %vm606_vm2, %v801_v22, %v809_v8  ;;  %v3633_v0 = vor.u32 %v3632_v59, %v3629_v1  ;;  %v822_v55 = vrot.slane %v820_v49, 3  ;;  %v3639_v35 = vshll.u32 %v5619_v63, 16 }
  0xf7   : > { %6247 = vmatmul.mubr.bf16.gmra.mrb[20].mxu1 %v810_v26  ;;  %v3644_v9 = vshrl.u32 %v7825_v44, 16  ;;  %v818_v15 = vor.u32 %v817_v6, %v814_v7  ;;  %v825_v46 = vrot.slane %v823_v30, 4  ;;  %v3638_v60 = vrot.slane %v3636_v20, 3  ;;  %v7845_v7 = vld [vmem:[#allocation2 + $0x88] sm:$0xf] }
  0xf8   : > { %6467 = vmatmul.mubr.bf16.vlgmr.msra.gmra.mrb[0].mxu0 %v3600_v18  ;;  %v3647_v50 = vshll.u32 %v7825_v44, 16  ;;  %v3634_v17 = vsel %vm606_vm2, %v3625_v45, %v3633_v0  ;;  %v3641_v37 = vrot.slane %v3639_v35, 4  ;;  %v829_v28 = vshrl.u32 %v600_v3, 16  ;;  %v7836_v18 = vld [vmem:[#allocation2 + $0x78] sm:$0xf] }
  0xf9   : > { %6499 = vmatpush3.bf16.msra.mxu0 %v7765_v52  ;;  %6470 = vmatprep.mubr.bf16.mxu0 %v3617_v14  ;;  %v3646_v42 = vrot.slane %v3644_v9, 3  ;;  %v826_v25 = vor.u32 %v825_v46, %v822_v55  ;;  %v832_v16 = vshll.u32 %v600_v3, 16  ;;  %v837_v53 = vshrl.u32 %v7734_v21, 16  ;;  %v604_v6 = vld [vmem:[#allocation2 + $0xf0] sm:$0xf8]  ;;  %v7003_v55 = vld [vmem:[#allocation6 + $0x1e0] sm:$0xff]  }
  0xfa   : > { %6500 = vmatprep.subr.bf16.mxu0 %v6997_v32  ;;  %v3649_v40 = vrot.slane %v3647_v50, 4  ;;  %v3642_v56 = vor.u32 %v3641_v37, %v3638_v60  ;;  %v831_v48 = vrot.slane %v829_v28, 3  ;;  %v840_v24 = vshll.u32 %v7734_v21, 16  ;;  %v5625_v46 = vld [vmem:[#allocation2 + $0x90] sm:$0xf8] }
  0xfb   : > { %v3653_v52 = vshrl.u32 %v5621_v13, 16  ;;  %v827_v62 = vsel %vm606_vm2, %v818_v15, %v826_v25  ;;  %v834_v11 = vrot.slane %v832_v16, 4  ;;  %v839_v51 = vrot.slane %v837_v53, 3  ;;  %v7852_v16 = vld [vmem:[#allocation2 + $0x98] sm:$0xf] }
  0xfc   : > { %v3650_v2 = vor.u32 %v3649_v40, %v3646_v42  ;;  %6250 = vmatprep.mubr.bf16.mxu1 %v827_v62  ;;  %v842_v27 = vrot.slane %v840_v24, 4  ;;  %v3656_v22 = vshll.u32 %v5621_v13, 16  ;;  %v3661_v33 = vshrl.u32 %v7836_v18, 16  ;;  %v1458_v24 = vld [vmem:[#allocation2 + $0x8] sm:$0x1f] }
  0xfd   : > { %6501 = vmatpush3.bf16.msra.mxu0 %v6997_v32  ;;  %v3655_v47 = vrot.slane %v3653_v52, 3  ;;  %v835_v5 = vor.u32 %v834_v11, %v831_v48  ;;  %v3664_v21 = vshll.u32 %v7836_v18, 16  ;;  %v846_v43 = vshrl.u32 %v602_v38, 16  ;;  %v7005_v52 = vld [vmem:[#allocation6 + $0x1e8] sm:$0xff]  }
  0xfe   : > { %v3651_v63 = vsel %vm606_vm2, %v3642_v56, %v3650_v2  ;;  %6502 = vmatprep.subr.bf16.mxu0 %v6999_v54  ;;  %v843_v29 = vor.u32 %v842_v27, %v839_v51  ;;  %v3658_v41 = vrot.slane %v3656_v22, 4  ;;  %v3663_v14 = vrot.slane %v3661_v33, 3 }
  0xff   : > { %v849_v8 = vshll.u32 %v602_v38, 16  ;;  %v3666_v1 = vrot.slane %v3664_v21, 4  ;;  %v848_v36 = vrot.slane %v846_v43, 3  ;;  %v854_v45 = vshrl.u32 %v7748_v39, 16 }
 0x100   : > { %6471 = vmatmul.mubr.bf16.gmra.mrb[4].mxu0 %v3634_v17  ;;  %v857_v59 = vshll.u32 %v7748_v39, 16  ;;  %v844_v49 = vsel %vm606_vm2, %v835_v5, %v843_v29  ;;  %v3659_v3 = vor.u32 %v3658_v41, %v3655_v47  ;;  %v3670_v32 = vshrl.u32 %v5623_v34, 16  ;;  %v5627_v5 = vld [vmem:[#allocation2 + $0xa0] sm:$0xf8] }
 0x101   : > { %6474 = vmatprep.mubr.bf16.mxu0 %v3651_v63  ;;  %6503 = vmatpush3.bf16.msra.mxu0 %v6999_v54  ;;  %v851_v26 = vrot.slane %v849_v8, 4  ;;  %v3667_v30 = vor.u32 %v3666_v1, %v3663_v14  ;;  %v856_v20 = vrot.slane %v854_v45, 3  ;;  %v3673_v0 = vshll.u32 %v5623_v34, 16  ;;  %v7007_v14 = vld [vmem:[#allocation6 + $0x1f0] sm:$0xff]  }
 0x102   : > { %6251 = vmatmul.mubr.bf16.gmra.mrb[24].mxu1 %v844_v49  ;;  %v859_v13 = vrot.slane %v857_v59, 4  ;;  %6504 = vmatprep.subr.bf16.mxu0 %v7001_v12  ;;  %v3672_v9 = vrot.slane %v3670_v32, 3  ;;  %v3678_v39 = vshrl.u32 %v7845_v7, 16  ;;  %v3681_v15 = vshll.u32 %v7845_v7, 16  ;;  %v7859_v59 = vld [vmem:[#allocation2 + $0xa8] sm:$0xf] }
 0x103   : > { %v852_v35 = vor.u32 %v851_v26, %v848_v36  ;;  %v3668_v60 = vsel %vm606_vm2, %v3659_v3, %v3667_v30  ;;  %v3675_v17 = vrot.slane %v3673_v0, 4  ;;  %v863_v37 = vshrl.u32 %v604_v6, 16  ;;  %v5629_v30 = vld [vmem:[#allocation2 + $0xb0] sm:$0xf8] }
 0x104   : > { %v860_v50 = vor.u32 %v859_v13, %v856_v20  ;;  %v3680_v42 = vrot.slane %v3678_v39, 3  ;;  %v3683_v28 = vrot.slane %v3681_v15, 4  ;;  %v866_v25 = vshll.u32 %v604_v6, 16  ;;  %v1459_v6 = vld [vmem:[#allocation2 + $0x18] sm:$0x1f] }
 0x105   : > { %v871_v40 = vshrl.u32 %v7759_v23, 16  ;;  %6505 = vmatpush3.bf16.msra.mxu0 %v7001_v12  ;;  %v3676_v54 = vor.u32 %v3675_v17, %v3672_v9  ;;  %v865_v56 = vrot.slane %v863_v37, 3  ;;  %v874_v48 = vshll.u32 %v7759_v23, 16  ;;  %v7024_v23 = vld [vmem:[#allocation2] sm:$0xf0] }
 0x106   : > { %v861_v53 = vsel %vm606_vm2, %v852_v35, %v860_v50  ;;  %6506 = vmatprep.subr.bf16.mxu0 %v7003_v55  ;;  %v3684_v38 = vor.u32 %v3683_v28, %v3680_v42  ;;  %v868_v62 = vrot.slane %v866_v25, 4  ;;  %v3687_v11 = vshrl.u32 %v5625_v46, 16  ;;  %v7867_v42 = vld [vmem:[#allocation2 + $0xb8] sm:$0xf] }
 0x107   : > { %6254 = vmatprep.mubr.bf16.mxu1 %v861_v53  ;;  %v873_v2 = vrot.slane %v871_v40, 3  ;;  %v876_v51 = vrot.slane %v874_v48, 4  ;;  %v3690_v27 = vshll.u32 %v5625_v46, 16  ;;  %v3695_v47 = vshrl.u32 %v7852_v16, 16  ;;  %v7009_v46 = vld [vmem:[#allocation6 + $0x1f8] sm:$0xff]  }
 0x108   : > { %6475 = vmatmul.mubr.bf16.gmra.mrb[8].mxu0 %v3668_v60  ;;  %v3698_v12 = vshll.u32 %v7852_v16, 16  ;;  %v3685_v22 = vsel %vm606_vm2, %v3676_v54, %v3684_v38  ;;  %v869_v33 = vor.u32 %v868_v62, %v865_v56  ;;  %v3689_v34 = vrot.slane %v3687_v11, 3  ;;  %v7871_v11 = vld [vmem:[#allocation6 + $0x200] sm:$0xff]  }
 0x109   : > { %v1476_v63 = vshrl.u32 %v7024_v23, 16  ;;  %6507 = vmatpush3.bf16.msra.mxu0 %v7003_v55  ;;  %6478 = vmatprep.mubr.bf16.mxu0 %v3685_v22  ;;  %v877_v21 = vor.u32 %v876_v51, %v873_v2  ;;  %v3692_v43 = vrot.slane %v3690_v27, 4  ;;  %v3697_v29 = vrot.slane %v3695_v47, 3 }
 0x10a   : > { %v3700_v41 = vrot.slane %v3698_v12, 4  ;;  %6508 = vmatprep.subr.bf16.mxu0 %v7005_v52  ;;  %v1479_v1 = vshll.u32 %v7024_v23, 16  ;;  %v1484_v36 = vshrl.u32 %v1458_v24, 16  ;;  %v1487_v45 = vshll.u32 %v1458_v24, 16  ;;  %v7025_v12 = vld [vmem:[#allocation2 + $0x20] sm:$0xf0] }
 0x10b   : > { %v1478_v8 = vrot.slane %v1476_v63, 4  ;;  %v878_v49 = vsel %vm606_vm2, %v869_v33, %v877_v21  ;;  %v3693_v3 = vor.u32 %v3692_v43, %v3689_v34  ;;  %v3704_v32 = vshrl.u32 %v5627_v5, 16  ;;  %v7874_v33 = vld [vmem:[#allocation2 + $0xc8] sm:$0xf] }
 0x10c   : > { %v3701_v26 = vor.u32 %v3700_v41, %v3697_v29  ;;  %6255 = vmatmul.mubr.bf16.gmra.mrb[28].mxu1 %v878_v49  ;;  %v1481_v20 = vrot.slane %v1479_v1, 5  ;;  %v1486_v13 = vrot.slane %v1484_v36, 4  ;;  %v1489_v0 = vrot.slane %v1487_v45, 5  ;;  %v1461_v49 = vld [vmem:[#allocation2 + $0x38] sm:$0x1f] }
 0x10d   : > { %v3707_v55 = vshll.u32 %v5627_v5, 16  ;;  %6509 = vmatpush3.bf16.msra.mxu0 %v7005_v52  ;;  %v3706_v9 = vrot.slane %v3704_v32, 3  ;;  %v3712_v39 = vshrl.u32 %v7859_v59, 16  ;;  %v3715_v15 = vshll.u32 %v7859_v59, 16  ;;  %v1460_v52 = vld [vmem:[#allocation2 + $0x28] sm:$0x1f] }
 0x10e   : > { %v3702_v35 = vsel %vm606_vm2, %v3693_v3, %v3701_v26  ;;  %6510 = vmatprep.subr.bf16.mxu0 %v7007_v14  ;;  %v1482_v60 = vor.u32 %v1481_v20, %v1478_v8  ;;  %v1490_v50 = vor.u32 %v1489_v0, %v1486_v13  ;;  %v1499_v37 = vor.u32 %v7554_v58, %v7552_v57  ;;  %v5631_v58 = vld [vmem:[#allocation2 + $0xc0] sm:$0xf8] }
 0x10f   : > { %v3709_v17 = vrot.slane %v3707_v55, 4  ;;  %v3714_v28 = vrot.slane %v3712_v39, 3  ;;  %v3717_v25 = vrot.slane %v3715_v15, 4  ;;  %v1501_v40 = vshrl.u32 %v1459_v6, 16 }
 0x110   : > { %6479 = vmatmul.mubr.bf16.gmra.mrb[12].mxu0 %v3702_v35  ;;  %v1504_v53 = vshll.u32 %v1459_v6, 16  ;;  %v1491_v54 = vsel %vm1474_vm1, %v1482_v60, %v1490_v50  ;;  %v3721_v48 = vshrl.u32 %v5629_v30, 16  ;;  %v3724_v24 = vshll.u32 %v5629_v30, 16  ;;  %v5633_v30 = vld [vmem:[#allocation2 + $0xd0] sm:$0xf8] }
 0x111   : > { %v3710_v56 = vor.u32 %v3709_v17, %v3706_v9  ;;  %6511 = vmatpush3.bf16.msra.mxu0 %v7007_v14  ;;  %6274 = vmatprep.mubr.bf16.mxu1 %v1491_v54  ;;  %v3718_v38 = vor.u32 %v3717_v25, %v3714_v28  ;;  %v1503_v62 = vrot.slane %v1501_v40, 4  ;;  %v3729_v57 = vshrl.u32 %v7867_v42, 16  ;;  %v7004_v14 = vld [vmem:[#allocation6 + $0xc8] sm:$0xff]   ;;  %v7882_v35 = vld [vmem:[#allocation2 + $0xd8] sm:$0xf]  ;;  %v7006_v50 = vld [vmem:[#allocation6 + $0xd0] sm:$0xff]  }
 0x112   : > { %v1506_v2 = vrot.slane %v1504_v53, 5  ;;  %6512 = vmatprep.subr.bf16.mxu0 %v7009_v46  ;;  %v3723_v51 = vrot.slane %v3721_v48, 3  ;;  %v3726_v27 = vrot.slane %v3724_v24, 4  ;;  %v3732_v47 = vshll.u32 %v7867_v42, 16 }
 0x113   : > { %v1510_v22 = vshrl.u32 %v7025_v12, 16  ;;  %v3719_v34 = vsel %vm606_vm2, %v3710_v56, %v3718_v38  ;;  %v3731_v63 = vrot.slane %v3729_v57, 3  ;;  %v1513_v5 = vshll.u32 %v7025_v12, 16  ;;  %v1462_v38 = vld [vmem:[#allocation2 + $0x48] sm:$0x1f] }
 0x114   : > { %v1507_v23 = vor.u32 %v1506_v2, %v1503_v62  ;;  %6482 = vmatprep.mubr.bf16.mxu0 %v3719_v34  ;;  %v3727_v21 = vor.u32 %v3726_v27, %v3723_v51  ;;  %v3734_v43 = vrot.slane %v3732_v47, 4  ;;  %v1518_v41 = vshrl.u32 %v1460_v52, 16  ;;  %v7008_v62 = vld [vmem:[#allocation6 + $0xd8] sm:$0xff]   ;;  %v5635_v27 = vld [vmem:[#allocation2 + $0xe0] sm:$0xf8] }
 0x115   : > { %v1512_v29 = vrot.slane %v1510_v22, 4  ;;  %6513 = vmatpush3.bf16.msra.mxu0 %v7009_v46  ;;  %v1515_v1 = vrot.slane %v1513_v5, 5  ;;  %v1521_v36 = vshll.u32 %v1460_v52, 16  ;;  %v3738_v45 = vshrl.u32 %v5631_v58, 16  ;;  %v7026_v46 = vld [vmem:[#allocation2 + $0x30] sm:$0xf0] }
 0x116   : > { %v1508_v8 = vsel %vm1474_vm1, %v1499_v37, %v1507_v23  ;;  %6546 = vmatprep.subr.bf16.mxu0 %v7871_v11  ;;  %v3735_v3 = vor.u32 %v3734_v43, %v3731_v63  ;;  %v1520_v26 = vrot.slane %v1518_v41, 4  ;;  %v3741_v32 = vshll.u32 %v5631_v58, 16  ;;  %v7027_v34 = vld [vmem:[#allocation2 + $0x40] sm:$0xf0] }
 0x117   : > { %6275 = vmatmul.mubr.bf16.vlgmr.msra.gmra.mrb[0].mxu1 %v1508_v8  ;;  %v3746_v6 = vshrl.u32 %v7874_v33, 16  ;;  %v1516_v20 = vor.u32 %v1515_v1, %v1512_v29  ;;  %v1523_v13 = vrot.slane %v1521_v36, 5  ;;  %v3740_v0 = vrot.slane %v3738_v45, 3  ;;  %v7889_v1 = vld [vmem:[#allocation2 + $0xe8] sm:$0xf] }
 0x118   : > { %6307 = vmatpush3.bf16.msra.mxu1 %v7805_v19  ;;  %v3749_v55 = vshll.u32 %v7874_v33, 16  ;;  %v3736_v9 = vsel %vm606_vm2, %v3727_v21, %v3735_v3  ;;  %v3743_v39 = vrot.slane %v3741_v32, 4  ;;  %v1527_v60 = vshrl.u32 %v7026_v46, 16  ;;  %v7010_v32 = vld [vmem:[#allocation6 + $0xe0] sm:$0xff]  }
 0x119   : > { %v3748_v15 = vrot.slane %v3746_v6, 3  ;;  %6308 = vmatprep.subr.bf16.mxu1 %v7004_v14  ;;  %6483 = vmatmul.mubr.bf16.gmra.mrb[16].mxu0 %v3736_v9  ;;  %v1524_v17 = vor.u32 %v1523_v13, %v1520_v26  ;;  %v1530_v28 = vshll.u32 %v7026_v46, 16  ;;  %v1535_v19 = vshrl.u32 %v1461_v49, 16  ;;  %v1463_v26 = vld [vmem:[#allocation2 + $0x58] sm:$0x1f] }
 0x11a   : > { %v3751_v37 = vrot.slane %v3749_v55, 4  ;;  %v3744_v25 = vor.u32 %v3743_v39, %v3740_v0  ;;  %v1529_v40 = vrot.slane %v1527_v60, 4  ;;  %v1538_v53 = vshll.u32 %v1461_v49, 16 }
 0x11b   : > { %v3755_v54 = vshrl.u32 %v5633_v30, 16  ;;  %v1525_v56 = vsel %vm1474_vm1, %v1516_v20, %v1524_v17  ;;  %v1532_v24 = vrot.slane %v1530_v28, 5  ;;  %v1537_v52 = vrot.slane %v1535_v19, 4  ;;  %v7012_v28 = vld [vmem:[#allocation6 + $0xe8] sm:$0xff]  }
 0x11c   : > { %v3752_v48 = vor.u32 %v3751_v37, %v3748_v15  ;;  %6309 = vmatpush3.bf16.msra.mxu1 %v7004_v14  ;;  %6278 = vmatprep.mubr.bf16.mxu1 %v1525_v56  ;;  %v1540_v2 = vrot.slane %v1538_v53, 5  ;;  %v3758_v58 = vshll.u32 %v5633_v30, 16  ;;  %v3763_v51 = vshrl.u32 %v7882_v35, 16  ;;  %v5637_v37 = vld [vmem:[#allocation2 + $0xf0] sm:$0xf8] }
 0x11d   : > { %v3757_v57 = vrot.slane %v3755_v54, 3  ;;  %6310 = vmatprep.subr.bf16.mxu1 %v7006_v50  ;;  %v1533_v12 = vor.u32 %v1532_v24, %v1529_v40  ;;  %v3766_v22 = vshll.u32 %v7882_v35, 16  ;;  %v1544_v23 = vshrl.u32 %v7027_v34, 16  ;;  %v7895_v54 = vld [vmem:[#allocation2 + $0xf8] sm:$0xf] }
 0x11e   : > { %v3753_v47 = vsel %vm606_vm2, %v3744_v25, %v3752_v48  ;;  %v1541_v63 = vor.u32 %v1540_v2, %v1537_v52  ;;  %v3760_v5 = vrot.slane %v3758_v58, 4  ;;  %v3765_v21 = vrot.slane %v3763_v51, 3 }
 0x11f   : > { %6486 = vmatprep.mubr.bf16.mxu0 %v3753_v47  ;;  %v1547_v43 = vshll.u32 %v7027_v34, 16  ;;  %v3768_v29 = vrot.slane %v3766_v22, 4  ;;  %v1546_v41 = vrot.slane %v1544_v23, 4  ;;  %v1552_v14 = vshrl.u32 %v1462_v38, 16 }
 0x120   : > { %v1555_v8 = vshll.u32 %v1462_v38, 16  ;;  %6311 = vmatpush3.bf16.msra.mxu1 %v7006_v50  ;;  %v1542_v36 = vsel %vm1474_vm1, %v1533_v12, %v1541_v63  ;;  %v3761_v45 = vor.u32 %v3760_v5, %v3757_v57  ;;  %v3772_v3 = vshrl.u32 %v5635_v27, 16  ;;  %v7028_v50 = vld [vmem:[#allocation2 + $0x50] sm:$0xf0]  ;;  %v1464_v12 = vld [vmem:[#allocation2 + $0x68] sm:$0x1f] }
 0x121   : > { %v1549_v49 = vrot.slane %v1547_v43, 5  ;;  %6312 = vmatprep.subr.bf16.mxu1 %v7008_v62  ;;  %6279 = vmatmul.mubr.bf16.gmra.mrb[4].mxu1 %v1542_v36  ;;  %v3769_v6 = vor.u32 %v3768_v29, %v3765_v21  ;;  %v1554_v30 = vrot.slane %v1552_v14, 4  ;;  %v3775_v13 = vshll.u32 %v5635_v27, 16  ;;  %v7029_v63 = vld [vmem:[#allocation2 + $0x60] sm:$0xf0]  ;;  %v7014_v43 = vld [vmem:[#allocation6 + $0xf0] sm:$0xff]  }
 0x122   : > { %v1557_v20 = vrot.slane %v1555_v8, 5  ;;  %v3774_v55 = vrot.slane %v3772_v3, 3  ;;  %v3780_v9 = vshrl.u32 %v7889_v1, 16  ;;  %v3783_v39 = vshll.u32 %v7889_v1, 16  ;;  %v5639_v21 = vld [vmem:[#allocation2 + $0x100] sm:$0xf8] }
 0x123   : > { %v1550_v0 = vor.u32 %v1549_v49, %v1546_v41  ;;  %v3770_v15 = vsel %vm606_vm2, %v3761_v45, %v3769_v6  ;;  %v3777_v60 = vrot.slane %v3775_v13, 4  ;;  %v1561_v17 = vshrl.u32 %v7028_v50, 16  ;;  %v7016_v13 = vld [vmem:[#allocation6 + $0xf8] sm:$0xff]  }
 0x124   : > { %v1558_v46 = vor.u32 %v1557_v20, %v1554_v30  ;;  %6313 = vmatpush3.bf16.msra.mxu1 %v7008_v62  ;;  %6487 = vmatmul.mubr.bf16.gmra.mrb[20].mxu0 %v3770_v15  ;;  %v3782_v19 = vrot.slane %v3780_v9, 3  ;;  %v3785_v25 = vrot.slane %v3783_v39, 4  ;;  %v1564_v40 = vshll.u32 %v7028_v50, 16  ;;  %v1465_v15 = vld [vmem:[#allocation2 + $0x78] sm:$0x1f] }
 0x125   : > { %v1569_v53 = vshrl.u32 %v1463_v26, 16  ;;  %6314 = vmatprep.subr.bf16.mxu1 %v7010_v32  ;;  %v3778_v48 = vor.u32 %v3777_v60, %v3774_v55  ;;  %v1563_v24 = vrot.slane %v1561_v17, 4  ;;  %v1572_v52 = vshll.u32 %v1463_v26, 16  ;;  %v7901_v26 = vld [vmem:[#allocation2 + $0x108] sm:$0xf] }
 0x126   : > { %v1559_v56 = vsel %vm1474_vm1, %v1550_v0, %v1558_v46  ;;  %v3786_v38 = vor.u32 %v3785_v25, %v3782_v19  ;;  %v1566_v2 = vrot.slane %v1564_v40, 5  ;;  %v3789_v58 = vshrl.u32 %v5637_v37, 16 }
 0x127   : > { %6282 = vmatprep.mubr.bf16.mxu1 %v1559_v56  ;;  %v1571_v57 = vrot.slane %v1569_v53, 4  ;;  %v1574_v62 = vrot.slane %v1572_v52, 5  ;;  %v3792_v51 = vshll.u32 %v5637_v37, 16  ;;  %v3797_v27 = vshrl.u32 %v7895_v54, 16  ;;  %v5641_v53 = vld [vmem:[#allocation2 + $0x110] sm:$0xf8] }
 0x128   : > { %v3800_v47 = vshll.u32 %v7895_v54, 16  ;;  %6315 = vmatpush3.bf16.msra.mxu1 %v7010_v32  ;;  %v3787_v22 = vsel %vm606_vm2, %v3778_v48, %v3786_v38  ;;  %v1567_v34 = vor.u32 %v1566_v2, %v1563_v24  ;;  %v3791_v23 = vrot.slane %v3789_v58, 3  ;;  %v7907_v38 = vld [vmem:[#allocation2 + $0x118] sm:$0xf] }
 0x129   : > { %v1578_v5 = vshrl.u32 %v7029_v63, 16  ;;  %6316 = vmatprep.subr.bf16.mxu1 %v7012_v28  ;;  %6490 = vmatprep.mubr.bf16.mxu0 %v3787_v22  ;;  %v1575_v29 = vor.u32 %v1574_v62, %v1571_v57  ;;  %v3794_v41 = vrot.slane %v3792_v51, 4  ;;  %v3799_v14 = vrot.slane %v3797_v27, 3 }
 0x12a   : > { %v3802_v8 = vrot.slane %v3800_v47, 4  ;;  %v1581_v45 = vshll.u32 %v7029_v63, 16  ;;  %v1586_v49 = vshrl.u32 %v1464_v12, 16  ;;  %v1589_v3 = vshll.u32 %v1464_v12, 16 }
 0x12b   : > { %v1580_v36 = vrot.slane %v1578_v5, 4  ;;  %v1576_v32 = vsel %vm1474_vm1, %v1567_v34, %v1575_v29  ;;  %v3795_v6 = vor.u32 %v3794_v41, %v3791_v23  ;;  %v3806_v20 = vshrl.u32 %v5639_v21, 16  ;;  %v1466_v5 = vld [vmem:[#allocation2 + $0x88] sm:$0x1f]  ;;  %v7031_v41 = vld [vmem:[#allocation2 + $0x80] sm:$0xf0] }
 0x12c   : > { %v3803_v30 = vor.u32 %v3802_v8, %v3799_v14  ;;  %6317 = vmatpush3.bf16.msra.mxu1 %v7012_v28  ;;  %v1583_v0 = vrot.slane %v1581_v45, 5  ;;  %v1588_v55 = vrot.slane %v1586_v49, 4  ;;  %v1591_v9 = vrot.slane %v1589_v3, 5  ;;  %v7030_v28 = vld [vmem:[#allocation2 + $0x70] sm:$0xf0] }
 0x12d   : > { %6283 = vmatmul.mubr.bf16.gmra.mrb[8].mxu1 %v1576_v32  ;;  %v3809_v39 = vshll.u32 %v5639_v21, 16  ;;  %6318 = vmatprep.subr.bf16.mxu1 %v7014_v43  ;;  %v3808_v60 = vrot.slane %v3806_v20, 3  ;;  %v3814_v50 = vshrl.u32 %v7901_v26, 16  ;;  %v3817_v17 = vshll.u32 %v7901_v26, 16  ;;  %v7913_v8 = vld [vmem:[#allocation2 + $0x20] sm:$0xf0] }
 0x12e   : > { %v3804_v46 = vsel %vm606_vm2, %v3795_v6, %v3803_v30  ;;  %v1584_v37 = vor.u32 %v1583_v0, %v1580_v36  ;;  %v1592_v19 = vor.u32 %v1591_v9, %v1588_v55  ;;  %v1595_v40 = vshrl.u32 %v7030_v28, 16  ;;  %v7915_v32 = vld [vmem:[#allocation6 + $0x100] sm:$0xff]   ;;  %v1467_v55 = vld [vmem:[#allocation2 + $0x98] sm:$0x1f] }
 0x12f   : > { %6491 = vmatmul.mubr.bf16.gmra.mrb[24].mxu0 %v3804_v46  ;;  %v3811_v25 = vrot.slane %v3809_v39, 4  ;;  %v3816_v56 = vrot.slane %v3814_v50, 3  ;;  %v3819_v48 = vrot.slane %v3817_v17, 4  ;;  %v1598_v24 = vshll.u32 %v7030_v28, 16  ;;  %v7033_v17 = vld [vmem:[#allocation2 + $0x28] sm:$0xf] }
 0x130   : > { %v1603_v52 = vshrl.u32 %v1465_v15, 16  ;;  %6319 = vmatpush3.bf16.msra.mxu1 %v7014_v43  ;;  %v1593_v2 = vsel %vm1474_vm1, %v1584_v37, %v1592_v19  ;;  %v1597_v58 = vrot.slane %v1595_v40, 4  ;;  %v1606_v62 = vshll.u32 %v1465_v15, 16  ;;  %v7920_v19 = vld [vmem:[#allocation2 + $0x30] sm:$0xf0] }
 0x131   : > { %v3812_v57 = vor.u32 %v3811_v25, %v3808_v60  ;;  %6320 = vmatprep.subr.bf16.mxu1 %v7016_v13  ;;  %6286 = vmatprep.mubr.bf16.mxu1 %v1593_v2  ;;  %v3820_v51 = vor.u32 %v3819_v48, %v3816_v56  ;;  %v1600_v27 = vrot.slane %v1598_v24, 5  ;;  %v3823_v12 = vshrl.u32 %v5641_v53, 16  ;;  %v7034_v28 = vld [vmem:[#allocation2 + $0x90] sm:$0xf0] }
 0x132   : > { %v1605_v47 = vrot.slane %v1603_v52, 4  ;;  %v1608_v22 = vrot.slane %v1606_v62, 5  ;;  %v3826_v34 = vshll.u32 %v5641_v53, 16  ;;  %v3831_v23 = vshrl.u32 %v7907_v38, 16 }
 0x133   : > { %v3834_v63 = vshll.u32 %v7907_v38, 16  ;;  %v3821_v21 = vsel %vm606_vm2, %v3812_v57, %v3820_v51  ;;  %v1601_v43 = vor.u32 %v1600_v27, %v1597_v58  ;;  %v3825_v29 = vrot.slane %v3823_v12, 3  ;;  %v1468_v57 = vld [vmem:[#allocation2 + $0xa8] sm:$0x1f] }
 0x134   : > { %v1612_v14 = vshrl.u32 %v7031_v41, 16  ;;  %6321 = vmatpush3.bf16.msra.mxu1 %v7016_v13  ;;  %6494 = vmatprep.mubr.bf16.mxu0 %v3821_v21  ;;  %v1609_v36 = vor.u32 %v1608_v22, %v1605_v47  ;;  %v3828_v45 = vrot.slane %v3826_v34, 4  ;;  %v3833_v49 = vrot.slane %v3831_v23, 3  ;;  %v7925_v47 = vld [vmem:[#allocation2 + $0x40] sm:$0xf0] }
 0x135   : > { %v3836_v3 = vrot.slane %v3834_v63, 4  ;;  %6594 = vmatprep.subr.bf16.mxu1 %v7915_v32  ;;  %v1615_v30 = vshll.u32 %v7031_v41, 16  ;;  %v1620_v20 = vshrl.u32 %v1466_v5, 16  ;;  %v1623_v0 = vshll.u32 %v1466_v5, 16  ;;  %v7035_v34 = vld [vmem:[#allocation2 + $0x38] sm:$0xf] }
 0x136   : > { %v1614_v6 = vrot.slane %v1612_v14, 4  ;;  %v1610_v9 = vsel %vm1474_vm1, %v1601_v43, %v1609_v36  ;;  %v3829_v39 = vor.u32 %v3828_v45, %v3825_v29  ;;  %v4160_v13 = vrot.slane %v7913_v8, 4  ;;  %v7036_v63 = vld [vmem:[#allocation2 + $0xa0] sm:$0xf0]  ;;  %v1469_v14 = vld [vmem:[#allocation2 + $0xb8] sm:$0x1f] }
 0x137   : > { %v3837_v15 = vor.u32 %v3836_v3, %v3833_v49  ;;  %6287 = vmatmul.mubr.bf16.gmra.mrb[12].mxu1 %v1610_v9  ;;  %v1617_v46 = vrot.slane %v1615_v30, 5  ;;  %v1622_v60 = vrot.slane %v1620_v20, 4  ;;  %v1625_v50 = vrot.slane %v1623_v0, 5 }
 0x138   : > { %v4161_v37 = vrot.slane %v7033_v17, 4  ;;  %v1629_v40 = vshrl.u32 %v7034_v28, 16  ;;  %v1632_v53 = vshll.u32 %v7034_v28, 16  ;;  %v1637_v56 = vshrl.u32 %v1467_v55, 16  ;;  %v1470_v28 = vld [vmem:[#allocation2 + $0xc8] sm:$0x1f] }
 0x139   : > { %v3838_v25 = vsel %vm606_vm2, %v3829_v39, %v3837_v15  ;;  %v1618_v48 = vor.u32 %v1617_v46, %v1614_v6  ;;  %v1626_v24 = vor.u32 %v1625_v50, %v1622_v60  ;;  %v1640_v2 = vshll.u32 %v1467_v55, 16  ;;  %v7931_v55 = vld [vmem:[#allocation2 + $0x50] sm:$0xf0]  ;;  %v7013_v60 = vld [vmem:[#allocation6 + $0x208] sm:$0xff]  }
 0x13a   : > { %6495 = vmatmul.mubr.bf16.gmra.mrb[28].mxu0 %v3838_v25  ;;  %v4162_v52 = vsel %vm959_vm0, %v4160_v13, %v4161_v37  ;;  %v1631_v58 = vrot.slane %v1629_v40, 4  ;;  %v1634_v62 = vrot.slane %v1632_v53, 5  ;;  %v1639_v51 = vrot.slane %v1637_v56, 4  ;;  %v7037_v39 = vld [vmem:[#allocation2 + $0xb0] sm:$0xf0] }
 0x13b   : > { %6514 = vmatprep.mubr.bf16.mxu0 %v4162_v52  ;;  %v4163_v27 = vrot.slane %v7920_v19, 4  ;;  %v1627_v12 = vsel %vm1474_vm1, %v1618_v48, %v1626_v24  ;;  %v1642_v22 = vrot.slane %v1640_v2, 5  ;;  %v4164_v23 = vrot.slane %v7035_v34, 4  ;;  %v7936_v48 = vld [vmem:[#allocation2 + $0x60] sm:$0xf0]  ;;  %v7015_v34 = vld [vmem:[#allocation6 + $0x210] sm:$0xff]  }
 0x13c   : > { %v1646_v5 = vshrl.u32 %v7036_v63, 16  ;;  %6290 = vmatprep.mubr.bf16.mxu1 %v1627_v12  ;;  %v1635_v21 = vor.u32 %v1634_v62, %v1631_v58  ;;  %v1649_v43 = vshll.u32 %v7036_v63, 16  ;;  %v1654_v29 = vshrl.u32 %v1468_v57, 16 }
 0x13d   : > { %v1657_v41 = vshll.u32 %v1468_v57, 16  ;;  %v1643_v36 = vor.u32 %v1642_v22, %v1639_v51  ;;  %v4165_v45 = vsel %vm959_vm0, %v4163_v27, %v4164_v23  ;;  %v4166_v3 = vrot.slane %v7925_v47, 4  ;;  %v7038_v57 = vld [vmem:[#allocation2 + $0xc0] sm:$0xf0]  ;;  %v1471_v22 = vld [vmem:[#allocation2 + $0xd8] sm:$0x1f] }
 0x13e   : > { %v1648_v49 = vrot.slane %v1646_v5, 4  ;;  %v1651_v6 = vrot.slane %v1649_v43, 5  ;;  %v1656_v30 = vrot.slane %v1654_v29, 4  ;;  %v4167_v0 = vrot.slane %v7812_v61, 4 }
 0x13f   : > { %v1659_v20 = vrot.slane %v1657_v41, 5  ;;  %v1644_v9 = vsel %vm1474_vm1, %v1635_v21, %v1643_v36  ;;  %v1663_v15 = vshrl.u32 %v7037_v39, 16  ;;  %v1666_v13 = vshll.u32 %v7037_v39, 16  ;;  %v7944_v41 = vld [vmem:[#allocation2 + $0x70] sm:$0xf0]  ;;  %v7017_v39 = vld [vmem:[#allocation6 + $0x218] sm:$0xff]  }
 0x140   : > { %v1671_v46 = vshrl.u32 %v1469_v14, 16  ;;  %6291 = vmatmul.mubr.bf16.gmra.mrb[16].mxu1 %v1644_v9  ;;  %v1652_v50 = vor.u32 %v1651_v6, %v1648_v49  ;;  %v4168_v37 = vsel %vm959_vm0, %v4166_v3, %v4167_v0  ;;  %v1674_v25 = vshll.u32 %v1469_v14, 16  ;;  %v7039_v36 = vld [vmem:[#allocation2 + $0xd0] sm:$0xf0]  ;;  %v1472_v9 = vld [vmem:[#allocation2 + $0xe8] sm:$0x1f] }
 0x141   : > { %v1660_v17 = vor.u32 %v1659_v20, %v1656_v30  ;;  %v1665_v40 = vrot.slane %v1663_v15, 4  ;;  %v1668_v53 = vrot.slane %v1666_v13, 5  ;;  %v4169_v56 = vrot.slane %v7931_v55, 4 }
 0x142   : > { %6515 = vmatmul.mubr.bf16.vlgmr.msra.gmra.mrb[0].mxu0 %v4165_v45  ;;  %v1673_v61 = vrot.slane %v1671_v46, 4  ;;  %v1676_v52 = vrot.slane %v1674_v25, 5  ;;  %v4170_v2 = vrot.slane %v7816_v31, 4  ;;  %v1680_v58 = vshrl.u32 %v7038_v57, 16  ;;  %v7040_v25 = vld [vmem:[#allocation2 + $0xe0] sm:$0xf0] }
 0x143   : > { %6547 = vmatpush3.bf16.msra.mxu0 %v7871_v11  ;;  %v1661_v24 = vsel %vm1474_vm1, %v1652_v50, %v1660_v17  ;;  %6518 = vmatprep.mubr.bf16.mxu0 %v4168_v37  ;;  %v1669_v62 = vor.u32 %v1668_v53, %v1665_v40  ;;  %v1683_v51 = vshll.u32 %v7038_v57, 16  ;;  %v1688_v27 = vshrl.u32 %v1470_v28, 16  ;;  %v7949_v50 = vld [vmem:[#allocation2 + $0x80] sm:$0xf0] }
 0x144   : > { %6294 = vmatprep.mubr.bf16.mxu1 %v1661_v24  ;;  %6548 = vmatprep.subr.bf16.mxu0 %v7013_v60  ;;  %v1691_v12 = vshll.u32 %v1470_v28, 16  ;;  %v1677_v23 = vor.u32 %v1676_v52, %v1673_v61  ;;  %v4171_v63 = vsel %vm959_vm0, %v4169_v56, %v4170_v2  ;;  %v1682_v11 = vrot.slane %v1680_v58, 4  ;;  %v1473_v24 = vld [vmem:[#allocation2 + $0xf8] sm:$0x1f] }
 0x145   : > { %v4172_v5 = vrot.slane %v7936_v48, 4  ;;  %v1685_v21 = vrot.slane %v1683_v51, 5  ;;  %v1690_v43 = vrot.slane %v1688_v27, 4  ;;  %v4173_v31 = vrot.slane %v7825_v44, 4 }
 0x146   : > { %v1693_v29 = vrot.slane %v1691_v12, 5  ;;  %v1678_v14 = vsel %vm1474_vm1, %v1669_v62, %v1677_v23  ;;  %v1697_v45 = vshrl.u32 %v7039_v36, 16  ;;  %v1700_v49 = vshll.u32 %v7039_v36, 16  ;;  %v7018_v62 = vld [vmem:[#allocation6 + $0x220] sm:$0xff]  }
 0x147   : > { %6549 = vmatpush3.bf16.msra.mxu0 %v7013_v60  ;;  %v1705_v3 = vshrl.u32 %v1471_v22, 16  ;;  %v1686_v6 = vor.u32 %v1685_v21, %v1682_v11  ;;  %v4174_v20 = vsel %vm959_vm0, %v4172_v5, %v4173_v31  ;;  %v1708_v0 = vshll.u32 %v1471_v22, 16  ;;  %v7956_v22 = vld [vmem:[#allocation2 + $0x90] sm:$0xf0] }
 0x148   : > { %v1694_v30 = vor.u32 %v1693_v29, %v1690_v43  ;;  %6550 = vmatprep.subr.bf16.mxu0 %v7015_v34  ;;  %6295 = vmatmul.mubr.bf16.gmra.mrb[20].mxu1 %v1678_v14  ;;  %v1699_v15 = vrot.slane %v1697_v45, 4  ;;  %v1702_v44 = vrot.slane %v1700_v49, 5  ;;  %v4175_v46 = vrot.slane %v7944_v41, 4  ;;  %v5523_v43 = vld [vmem:[#allocation2 + $0x10] sm:$0xf8] }
 0x149   : > { %v1707_v13 = vrot.slane %v1705_v3, 4  ;;  %v1710_v17 = vrot.slane %v1708_v0, 5  ;;  %v4176_v37 = vrot.slane %v7836_v18, 4  ;;  %v1714_v28 = vshrl.u32 %v7040_v25, 16  ;;  %v7961_v3 = vld [vmem:[#allocation2 + $0xa0] sm:$0xf0] }
 0x14a   : > { %6519 = vmatmul.mubr.bf16.gmra.mrb[4].mxu0 %v4171_v63  ;;  %v1695_v60 = vsel %vm1474_vm1, %v1686_v6, %v1694_v30  ;;  %v1703_v40 = vor.u32 %v1702_v44, %v1699_v15  ;;  %v1717_v53 = vshll.u32 %v7040_v25, 16  ;;  %v1722_v61 = vshrl.u32 %v1472_v9, 16  ;;  %v7041_v63 = vld [vmem:[#allocation2 + $0xf0] sm:$0xf0] }
 0x14b   : > { %6298 = vmatprep.mubr.bf16.mxu1 %v1695_v60  ;;  %6522 = vmatprep.mubr.bf16.mxu0 %v4174_v20  ;;  %v1725_v56 = vshll.u32 %v1472_v9, 16  ;;  %v1711_v52 = vor.u32 %v1710_v17, %v1707_v13  ;;  %v4177_v2 = vsel %vm959_vm0, %v4175_v46, %v4176_v37  ;;  %v1716_v57 = vrot.slane %v1714_v28, 4  ;;  %v7019_v9 = vld [vmem:[#allocation6 + $0x228] sm:$0xff]   ;;  %v7042_v13 = vld [vmem:[#allocation2 + $0x18] sm:$0xf] }
 0x14c   : > { %6551 = vmatpush3.bf16.msra.mxu0 %v7015_v34  ;;  %v4178_v58 = vrot.slane %v7949_v50, 4  ;;  %v1719_v51 = vrot.slane %v1717_v53, 5  ;;  %v1724_v27 = vrot.slane %v1722_v61, 4  ;;  %v4179_v12 = vrot.slane %v7845_v7, 4  ;;  %v5525_v17 = vld [vmem:[#allocation2 + $0x20] sm:$0xf8] }
 0x14d   : > { %v1727_v18 = vrot.slane %v1725_v56, 5  ;;  %6552 = vmatprep.subr.bf16.mxu0 %v7017_v39  ;;  %v1712_v23 = vsel %vm1474_vm1, %v1703_v40, %v1711_v52  ;;  %v1731_v11 = vshrl.u32 %v7041_v63, 16  ;;  %v1734_v5 = vshll.u32 %v7041_v63, 16  ;;  %v7967_v40 = vld [vmem:[#allocation2 + $0xb0] sm:$0xf0] }
 0x14e   : > { %v1739_v21 = vshrl.u32 %v1473_v24, 16  ;;  %v1720_v34 = vor.u32 %v1719_v51, %v1716_v57  ;;  %v4180_v31 = vsel %vm959_vm0, %v4178_v58, %v4179_v12  ;;  %v1742_v14 = vshll.u32 %v1473_v24, 16  ;;  %v5527_v24 = vld [vmem:[#allocation2 + $0x30] sm:$0xf8]  ;;  %v7975_v63 = vld [vmem:[#allocation2 + $0xc0] sm:$0xf0] }
 0x14f   : > { %v1728_v29 = vor.u32 %v1727_v18, %v1724_v27  ;;  %v1733_v36 = vrot.slane %v1731_v11, 4  ;;  %v1736_v45 = vrot.slane %v1734_v5, 5  ;;  %v4181_v7 = vrot.slane %v7956_v22, 4  ;;  %v7020_v51 = vld [vmem:[#allocation6 + $0x230] sm:$0xff]  }
 0x150   : > { %v1741_v49 = vrot.slane %v1739_v21, 4  ;;  %6553 = vmatpush3.bf16.msra.mxu0 %v7017_v39  ;;  %6299 = vmatmul.mubr.bf16.gmra.mrb[24].mxu1 %v1712_v23  ;;  %v1744_v30 = vrot.slane %v1742_v14, 5  ;;  %v4182_v20 = vrot.slane %v7852_v16, 4  ;;  %v2057_v0 = vshrl.u32 %v5523_v43, 16 }
 0x151   : > { %v1729_v6 = vsel %vm1474_vm1, %v1720_v34, %v1728_v29  ;;  %6554 = vmatprep.subr.bf16.mxu0 %v7018_v62  ;;  %v1737_v15 = vor.u32 %v1736_v45, %v1733_v36  ;;  %v2060_v44 = vshll.u32 %v5523_v43, 16  ;;  %v2065_v46 = vshrl.u32 %v7042_v13, 16  ;;  %v7043_v34 = vld [vmem:[#allocation2 + $0x38] sm:$0xf]  ;;  %v5529_v29 = vld [vmem:[#allocation2 + $0x40] sm:$0xf8] }
 0x152   : > { %6523 = vmatmul.mubr.bf16.gmra.mrb[8].mxu0 %v4177_v2  ;;  %6302 = vmatprep.mubr.bf16.mxu1 %v1729_v6  ;;  %v2068_v60 = vshll.u32 %v7042_v13, 16  ;;  %v1745_v39 = vor.u32 %v1744_v30, %v1741_v49  ;;  %v4183_v37 = vsel %vm959_vm0, %v4181_v7, %v4182_v20  ;;  %v2059_v25 = vrot.slane %v2057_v0, 3  ;;  %v7021_v49 = vld [vmem:[#allocation6 + $0x238] sm:$0xff]   ;;  %v7982_v20 = vld [vmem:[#allocation2 + $0xd0] sm:$0xf0] }
 0x153   : > { %6526 = vmatprep.mubr.bf16.mxu0 %v4180_v31  ;;  %v4184_v28 = vrot.slane %v7961_v3, 4  ;;  %v2062_v16 = vrot.slane %v2060_v44, 4  ;;  %v2067_v53 = vrot.slane %v2065_v46, 3  ;;  %v4185_v56 = vrot.slane %v7859_v59, 4  ;;  %v7044_v44 = vld [vmem:[#allocation2 + $0x48] sm:$0xf] }
 0x154   : > { %v2070_v61 = vrot.slane %v2068_v60, 4  ;;  %6555 = vmatpush3.bf16.msra.mxu0 %v7018_v62  ;;  %v1746_v52 = vsel %vm1474_vm1, %v1737_v15, %v1745_v39  ;;  %v2074_v2 = vshrl.u32 %v5525_v17, 16  ;;  %v2077_v57 = vshll.u32 %v5525_v17, 16  ;;  %v5531_v46 = vld [vmem:[#allocation2 + $0x50] sm:$0xf8] }
 0x155   : > { %v2088_v58 = vor.u32 %v7562_v10, %v7558_v4  ;;  %6556 = vmatprep.subr.bf16.mxu0 %v7019_v9  ;;  %v2063_v27 = vor.u32 %v2062_v16, %v2059_v25  ;;  %v4186_v12 = vsel %vm959_vm0, %v4184_v28, %v4185_v56  ;;  %v4187_v23 = vrot.slane %v7967_v40, 4 }
 0x156   : > { %v2071_v18 = vor.u32 %v2070_v61, %v2067_v53  ;;  %v2076_v59 = vrot.slane %v2074_v2, 3  ;;  %v2079_v62 = vrot.slane %v2077_v57, 4  ;;  %v4188_v11 = vrot.slane %v7867_v42, 4  ;;  %v7987_v53 = vld [vmem:[#allocation2 + $0xe0] sm:$0xf0] }
 0x157   : > { %v2091_v5 = vshrl.u32 %v5527_v24, 16  ;;  %v2094_v43 = vshll.u32 %v5527_v24, 16  ;;  %v2099_v4 = vshrl.u32 %v7043_v34, 16  ;;  %v2102_v10 = vshll.u32 %v7043_v34, 16 }
 0x158   : > { %v2072_v21 = vsel %vm606_vm2, %v2063_v27, %v2071_v18  ;;  %6557 = vmatpush3.bf16.msra.mxu0 %v7019_v9  ;;  %6303 = vmatmul.mubr.bf16.gmra.mrb[28].mxu1 %v1746_v52  ;;  %v2080_v31 = vor.u32 %v2079_v62, %v2076_v59  ;;  %v4189_v14 = vsel %vm959_vm0, %v4187_v23, %v4188_v11  ;;  %v4190_v45 = vrot.slane %v7975_v63, 4 }
 0x159   : > { %v2093_v36 = vrot.slane %v2091_v5, 3  ;;  %6558 = vmatprep.subr.bf16.mxu0 %v7020_v51  ;;  %6322 = vmatprep.mubr.bf16.mxu1 %v2072_v21  ;;  %v2096_v42 = vrot.slane %v2094_v43, 4  ;;  %v2101_v7 = vrot.slane %v2099_v4, 3  ;;  %v2104_v6 = vrot.slane %v2102_v10, 4  ;;  %v7994_v43 = vld [vmem:[#allocation2 + $0xf0] sm:$0xf0] }
 0x15a   : > { %6527 = vmatmul.mubr.bf16.gmra.mrb[12].mxu0 %v4183_v37  ;;  %v4191_v30 = vrot.slane %v7874_v33, 4  ;;  %v2089_v0 = vsel %vm606_vm2, %v2080_v31, %v2088_v58  ;;  %v2108_v9 = vshrl.u32 %v5529_v29, 16  ;;  %v2111_v15 = vshll.u32 %v5529_v29, 16  ;;  %v7045_v58 = vld [vmem:[#allocation2 + $0x58] sm:$0xf] }
 0x15b   : > { %6530 = vmatprep.mubr.bf16.mxu0 %v4186_v12  ;;  %v2116_v13 = vshrl.u32 %v7044_v44, 16  ;;  %v2097_v60 = vor.u32 %v2096_v42, %v2093_v36  ;;  %v2105_v17 = vor.u32 %v2104_v6, %v2101_v7  ;;  %v2119_v37 = vshll.u32 %v7044_v44, 16  ;;  %v7046_v29 = vld [vmem:[#allocation2 + $0x68] sm:$0xf]  ;;  %v5535_v36 = vld [vmem:[#allocation2 + $0x70] sm:$0xf8] }
 0x15c   : > { %v4192_v39 = vsel %vm959_vm0, %v4190_v45, %v4191_v30  ;;  %6559 = vmatpush3.bf16.msra.mxu0 %v7020_v51  ;;  %v2110_v25 = vrot.slane %v2108_v9, 3  ;;  %v2113_v28 = vrot.slane %v2111_v15, 4  ;;  %v4193_v33 = vrot.slane %v7982_v20, 4  ;;  %v5533_v51 = vld [vmem:[#allocation2 + $0x60] sm:$0xf8] }
 0x15d   : > { %v2118_v16 = vrot.slane %v2116_v13, 3  ;;  %6560 = vmatprep.subr.bf16.mxu0 %v7021_v49  ;;  %v2106_v61 = vsel %vm606_vm2, %v2097_v60, %v2105_v17  ;;  %v2121_v56 = vrot.slane %v2119_v37, 4  ;;  %v4194_v24 = vrot.slane %v7882_v35, 4  ;;  %v7048_v17 = vld [vmem:[#allocation2 + $0x78] sm:$0xf] }
 0x15e   : > { %v2125_v52 = vshrl.u32 %v5531_v46, 16  ;;  %v2114_v2 = vor.u32 %v2113_v28, %v2110_v25  ;;  %v2128_v57 = vshll.u32 %v5531_v46, 16  ;;  %v2133_v27 = vshrl.u32 %v7045_v58, 16  ;;  %v5537_v25 = vld [vmem:[#allocation2 + $0x80] sm:$0xf8] }
 0x15f   : > { %v2136_v18 = vshll.u32 %v7045_v58, 16  ;;  %v2122_v12 = vor.u32 %v2121_v56, %v2118_v16  ;;  %v4195_v23 = vsel %vm959_vm0, %v4193_v33, %v4194_v24  ;;  %v4196_v62 = vrot.slane %v7987_v53, 4  ;;  %v7049_v16 = vld [vmem:[#allocation6 + $0x110] sm:$0xff]  }
 0x160   : > { %v2127_v59 = vrot.slane %v2125_v52, 3  ;;  %6561 = vmatpush3.bf16.msra.mxu0 %v7021_v49  ;;  %6323 = vmatmul.mubr.bf16.vlgmr.msra.gmra.mrb[0].mxu1 %v2089_v0  ;;  %v2130_v11 = vrot.slane %v2128_v57, 4  ;;  %v2135_v5 = vrot.slane %v2133_v27, 3  ;;  %v4197_v35 = vrot.slane %v7889_v1, 4  ;;  %v7047_v1 = vld [vmem:[#allocation6 + $0x108] sm:$0xff]  }
 0x161   : > { %v2138_v21 = vrot.slane %v2136_v18, 4  ;;  %6602 = vmatpush3.bf16.msra.mxu1 %v7915_v32  ;;  %v2123_v34 = vsel %vm606_vm2, %v2114_v2, %v2122_v12  ;;  %v2142_v4 = vshrl.u32 %v5533_v51, 16  ;;  %v2145_v10 = vshll.u32 %v5533_v51, 16  ;;  %6326 = vmatprep.mubr.bf16.mxu1 %v2106_v61  ;;  %v8000_v0 = vld [vmem:[#allocation2 + $0x100] sm:$0xf0] }
 0x162   : > { %6531 = vmatmul.mubr.bf16.gmra.mrb[16].mxu0 %v4189_v14  ;;  %v2150_v31 = vshrl.u32 %v7046_v29, 16  ;;  %v2131_v45 = vor.u32 %v2130_v11, %v2127_v59  ;;  %v4198_v42 = vsel %vm959_vm0, %v4196_v62, %v4197_v35  ;;  %v2153_v7 = vshll.u32 %v7046_v29, 16  ;;  %6595 = vmatprep.subr.bf16.mxu1 %v7047_v1  ;;  %v8007_v57 = vld [vmem:[#allocation2 + $0x110] sm:$0xf0]  ;;  %v7050_v51 = vld [vmem:[#allocation2 + $0x88] sm:$0xf] }
 0x163   : > { %6534 = vmatprep.mubr.bf16.mxu0 %v4192_v39  ;;  %v2139_v49 = vor.u32 %v2138_v21, %v2135_v5  ;;  %v2144_v6 = vrot.slane %v2142_v4, 3  ;;  %v2147_v14 = vrot.slane %v2145_v10, 4  ;;  %v4199_v32 = vrot.slane %v7994_v43, 4  ;;  %v5539_v59 = vld [vmem:[#allocation2 + $0x90] sm:$0xf8] }
 0x164   : > { %v2152_v30 = vrot.slane %v2150_v31, 3  ;;  %v2155_v15 = vrot.slane %v2153_v7, 4  ;;  %v4200_v44 = vrot.slane %v7895_v54, 4  ;;  %v2159_v13 = vshrl.u32 %v5535_v36, 16  ;;  %v8011_v35 = vld [vmem:[#allocation2 + $0x98] sm:$0xf] }
 0x165   : > { %v2140_v9 = vsel %vm606_vm2, %v2131_v45, %v2139_v49  ;;  %6603 = vmatpush3.bf16.msra.mxu1 %v7047_v1  ;;  %v2148_v46 = vor.u32 %v2147_v14, %v2144_v6  ;;  %v2162_v60 = vshll.u32 %v5535_v36, 16  ;;  %v2167_v39 = vshrl.u32 %v7048_v17, 16  ;;  %v7051_v36 = vld [vmem:[#allocation6 + $0x118] sm:$0xff]   ;;  %v5675_v6 = vld [vmem:[#allocation2 + $0x28] sm:$0x1f] }
 0x166   : > { %v2170_v37 = vshll.u32 %v7048_v17, 16  ;;  %v2156_v28 = vor.u32 %v2155_v15, %v2152_v30  ;;  %6596 = vmatprep.subr.bf16.mxu1 %v7049_v16  ;;  %v4201_v33 = vsel %vm959_vm0, %v4199_v32, %v4200_v44  ;;  %v2161_v61 = vrot.slane %v2159_v13, 3  ;;  %v5541_v15 = vld [vmem:[#allocation2 + $0xa0] sm:$0xf8] }
 0x167   : > { %v4202_v56 = vrot.slane %v8000_v0, 4  ;;  %v2164_v24 = vrot.slane %v2162_v60, 4  ;;  %v2169_v52 = vrot.slane %v2167_v39, 3  ;;  %v4203_v54 = vrot.slane %v7901_v26, 4  ;;  %v8023_v60 = vld [vmem:[#allocation2 + $0xa8] sm:$0xf] }
 0x168   : > { %v2172_v2 = vrot.slane %v2170_v37, 4  ;;  %6327 = vmatmul.mubr.bf16.gmra.mrb[4].mxu1 %v2123_v34  ;;  %v2157_v58 = vsel %vm606_vm2, %v2148_v46, %v2156_v28  ;;  %v2176_v27 = vshrl.u32 %v5537_v25, 16  ;;  %v2179_v18 = vshll.u32 %v5537_v25, 16  ;;  %v7052_v28 = vld [vmem:[#allocation6 + $0x120] sm:$0xff]  }
 0x169   : > { %v2184_v12 = vshrl.u32 %v7050_v51, 16  ;;  %6330 = vmatprep.mubr.bf16.mxu1 %v2140_v9  ;;  %v2165_v62 = vor.u32 %v2164_v24, %v2161_v61  ;;  %v4204_v5 = vsel %vm959_vm0, %v4202_v56, %v4203_v54  ;;  %v2187_v21 = vshll.u32 %v7050_v51, 16  ;;  %6604 = vmatpush3.bf16.msra.mxu1 %v7049_v16 }
 0x16a   : > { %6535 = vmatmul.mubr.bf16.gmra.mrb[20].mxu0 %v4195_v23  ;;  %v2173_v11 = vor.u32 %v2172_v2, %v2169_v52  ;;  %v2178_v26 = vrot.slane %v2176_v27, 3  ;;  %v2181_v34 = vrot.slane %v2179_v18, 4  ;;  %v4205_v10 = vrot.slane %v8007_v57, 4  ;;  %6597 = vmatprep.subr.bf16.mxu1 %v7051_v36  ;;  %v5676_v27 = vld [vmem:[#allocation2 + $0x38] sm:$0x1f] }
 0x16b   : > { %6538 = vmatprep.mubr.bf16.mxu0 %v4198_v42  ;;  %v2186_v4 = vrot.slane %v2184_v12, 3  ;;  %v2189_v31 = vrot.slane %v2187_v21, 4  ;;  %v4206_v23 = vrot.slane %v7907_v38, 4  ;;  %v2193_v45 = vshrl.u32 %v5539_v59, 16 }
 0x16c   : > { %v2174_v29 = vsel %vm606_vm2, %v2165_v62, %v2173_v11  ;;  %v2182_v49 = vor.u32 %v2181_v34, %v2178_v26  ;;  %v2196_v7 = vshll.u32 %v5539_v59, 16  ;;  %v2201_v1 = vshrl.u32 %v8011_v35, 16  ;;  %v7053_v26 = vld [vmem:[#allocation6 + $0x128] sm:$0xff]  }
 0x16d   : > { %v2204_v42 = vshll.u32 %v8011_v35, 16  ;;  %v2190_v14 = vor.u32 %v2189_v31, %v2186_v4  ;;  %v8019_v30 = vsel %vm959_vm0, %v4205_v10, %v4206_v23  ;;  %v2195_v32 = vrot.slane %v2193_v45, 3  ;;  %6605 = vmatpush3.bf16.msra.mxu1 %v7051_v36 }
 0x16e   : > { %v4498_v9 = vshrl.u32 %v7913_v8, 16  ;;  %v2198_v44 = vrot.slane %v2196_v7, 4  ;;  %v2203_v13 = vrot.slane %v2201_v1, 3  ;;  %v4501_v46 = vshll.u32 %v7913_v8, 16  ;;  %6598 = vmatprep.subr.bf16.mxu1 %v7052_v28 }
 0x16f   : > { %v2206_v38 = vrot.slane %v2204_v42, 4  ;;  %v2191_v17 = vsel %vm606_vm2, %v2182_v49, %v2190_v14  ;;  %v4506_v37 = vshrl.u32 %v5675_v6, 16  ;;  %v4509_v25 = vshll.u32 %v5675_v6, 16 }
 0x170   : > { %v4500_v39 = vrot.slane %v4498_v9, 4  ;;  %6331 = vmatmul.mubr.bf16.gmra.mrb[8].mxu1 %v2157_v58  ;;  %v2199_v16 = vor.u32 %v2198_v44, %v2195_v32  ;;  %v4503_v56 = vrot.slane %v4501_v46, 5  ;;  %v2210_v24 = vshrl.u32 %v5541_v15, 16  ;;  %v5543_v58 = vld [vmem:[#allocation2 + $0xb0] sm:$0xf8] }
 0x171   : > { %v2207_v61 = vor.u32 %v2206_v38, %v2203_v13  ;;  %6334 = vmatprep.mubr.bf16.mxu1 %v2174_v29  ;;  %v4508_v52 = vrot.slane %v4506_v37, 4  ;;  %v4511_v2 = vrot.slane %v4509_v25, 5  ;;  %v2213_v54 = vshll.u32 %v5541_v15, 16  ;;  %6606 = vmatpush3.bf16.msra.mxu1 %v7052_v28  ;;  %v8031_v29 = vld [vmem:[#allocation2 + $0xb8] sm:$0xf]  ;;  %v7054_v15 = vld [vmem:[#allocation6 + $0x130] sm:$0xff]  }
 0x172   : > { %6539 = vmatmul.mubr.bf16.gmra.mrb[24].mxu0 %v4201_v33  ;;  %v2218_v8 = vshrl.u32 %v8023_v60, 16  ;;  %v4504_v51 = vor.u32 %v4503_v56, %v4500_v39  ;;  %v2212_v12 = vrot.slane %v2210_v24, 3  ;;  %v2221_v59 = vshll.u32 %v8023_v60, 16  ;;  %6599 = vmatprep.subr.bf16.mxu1 %v7053_v26  ;;  %v5677_v9 = vld [vmem:[#allocation2 + $0x48] sm:$0x1f] }
 0x173   : > { %6542 = vmatprep.mubr.bf16.mxu0 %v4204_v5  ;;  %v2208_v18 = vsel %vm606_vm2, %v2199_v16, %v2207_v61  ;;  %v4512_v62 = vor.u32 %v4511_v2, %v4508_v52  ;;  %v2215_v11 = vrot.slane %v2213_v54, 4  ;;  %v4515_v33 = vshrl.u32 %v7920_v19, 16  ;;  %v5545_v39 = vld [vmem:[#allocation2 + $0xc0] sm:$0xf8]  ;;  %v8040_v61 = vld [vmem:[#allocation2 + $0xc8] sm:$0xf] }
 0x174   : > { %v2220_v21 = vrot.slane %v2218_v8, 3  ;;  %v2223_v34 = vrot.slane %v2221_v59, 4  ;;  %v4518_v4 = vshll.u32 %v7920_v19, 16  ;;  %v4523_v10 = vshrl.u32 %v5676_v27, 16  ;;  %v5678_v59 = vld [vmem:[#allocation2 + $0x58] sm:$0x1f] }
 0x175   : > { %v4526_v5 = vshll.u32 %v5676_v27, 16  ;;  %v4513_v31 = vsel %vm1474_vm1, %v4504_v51, %v4512_v62  ;;  %v2216_v36 = vor.u32 %v2215_v11, %v2212_v12  ;;  %v4517_v23 = vrot.slane %v4515_v33, 4  ;;  %6607 = vmatpush3.bf16.msra.mxu1 %v7053_v26  ;;  %v5547_v33 = vld [vmem:[#allocation2 + $0xd0] sm:$0xf8] }
 0x176   : > { %v2227_v45 = vshrl.u32 %v5543_v58, 16  ;;  %v2224_v49 = vor.u32 %v2223_v34, %v2220_v21  ;;  %v4520_v7 = vrot.slane %v4518_v4, 5  ;;  %v4525_v1 = vrot.slane %v4523_v10, 4  ;;  %6600 = vmatprep.subr.bf16.mxu1 %v7054_v15 }
 0x177   : > { %v4528_v42 = vrot.slane %v4526_v5, 5  ;;  %v2230_v14 = vshll.u32 %v5543_v58, 16  ;;  %v2235_v32 = vshrl.u32 %v8031_v29, 16  ;;  %v2238_v19 = vshll.u32 %v8031_v29, 16 }
 0x178   : > { %v2229_v6 = vrot.slane %v2227_v45, 3  ;;  %6335 = vmatmul.mubr.bf16.gmra.mrb[12].mxu1 %v2191_v17  ;;  %v2225_v44 = vsel %vm606_vm2, %v2216_v36, %v2224_v49  ;;  %v4521_v13 = vor.u32 %v4520_v7, %v4517_v23  ;;  %v4532_v46 = vshrl.u32 %v7925_v47, 16  ;;  %v8048_v45 = vld [vmem:[#allocation2 + $0xd8] sm:$0xf] }
 0x179   : > { %v4529_v38 = vor.u32 %v4528_v42, %v4525_v1  ;;  %6338 = vmatprep.mubr.bf16.mxu1 %v2208_v18  ;;  %v2232_v37 = vrot.slane %v2230_v14, 4  ;;  %v2237_v25 = vrot.slane %v2235_v32, 3  ;;  %v2240_v28 = vrot.slane %v2238_v19, 4  ;;  %6608 = vmatpush3.bf16.msra.mxu1 %v7054_v15 }
 0x17a   : > { %6543 = vmatmul.mubr.bf16.gmra.mrb[28].mxu0 %v8019_v30  ;;  %v4535_v16 = vshll.u32 %v7925_v47, 16  ;;  %v4534_v56 = vrot.slane %v4532_v46, 4  ;;  %v4540_v24 = vshrl.u32 %v5677_v9, 16  ;;  %v4543_v52 = vshll.u32 %v5677_v9, 16  ;;  %v7055_v30 = vld [vmem:[#allocation6 + $0x138] sm:$0xff]  }
 0x17b   : > { %6562 = vmatprep.mubr.bf16.mxu0 %v4513_v31  ;;  %v4530_v17 = vsel %vm1474_vm1, %v4521_v13, %v4529_v38  ;;  %v2233_v2 = vor.u32 %v2232_v37, %v2229_v6  ;;  %v2241_v54 = vor.u32 %v2240_v28, %v2237_v25  ;;  %v2244_v27 = vshrl.u32 %v5545_v39, 16  ;;  %6601 = vmatprep.subr.bf16.mxu1 %v7055_v30  ;;  %v5679_v38 = vld [vmem:[#allocation2 + $0x68] sm:$0x1f]  ;;  %v5549_v25 = vld [vmem:[#allocation2 + $0xe0] sm:$0xf8] }
 0x17c   : > { %v4537_v8 = vrot.slane %v4535_v16, 5  ;;  %v4542_v18 = vrot.slane %v4540_v24, 4  ;;  %v4545_v51 = vrot.slane %v4543_v52, 5  ;;  %v2247_v12 = vshll.u32 %v5545_v39, 16  ;;  %v8056_v24 = vld [vmem:[#allocation2 + $0xe8] sm:$0xf] }
 0x17d   : > { %v2252_v47 = vshrl.u32 %v8040_v61, 16  ;;  %v2242_v58 = vsel %vm606_vm2, %v2233_v2, %v2241_v54  ;;  %v2246_v11 = vrot.slane %v2244_v27, 3  ;;  %v2255_v21 = vshll.u32 %v8040_v61, 16  ;;  %6609 = vmatpush3.bf16.msra.mxu1 %v7055_v30 }
 0x17e   : > { %v4538_v62 = vor.u32 %v4537_v8, %v4534_v56  ;;  %v4546_v26 = vor.u32 %v4545_v51, %v4542_v18  ;;  %v2249_v34 = vrot.slane %v2247_v12, 4  ;;  %v4549_v10 = vshrl.u32 %v7931_v55, 16 }
 0x17f   : > { %v2254_v4 = vrot.slane %v2252_v47, 3  ;;  %v2257_v5 = vrot.slane %v2255_v21, 4  ;;  %v4552_v31 = vshll.u32 %v7931_v55, 16  ;;  %v4557_v36 = vshrl.u32 %v5678_v59, 16 }
 0x180   : > { %v4560_v23 = vshll.u32 %v5678_v59, 16  ;;  %6339 = vmatmul.mubr.bf16.gmra.mrb[16].mxu1 %v2225_v44  ;;  %v4547_v49 = vsel %vm1474_vm1, %v4538_v62, %v4546_v26  ;;  %v2250_v7 = vor.u32 %v2249_v34, %v2246_v11  ;;  %v4551_v1 = vrot.slane %v4549_v10, 4  ;;  %v5680_v62 = vld [vmem:[#allocation2 + $0x78] sm:$0x1f]  ;;  %v5551_v26 = vld [vmem:[#allocation2 + $0xf0] sm:$0xf8] }
 0x181   : > { %v2261_v42 = vshrl.u32 %v5547_v33, 16  ;;  %6342 = vmatprep.mubr.bf16.mxu1 %v2242_v58  ;;  %v2258_v6 = vor.u32 %v2257_v5, %v2254_v4  ;;  %v4554_v14 = vrot.slane %v4552_v31, 5  ;;  %v4559_v32 = vrot.slane %v4557_v36, 4 }
 0x182   : > { %6563 = vmatmul.mubr.bf16.vlgmr.msra.gmra.mrb[0].mxu0 %v4530_v17  ;;  %v4562_v19 = vrot.slane %v4560_v23, 5  ;;  %v2264_v15 = vshll.u32 %v5547_v33, 16  ;;  %v2269_v55 = vshrl.u32 %v8048_v45, 16  ;;  %v2272_v13 = vshll.u32 %v8048_v45, 16 }
 0x183   : > { %6566 = vmatprep.mubr.bf16.mxu0 %v4547_v49  ;;  %v2263_v9 = vrot.slane %v2261_v42, 3  ;;  %v2259_v44 = vsel %vm606_vm2, %v2250_v7, %v2258_v6  ;;  %v4555_v46 = vor.u32 %v4554_v14, %v4551_v1  ;;  %v4566_v37 = vshrl.u32 %v7936_v48, 16  ;;  %v8064_v7 = vld [vmem:[#allocation2 + $0xf8] sm:$0xf] }
 0x184   : > { %v4563_v39 = vor.u32 %v4562_v19, %v4559_v32  ;;  %v2266_v28 = vrot.slane %v2264_v15, 4  ;;  %v2271_v16 = vrot.slane %v2269_v55, 3  ;;  %v2274_v17 = vrot.slane %v2272_v13, 4 }
 0x185   : > { %v4569_v56 = vshll.u32 %v7936_v48, 16  ;;  %v4568_v2 = vrot.slane %v4566_v37, 4  ;;  %v4574_v54 = vshrl.u32 %v5679_v38, 16  ;;  %v4577_v8 = vshll.u32 %v5679_v38, 16 }
 0x186   : > { %v4564_v52 = vsel %vm1474_vm1, %v4555_v46, %v4563_v39  ;;  %v2267_v27 = vor.u32 %v2266_v28, %v2263_v9  ;;  %v2275_v30 = vor.u32 %v2274_v17, %v2271_v16  ;;  %v2278_v51 = vshrl.u32 %v5549_v25, 16  ;;  %v5553_v28 = vld [vmem:[#allocation2 + $0x100] sm:$0xf8] }
 0x187   : > { %v4571_v18 = vrot.slane %v4569_v56, 5  ;;  %v4576_v12 = vrot.slane %v4574_v54, 4  ;;  %v4579_v47 = vrot.slane %v4577_v8, 5  ;;  %v2281_v59 = vshll.u32 %v5549_v25, 16 }
 0x188   : > { %v2286_v58 = vshrl.u32 %v8056_v24, 16  ;;  %6343 = vmatmul.mubr.bf16.gmra.mrb[20].mxu1 %v2259_v44  ;;  %v2276_v48 = vsel %vm606_vm2, %v2267_v27, %v2275_v30  ;;  %v2280_v21 = vrot.slane %v2278_v51, 3  ;;  %v2289_v33 = vshll.u32 %v8056_v24, 16  ;;  %v5681_v44 = vld [vmem:[#allocation2 + $0x88] sm:$0x1f] }
 0x189   : > { %v4572_v11 = vor.u32 %v4571_v18, %v4568_v2  ;;  %6346 = vmatprep.mubr.bf16.mxu1 %v2276_v48  ;;  %v4580_v34 = vor.u32 %v4579_v47, %v4576_v12  ;;  %v2283_v4 = vrot.slane %v2281_v59, 4  ;;  %v4583_v5 = vshrl.u32 %v7944_v41, 16  ;;  %v8072_v2 = vld [vmem:[#allocation2 + $0x108] sm:$0xf] }
 0x18a   : > { %6567 = vmatmul.mubr.bf16.gmra.mrb[4].mxu0 %v4564_v52  ;;  %v2288_v10 = vrot.slane %v2286_v58, 3  ;;  %v2291_v31 = vrot.slane %v2289_v33, 4  ;;  %v4586_v36 = vshll.u32 %v7944_v41, 16  ;;  %v4591_v23 = vshrl.u32 %v5680_v62, 16 }
 0x18b   : > { %v4594_v49 = vshll.u32 %v5680_v62, 16  ;;  %v4581_v1 = vsel %vm1474_vm1, %v4572_v11, %v4580_v34  ;;  %v2284_v42 = vor.u32 %v2283_v4, %v2280_v21  ;;  %v4585_v6 = vrot.slane %v4583_v5, 4  ;;  %v5682_v11 = vld [vmem:[#allocation2 + $0x98] sm:$0x1f] }
 0x18c   : > { %v2295_v14 = vshrl.u32 %v5551_v26, 16  ;;  %6570 = vmatprep.mubr.bf16.mxu0 %v4581_v1  ;;  %v2292_v32 = vor.u32 %v2291_v31, %v2288_v10  ;;  %v4588_v19 = vrot.slane %v4586_v36, 5  ;;  %v4593_v9 = vrot.slane %v4591_v23, 4  ;;  %v5683_v1 = vld [vmem:[#allocation2 + $0xa8] sm:$0x1f] }
 0x18d   : > { %v4596_v15 = vrot.slane %v4594_v49, 5  ;;  %v2298_v13 = vshll.u32 %v5551_v26, 16  ;;  %v2303_v38 = vshrl.u32 %v8064_v7, 16  ;;  %v2306_v41 = vshll.u32 %v8064_v7, 16 }
 0x18e   : > { %v2297_v55 = vrot.slane %v2295_v14, 3  ;;  %v2293_v46 = vsel %vm606_vm2, %v2284_v42, %v2292_v32  ;;  %v4589_v39 = vor.u32 %v4588_v19, %v4585_v6  ;;  %v4600_v25 = vshrl.u32 %v7949_v50, 16  ;;  %v7056_v32 = vld [vmem:[#allocation2 + $0x90] sm:$0xf0] }
 0x18f   : > { %v4597_v37 = vor.u32 %v4596_v15, %v4593_v9  ;;  %v2300_v16 = vrot.slane %v2298_v13, 4  ;;  %v2305_v17 = vrot.slane %v2303_v38, 3  ;;  %v2308_v56 = vrot.slane %v2306_v41, 4 }
 0x190   : > { %v4603_v52 = vshll.u32 %v7949_v50, 16  ;;  %6347 = vmatmul.mubr.bf16.gmra.mrb[24].mxu1 %v2293_v46  ;;  %v4602_v8 = vrot.slane %v4600_v25, 4  ;;  %v4608_v27 = vshrl.u32 %v5681_v44, 16  ;;  %v4611_v30 = vshll.u32 %v5681_v44, 16 }
 0x191   : > { %v4598_v54 = vsel %vm1474_vm1, %v4589_v39, %v4597_v37  ;;  %v2301_v18 = vor.u32 %v2300_v16, %v2297_v55  ;;  %v2309_v51 = vor.u32 %v2308_v56, %v2305_v17  ;;  %v2312_v47 = vshrl.u32 %v5553_v28, 16 }
 0x192   : > { %6571 = vmatmul.mubr.bf16.gmra.mrb[8].mxu0 %v4598_v54  ;;  %v4605_v12 = vrot.slane %v4603_v52, 5  ;;  %v4610_v59 = vrot.slane %v4608_v27, 4  ;;  %v4613_v58 = vrot.slane %v4611_v30, 5  ;;  %v2315_v62 = vshll.u32 %v5553_v28, 16  ;;  %v5684_v28 = vld [vmem:[#allocation2 + $0xb8] sm:$0x1f] }
 0x193   : > { %v2320_v48 = vshrl.u32 %v8072_v2, 16  ;;  %v2310_v50 = vsel %vm606_vm2, %v2301_v18, %v2309_v51  ;;  %v2314_v33 = vrot.slane %v2312_v47, 3  ;;  %v2323_v26 = vshll.u32 %v8072_v2, 16 }
 0x194   : > { %v4606_v21 = vor.u32 %v4605_v12, %v4602_v8  ;;  %6350 = vmatprep.mubr.bf16.mxu1 %v2310_v50  ;;  %v4614_v34 = vor.u32 %v4613_v58, %v4610_v59  ;;  %v2317_v4 = vrot.slane %v2315_v62, 4  ;;  %v4617_v5 = vshrl.u32 %v7956_v22, 16  ;;  %v7057_v8 = vld [vmem:[#allocation2 + $0xa0] sm:$0xf0]  ;;  %v7058_v62 = vld [vmem:[#allocation2 + $0xb0] sm:$0xf0] }
 0x195   : > { %v2322_v10 = vrot.slane %v2320_v48, 3  ;;  %v2325_v31 = vrot.slane %v2323_v26, 4  ;;  %v4620_v36 = vshll.u32 %v7956_v22, 16  ;;  %v4625_v23 = vshrl.u32 %v5682_v11, 16 }
 0x196   : > { %v4628_v49 = vshll.u32 %v5682_v11, 16  ;;  %v4615_v42 = vsel %vm1474_vm1, %v4606_v21, %v4614_v34  ;;  %v2318_v6 = vor.u32 %v2317_v4, %v2314_v33  ;;  %v4619_v14 = vrot.slane %v4617_v5, 4  ;;  %v5685_v11 = vld [vmem:[#allocation2 + $0xc8] sm:$0x1f] }
 0x197   : > { %v2673_v19 = vrot.slane %v7056_v32, 4  ;;  %6574 = vmatprep.mubr.bf16.mxu0 %v4615_v42  ;;  %v2326_v9 = vor.u32 %v2325_v31, %v2322_v10  ;;  %v4622_v15 = vrot.slane %v4620_v36, 5  ;;  %v4627_v55 = vrot.slane %v4625_v23, 4  ;;  %v5686_v23 = vld [vmem:[#allocation2 + $0xd8] sm:$0x1f] }
 0x198   : > { %v4630_v13 = vrot.slane %v4628_v49, 5  ;;  %v2674_v38 = vrot.slane %v8011_v35, 4  ;;  %v4634_v41 = vshrl.u32 %v7961_v3, 16  ;;  %v4637_v22 = vshll.u32 %v7961_v3, 16 }
 0x199   : > { %v4642_v44 = vshrl.u32 %v5683_v1, 16  ;;  %v2327_v46 = vsel %vm606_vm2, %v2318_v6, %v2326_v9  ;;  %v4623_v39 = vor.u32 %v4622_v15, %v4619_v14  ;;  %v4645_v25 = vshll.u32 %v5683_v1, 16  ;;  %v7059_v6 = vld [vmem:[#allocation2 + $0xc0] sm:$0xf0] }
 0x19a   : > { %v4631_v37 = vor.u32 %v4630_v13, %v4627_v55  ;;  %6351 = vmatmul.mubr.bf16.gmra.mrb[28].mxu1 %v2327_v46  ;;  %v2675_v16 = vsel %vm959_vm0, %v2673_v19, %v2674_v38  ;;  %v4636_v17 = vrot.slane %v4634_v41, 4  ;;  %v4639_v56 = vrot.slane %v4637_v22, 5 }
 0x19b   : > { %v4644_v52 = vrot.slane %v4642_v44, 4  ;;  %6386 = vmatprep.mubr.bf16.mxu1 %v2675_v16  ;;  %v4647_v35 = vrot.slane %v4645_v25, 5  ;;  %v2676_v27 = vrot.slane %v7057_v8, 4  ;;  %v2677_v3 = vrot.slane %v8023_v60, 4  ;;  %v5687_v44 = vld [vmem:[#allocation2 + $0xe8] sm:$0x1f] }
 0x19c   : > { %v4632_v54 = vsel %vm1474_vm1, %v4623_v39, %v4631_v37  ;;  %v4640_v30 = vor.u32 %v4639_v56, %v4636_v17  ;;  %v4651_v18 = vshrl.u32 %v7967_v40, 16  ;;  %v4654_v51 = vshll.u32 %v7967_v40, 16  ;;  %v7060_v37 = vld [vmem:[#allocation2 + $0xd0] sm:$0xf0]  ;;  %v5688_v8 = vld [vmem:[#allocation2 + $0xf8] sm:$0x1f] }
 0x19d   : > { %6575 = vmatmul.mubr.bf16.gmra.mrb[12].mxu0 %v4632_v54  ;;  %v4659_v12 = vshrl.u32 %v5684_v28, 16  ;;  %v4648_v47 = vor.u32 %v4647_v35, %v4644_v52  ;;  %v2678_v59 = vsel %vm959_vm0, %v2676_v27, %v2677_v3  ;;  %v4662_v58 = vshll.u32 %v5684_v28, 16 }
 0x19e   : > { %v2679_v48 = vrot.slane %v7058_v62, 4  ;;  %v4653_v50 = vrot.slane %v4651_v18, 4  ;;  %v4656_v21 = vrot.slane %v4654_v51, 5  ;;  %v2680_v26 = vrot.slane %v8031_v29, 4 }
 0x19f   : > { %v4661_v33 = vrot.slane %v4659_v12, 4  ;;  %v4649_v60 = vsel %vm1474_vm1, %v4640_v30, %v4648_v47  ;;  %v4664_v34 = vrot.slane %v4662_v58, 5  ;;  %v4668_v4 = vshrl.u32 %v7975_v63, 16  ;;  %v7061_v12 = vld [vmem:[#allocation2 + $0xe0] sm:$0xf0] }
 0x1a0   : > { %v4671_v40 = vshll.u32 %v7975_v63, 16  ;;  %6578 = vmatprep.mubr.bf16.mxu0 %v4649_v60  ;;  %v4657_v10 = vor.u32 %v4656_v21, %v4653_v50  ;;  %v2681_v5 = vsel %vm959_vm0, %v2679_v48, %v2680_v26  ;;  %v4676_v31 = vshrl.u32 %v5685_v11, 16  ;;  %v5689_v26 = vld [vmem:[#allocation2 + $0x108] sm:$0x1f] }
 0x1a1   : > { %v4679_v36 = vshll.u32 %v5685_v11, 16  ;;  %v4665_v49 = vor.u32 %v4664_v34, %v4661_v33  ;;  %v4670_v1 = vrot.slane %v4668_v4, 4  ;;  %v2682_v14 = vrot.slane %v7059_v6, 4  ;;  %v7062_v4 = vld [vmem:[#allocation2 + $0xf0] sm:$0xf0] }
 0x1a2   : > { %v4673_v42 = vrot.slane %v4671_v40, 5  ;;  %6387 = vmatmul.mubr.bf16.vlgmr.msra.gmra.mrb[16].mxu1 %v2678_v59  ;;  %v4678_v29 = vrot.slane %v4676_v31, 4  ;;  %v2683_v19 = vrot.slane %v8040_v61, 4  ;;  %v4685_v9 = vshrl.u32 %v7982_v20, 16 }
 0x1a3   : > { %v4681_v32 = vrot.slane %v4679_v36, 5  ;;  %v4666_v63 = vsel %vm1474_vm1, %v4657_v10, %v4665_v49  ;;  %6390 = vmatprep.mubr.bf16.mxu1 %v2681_v5  ;;  %v4688_v55 = vshll.u32 %v7982_v20, 16  ;;  %v4693_v13 = vshrl.u32 %v5686_v23, 16 }
 0x1a4   : > { %v4674_v15 = vor.u32 %v4673_v42, %v4670_v1  ;;  %v4687_v41 = vrot.slane %v4685_v9, 4  ;;  %v4696_v22 = vshll.u32 %v5686_v23, 16  ;;  %v2685_v25 = vrot.slane %v7060_v37, 4  ;;  %v5690_v1 = vld [vmem:[#allocation2 + $0x118] sm:$0x1f] }
 0x1a5   : > { %6579 = vmatmul.mubr.bf16.gmra.mrb[16].mxu0 %v4666_v63  ;;  %v4682_v38 = vor.u32 %v4681_v32, %v4678_v29  ;;  %v4690_v46 = vrot.slane %v4688_v55, 5  ;;  %v4695_v39 = vrot.slane %v4693_v13, 4  ;;  %v2686_v61 = vrot.slane %v8048_v45, 4 }
 0x1a6   : > { %v4698_v16 = vrot.slane %v4696_v22, 5  ;;  %v4702_v17 = vshrl.u32 %v7987_v53, 16  ;;  %v4705_v56 = vshll.u32 %v7987_v53, 16  ;;  %v2684_v20 = vsel %vm959_vm0, %v2682_v14, %v2683_v19  ;;  %v7063_v22 = vld [vmem:[#allocation2 + $0x100] sm:$0xf0] }
 0x1a7   : > { %v4683_v28 = vsel %vm1474_vm1, %v4674_v15, %v4682_v38  ;;  %v4691_v52 = vor.u32 %v4690_v46, %v4687_v41  ;;  %v4710_v54 = vshrl.u32 %v5687_v44, 16  ;;  %v4713_v35 = vshll.u32 %v5687_v44, 16 }
 0x1a8   : > { %6582 = vmatprep.mubr.bf16.mxu0 %v4683_v28  ;;  %v4699_v27 = vor.u32 %v4698_v16, %v4695_v39  ;;  %v2687_v3 = vsel %vm959_vm0, %v2685_v25, %v2686_v61  ;;  %v4704_v30 = vrot.slane %v4702_v17, 4  ;;  %v4707_v18 = vrot.slane %v4705_v56, 5 }
 0x1a9   : > { %v4712_v45 = vrot.slane %v4710_v54, 4  ;;  %v4715_v51 = vrot.slane %v4713_v35, 5  ;;  %v2688_v47 = vrot.slane %v7061_v12, 4  ;;  %v4719_v59 = vshrl.u32 %v7994_v43, 16 }
 0x1aa   : > { %6391 = vmatmul.mubr.bf16.gmra.mrb[20].mxu1 %v2684_v20  ;;  %v4700_v53 = vsel %vm1474_vm1, %v4691_v52, %v4699_v27  ;;  %v4708_v58 = vor.u32 %v4707_v18, %v4704_v30  ;;  %v4722_v62 = vshll.u32 %v7994_v43, 16  ;;  %v4727_v48 = vshrl.u32 %v5688_v8, 16 }
 0x1ab   : > { %6394 = vmatprep.mubr.bf16.mxu1 %v2687_v3  ;;  %v4716_v11 = vor.u32 %v4715_v51, %v4712_v45  ;;  %v2689_v50 = vrot.slane %v8056_v24, 4  ;;  %v4721_v21 = vrot.slane %v4719_v59, 4  ;;  %v4730_v33 = vshll.u32 %v5688_v8, 16 }
 0x1ac   : > { %v4724_v60 = vrot.slane %v4722_v62, 5  ;;  %v4729_v34 = vrot.slane %v4727_v48, 4  ;;  %v2691_v40 = vrot.slane %v7062_v4, 4  ;;  %v2692_v10 = vrot.slane %v8064_v7, 4 }
 0x1ad   : > { %6583 = vmatmul.mubr.bf16.gmra.mrb[20].mxu0 %v4700_v53  ;;  %v4717_v5 = vsel %vm1474_vm1, %v4708_v58, %v4716_v11  ;;  %v4732_v31 = vrot.slane %v4730_v33, 5  ;;  %v4736_v43 = vshrl.u32 %v8000_v0, 16  ;;  %v4739_v36 = vshll.u32 %v8000_v0, 16 }
 0x1ae   : > { %6586 = vmatprep.mubr.bf16.mxu0 %v4717_v5  ;;  %v4725_v23 = vor.u32 %v4724_v60, %v4721_v21  ;;  %v4744_v24 = vshrl.u32 %v5689_v26, 16  ;;  %v4747_v49 = vshll.u32 %v5689_v26, 16  ;;  %v2690_v42 = vsel %vm959_vm0, %v2688_v47, %v2689_v50 }
 0x1af   : > { %v4733_v6 = vor.u32 %v4732_v31, %v4729_v34  ;;  %v4738_v14 = vrot.slane %v4736_v43, 4  ;;  %v4741_v29 = vrot.slane %v4739_v36, 5  ;;  %v2693_v32 = vsel %vm959_vm0, %v2691_v40, %v2692_v10 }
 0x1b0   : > { %v4746_v7 = vrot.slane %v4744_v24, 4  ;;  %v4749_v19 = vrot.slane %v4747_v49, 5  ;;  %v4753_v9 = vshrl.u32 %v8007_v57, 16  ;;  %v4756_v0 = vshll.u32 %v8007_v57, 16 }
 0x1b1   : > { %v4734_v63 = vsel %vm1474_vm1, %v4725_v23, %v4733_v6  ;;  %v4742_v15 = vor.u32 %v4741_v29, %v4738_v14  ;;  %v4761_v55 = vshrl.u32 %v5690_v1, 16  ;;  %v4764_v41 = vshll.u32 %v5690_v1, 16 }
 0x1b2   : > { %6395 = vmatmul.mubr.bf16.gmra.mrb[24].mxu1 %v2690_v42  ;;  %v4750_v13 = vor.u32 %v4749_v19, %v4746_v7  ;;  %v4755_v38 = vrot.slane %v4753_v9, 4  ;;  %v2694_v44 = vrot.slane %v7063_v22, 4  ;;  %v2695_v46 = vrot.slane %v8072_v2, 4 }
 0x1b3   : > { %6398 = vmatprep.mubr.bf16.mxu1 %v2693_v32  ;;  %v4758_v39 = vrot.slane %v4756_v0, 5  ;;  %v4763_v37 = vrot.slane %v4761_v55, 4  ;;  %v4766_v61 = vrot.slane %v4764_v41, 5  ;;  %v7247_v2 = vmov 0.0  }
 0x1b4   : > { %v4751_v25 = vsel %vm1474_vm1, %v4742_v15, %v4750_v13  ;;  %v2696_v16 = vsel %vm959_vm0, %v2694_v44, %v2695_v46  ;;  %569 = vst [vmem:[%s8124_s6] sm:$0x3] %v7247_v2 }
 0x1b5   : > { %6587 = vmatmul.mubr.bf16.gmra.mrb[24].mxu0 %v4734_v63  ;;  %v4759_v28 = vor.u32 %v4758_v39, %v4755_v38  ;;  %v4767_v57 = vor.u32 %v4766_v61, %v4763_v37 }
 0x1b6   : > { %6590 = vmatprep.mubr.bf16.mxu0 %v4751_v25 }
 0x1b7   : > { %v4768_v17 = vsel %vm1474_vm1, %v4759_v28, %v4767_v57 }
 0x1ba   : > { %6399 = vmatmul.mubr.bf16.gmra.mrb[28].mxu1 %v2696_v16 }
 0x1bd   : > { %6591 = vmatmul.mubr.bf16.gmra.mrb[28].mxu0 %v4768_v17 }
 0x233   : > { %v6324_v56 = vpop.f32.mrb[0].mxu1 }
 0x234   : > { %v2442_v20 = vpop.f32.mrb[1].mxu1 }
 0x235   : > { %v6325_v52 = vpop.f32.mrb[2].mxu1 }
 0x236   : > { %v2445_v54 = vpop.f32.mrb[3].mxu1 }
 0x23b   : > { %v6328_v35 = vpop.f32.mrb[4].mxu1 }
 0x23c   : > { %v2458_v8 = vpop.f32.mrb[5].mxu1 }
 0x23d   : > { %v6329_v27 = vpop.f32.mrb[6].mxu1 }
 0x23e   : > { %v2461_v3 = vpop.f32.mrb[7].mxu1 }
 0x243   : > { %v6332_v30 = vpop.f32.mrb[8].mxu1 }
 0x244   : > { %v2474_v18 = vpop.f32.mrb[9].mxu1 }
 0x245   : > { %v6333_v45 = vpop.f32.mrb[10].mxu1 }
 0x246   : > { %v2477_v51 = vpop.f32.mrb[11].mxu1 }
 0x24b   : > { %v8127_v12 = vpop.f32.mrb[12].mxu1 }
 0x24c   : > { %v8129_v47 = vpop.f32.mrb[13].mxu1 }
 0x24d   : > { %v8131_v59 = vpop.f32.mrb[14].mxu1 }
 0x24e   : > { %v8133_v53 = vpop.f32.mrb[15].mxu1 }
 0x255   : > { %v6564_v58 = vpop.f32.mrb[0].mxu0 }
 0x256   : > { %v6610_v62 = vadd.f32 %v6564_v58, %v6324_v56  ;;  %v4883_v48 = vpop.f32.mrb[1].mxu0 }
 0x257   : > { %v6611_v11 = vadd.f32 %v4883_v48, %v2442_v20  ;;  %v6565_v50 = vpop.f32.mrb[2].mxu0 }
 0x258   : > { %v6612_v21 = vadd.f32 %v6565_v50, %v6325_v52  ;;  %v4886_v33 = vpop.f32.mrb[3].mxu0  ;;  %v5081_v5 = vmul.f32 %v6610_v62, %v6610_v62 }
 0x259   : > { %v6613_v26 = vadd.f32 %v4886_v33, %v2445_v54  ;;  %v5079_v34 = vmul.f32 %v6611_v11, %v6611_v11 }
 0x25a   : > { %v5844_v60 = vpack.c.bf16 %v6612_v21, %v6610_v62  ;;  %v5082_v49 = vmul.f32 %v6612_v21, %v6612_v21 }
 0x25b   : > { %v5042_v4 = vadd.f32 %v6613_v26, %v6611_v11  ;;  %v5080_v40 = vmul.f32 %v6613_v26, %v6613_v26  ;;  %v5839_v10 = vpack.c.bf16 %v6613_v26, %v6611_v11 }
 0x25c   : > { %5931 = vst [vmem:[%s8137_s17 + $0x8] sm:$0xff] %v5844_v60  }
 0x25d   : > { %v5043_v31 = vadd.f32 %v6610_v62, %v5042_v4  ;;  %v5111_v43 = vadd.f32 %v5080_v40, %v5079_v34  ;;  %5840 = vst [vmem:[%s8137_s17] sm:$0xff] %v5839_v10   ;;  %v6568_v36 = vpop.f32.mrb[4].mxu0 }
 0x25e   : > { %v6614_v23 = vadd.f32 %v6568_v36, %v6328_v35  ;;  %v4899_v24 = vpop.f32.mrb[5].mxu0 }
 0x25f   : > { %v5112_v1 = vadd.f32 %v5111_v43, %v5081_v5  ;;  %v6615_v42 = vadd.f32 %v4899_v24, %v2458_v8  ;;  %v5044_v6 = vadd.f32 %v6612_v21, %v5043_v31  ;;  %v6569_v14 = vpop.f32.mrb[6].mxu0 }
 0x260   : > { %v6616_v29 = vadd.f32 %v6569_v14, %v6329_v27  ;;  %v4902_v32 = vpop.f32.mrb[7].mxu0  ;;  %v5085_v41 = vmul.f32 %v6614_v23, %v6614_v23 }
 0x261   : > { %v5045_v7 = vadd.f32 %v6615_v42, %v5044_v6  ;;  %v5083_v19 = vmul.f32 %v6615_v42, %v6615_v42  ;;  %v5113_v9 = vadd.f32 %v5112_v1, %v5082_v49  ;;  %v6617_v63 = vadd.f32 %v4902_v32, %v2461_v3 }
 0x262   : > { %v5854_v15 = vpack.c.bf16 %v6616_v29, %v6614_v23  ;;  %v5086_v25 = vmul.f32 %v6616_v29, %v6616_v29 }
 0x263   : > { %v5114_v0 = vadd.f32 %v5113_v9, %v5083_v19  ;;  %v5046_v55 = vadd.f32 %v6617_v63, %v5045_v7  ;;  %v5084_v13 = vmul.f32 %v6617_v63, %v6617_v63  ;;  %v5849_v38 = vpack.c.bf16 %v6617_v63, %v6615_v42 }
 0x264   : > { %5933 = vst [vmem:[%s8137_s17 + $0x18] sm:$0xff] %v5854_v15  }
 0x265   : > { %v5047_v22 = vadd.f32 %v6614_v23, %v5046_v55  ;;  %v5115_v44 = vadd.f32 %v5114_v0, %v5084_v13  ;;  %5932 = vst [vmem:[%s8137_s17 + $0x10] sm:$0xff] %v5849_v38   ;;  %v6572_v46 = vpop.f32.mrb[8].mxu0 }
 0x266   : > { %v6618_v39 = vadd.f32 %v6572_v46, %v6332_v30  ;;  %v4915_v37 = vpop.f32.mrb[9].mxu0 }
 0x267   : > { %v5116_v61 = vadd.f32 %v5115_v44, %v5085_v41  ;;  %v6619_v28 = vadd.f32 %v4915_v37, %v2474_v18  ;;  %v5048_v57 = vadd.f32 %v6616_v29, %v5047_v22  ;;  %v6573_v16 = vpop.f32.mrb[10].mxu0 }
 0x268   : > { %v6620_v17 = vadd.f32 %v6573_v16, %v6333_v45  ;;  %v4918_v2 = vpop.f32.mrb[11].mxu0  ;;  %v5089_v30 = vmul.f32 %v6618_v39, %v6618_v39 }
 0x269   : > { %v5049_v56 = vadd.f32 %v6619_v28, %v5048_v57  ;;  %v5087_v20 = vmul.f32 %v6619_v28, %v6619_v28  ;;  %v5117_v52 = vadd.f32 %v5116_v61, %v5086_v25  ;;  %v6621_v54 = vadd.f32 %v4918_v2, %v2477_v51 }
 0x26a   : > { %v5864_v35 = vpack.c.bf16 %v6620_v17, %v6618_v39  ;;  %v5090_v18 = vmul.f32 %v6620_v17, %v6620_v17 }
 0x26b   : > { %v5118_v8 = vadd.f32 %v5117_v52, %v5087_v20  ;;  %v5050_v27 = vadd.f32 %v6621_v54, %v5049_v56  ;;  %v5088_v3 = vmul.f32 %v6621_v54, %v6621_v54  ;;  %v5859_v58 = vpack.c.bf16 %v6621_v54, %v6619_v28 }
 0x26c   : > { %5935 = vst [vmem:[%s8137_s17 + $0x28] sm:$0xff] %v5864_v35  }
 0x26d   : > { %v5051_v62 = vadd.f32 %v6618_v39, %v5050_v27  ;;  %v5119_v48 = vadd.f32 %v5118_v8, %v5088_v3  ;;  %5934 = vst [vmem:[%s8137_s17 + $0x20] sm:$0xff] %v5859_v58  }
 0x26f   : > { %v5120_v11 = vadd.f32 %v5119_v48, %v5089_v30  ;;  %v5052_v50 = vadd.f32 %v6620_v17, %v5051_v62 }
 0x270   : > { %v6576_v21 = vpop.f32.mrb[12].mxu0 }
 0x271   : > { %v6622_v45 = vadd.f32 %v6576_v21, %v8127_v12  ;;  %v4931_v33 = vpop.f32.mrb[13].mxu0  ;;  %v5121_v26 = vadd.f32 %v5120_v11, %v5090_v18 }
 0x272   : > { %v6623_v51 = vadd.f32 %v4931_v33, %v8129_v47  ;;  %v6577_v60 = vpop.f32.mrb[14].mxu0 }
 0x273   : > { %v6624_v34 = vadd.f32 %v6577_v60, %v8131_v59  ;;  %v4934_v4 = vpop.f32.mrb[15].mxu0  ;;  %v5093_v1 = vmul.f32 %v6622_v45, %v6622_v45 }
 0x274   : > { %v5053_v40 = vadd.f32 %v6623_v51, %v5052_v50  ;;  %v5091_v10 = vmul.f32 %v6623_v51, %v6623_v51  ;;  %v6625_v5 = vadd.f32 %v4934_v4, %v8133_v53 }
 0x275   : > { %v5874_v31 = vpack.c.bf16 %v6624_v34, %v6622_v45  ;;  %v6388_v12 = vpop.f32.mrb[16].mxu1  ;;  %v5094_v7 = vmul.f32 %v6624_v34, %v6624_v34 }
 0x276   : > { %v5122_v43 = vadd.f32 %v5121_v26, %v5091_v10  ;;  %v5054_v36 = vadd.f32 %v6625_v5, %v5053_v40  ;;  %v5092_v23 = vmul.f32 %v6625_v5, %v6625_v5  ;;  %v5869_v24 = vpack.c.bf16 %v6625_v5, %v6623_v51  ;;  %v2875_v49 = vpop.f32.mrb[17].mxu1 }
 0x277   : > { %5937 = vst [vmem:[%s8137_s17 + $0x38] sm:$0xff] %v5874_v31   ;;  %v6389_v59 = vpop.f32.mrb[18].mxu1 }
 0x278   : > { %v5055_v42 = vadd.f32 %v6622_v45, %v5054_v36  ;;  %v5123_v47 = vadd.f32 %v5122_v43, %v5092_v23  ;;  %5936 = vst [vmem:[%s8137_s17 + $0x30] sm:$0xff] %v5869_v24   ;;  %v6580_v6 = vpop.f32.mrb[16].mxu0  ;;  %v2878_v32 = vpop.f32.mrb[19].mxu1 }
 0x279   : > { %v6626_v14 = vadd.f32 %v6580_v6, %v6388_v12  ;;  %v4947_v29 = vpop.f32.mrb[17].mxu0 }
 0x27a   : > { %v5124_v19 = vadd.f32 %v5123_v47, %v5093_v1  ;;  %v6627_v53 = vadd.f32 %v4947_v29, %v2875_v49  ;;  %v5056_v9 = vadd.f32 %v6624_v34, %v5055_v42  ;;  %v6581_v63 = vpop.f32.mrb[18].mxu0 }
 0x27b   : > { %v6628_v15 = vadd.f32 %v6581_v63, %v6389_v59  ;;  %v4950_v0 = vpop.f32.mrb[19].mxu0  ;;  %v5097_v28 = vmul.f32 %v6626_v14, %v6626_v14 }
 0x27c   : > { %v5057_v55 = vadd.f32 %v6627_v53, %v5056_v9  ;;  %v5095_v13 = vmul.f32 %v6627_v53, %v6627_v53  ;;  %v5125_v38 = vadd.f32 %v5124_v19, %v5094_v7  ;;  %v6629_v41 = vadd.f32 %v4950_v0, %v2878_v32 }
 0x27d   : > { %v5884_v22 = vpack.c.bf16 %v6628_v15, %v6626_v14  ;;  %v6392_v25 = vpop.f32.mrb[20].mxu1  ;;  %v5098_v54 = vmul.f32 %v6628_v15, %v6628_v15 }
 0x27e   : > { %v5126_v44 = vadd.f32 %v5125_v38, %v5095_v13  ;;  %v5058_v46 = vadd.f32 %v6629_v41, %v5057_v55  ;;  %v5096_v39 = vmul.f32 %v6629_v41, %v6629_v41  ;;  %v5879_v37 = vpack.c.bf16 %v6629_v41, %v6627_v53  ;;  %v2891_v61 = vpop.f32.mrb[21].mxu1 }
 0x27f   : > { %5939 = vst [vmem:[%s8137_s17 + $0x48] sm:$0xff] %v5884_v22   ;;  %v6393_v2 = vpop.f32.mrb[22].mxu1 }
 0x280   : > { %v5059_v57 = vadd.f32 %v6626_v14, %v5058_v46  ;;  %v5127_v16 = vadd.f32 %v5126_v44, %v5096_v39  ;;  %5938 = vst [vmem:[%s8137_s17 + $0x40] sm:$0xff] %v5879_v37   ;;  %v6584_v17 = vpop.f32.mrb[20].mxu0  ;;  %v2894_v52 = vpop.f32.mrb[23].mxu1 }
 0x281   : > { %v6630_v56 = vadd.f32 %v6584_v17, %v6392_v25  ;;  %v4963_v20 = vpop.f32.mrb[21].mxu0 }
 0x282   : > { %v5128_v35 = vadd.f32 %v5127_v16, %v5097_v28  ;;  %v6631_v8 = vadd.f32 %v4963_v20, %v2891_v61  ;;  %v5060_v27 = vadd.f32 %v6628_v15, %v5059_v57  ;;  %v6585_v3 = vpop.f32.mrb[22].mxu0 }
 0x283   : > { %v6632_v58 = vadd.f32 %v6585_v3, %v6393_v2  ;;  %v4966_v30 = vpop.f32.mrb[23].mxu0  ;;  %v5101_v34 = vmul.f32 %v6630_v56, %v6630_v56 }
 0x284   : > { %v5061_v62 = vadd.f32 %v6631_v8, %v5060_v27  ;;  %v5099_v48 = vmul.f32 %v6631_v8, %v6631_v8  ;;  %v5129_v18 = vadd.f32 %v5128_v35, %v5098_v54  ;;  %v6633_v11 = vadd.f32 %v4966_v30, %v2894_v52 }
 0x285   : > { %v5894_v50 = vpack.c.bf16 %v6632_v58, %v6630_v56  ;;  %v6396_v51 = vpop.f32.mrb[24].mxu1  ;;  %v5102_v23 = vmul.f32 %v6632_v58, %v6632_v58 }
 0x286   : > { %v5130_v21 = vadd.f32 %v5129_v18, %v5099_v48  ;;  %v5062_v45 = vadd.f32 %v6633_v11, %v5061_v62  ;;  %v5100_v33 = vmul.f32 %v6633_v11, %v6633_v11  ;;  %v5889_v26 = vpack.c.bf16 %v6633_v11, %v6631_v8  ;;  %v2907_v60 = vpop.f32.mrb[25].mxu1 }
 0x287   : > { %5941 = vst [vmem:[%s8137_s17 + $0x58] sm:$0xff] %v5894_v50   ;;  %v6397_v5 = vpop.f32.mrb[26].mxu1 }
 0x288   : > { %v5063_v4 = vadd.f32 %v6630_v56, %v5062_v45  ;;  %v5131_v40 = vadd.f32 %v5130_v21, %v5100_v33  ;;  %5940 = vst [vmem:[%s8137_s17 + $0x50] sm:$0xff] %v5889_v26   ;;  %v6588_v10 = vpop.f32.mrb[24].mxu0  ;;  %v2910_v36 = vpop.f32.mrb[27].mxu1 }
 0x289   : > { %v6634_v31 = vadd.f32 %v6588_v10, %v6396_v51  ;;  %v4979_v43 = vpop.f32.mrb[25].mxu0 }
 0x28a   : > { %v5132_v24 = vadd.f32 %v5131_v40, %v5101_v34  ;;  %v6635_v12 = vadd.f32 %v4979_v43, %v2907_v60  ;;  %v5064_v49 = vadd.f32 %v6632_v58, %v5063_v4  ;;  %v6589_v1 = vpop.f32.mrb[26].mxu0 }
 0x28b   : > { %v6636_v42 = vadd.f32 %v6589_v1, %v6397_v5  ;;  %v4982_v47 = vpop.f32.mrb[27].mxu0  ;;  %v5105_v0 = vmul.f32 %v6634_v31, %v6634_v31 }
 0x28c   : > { %v5065_v6 = vadd.f32 %v6635_v12, %v5064_v49  ;;  %v5103_v59 = vmul.f32 %v6635_v12, %v6635_v12  ;;  %v5133_v14 = vadd.f32 %v5132_v24, %v5102_v23  ;;  %v6637_v29 = vadd.f32 %v4982_v47, %v2910_v36 }
 0x28d   : > { %v5904_v32 = vpack.c.bf16 %v6636_v42, %v6634_v31  ;;  %v6400_v63 = vpop.f32.mrb[28].mxu1  ;;  %v5106_v39 = vmul.f32 %v6636_v42, %v6636_v42 }
 0x28e   : > { %v5134_v7 = vadd.f32 %v5133_v14, %v5103_v59  ;;  %v5066_v19 = vadd.f32 %v6637_v29, %v5065_v6  ;;  %v5104_v53 = vmul.f32 %v6637_v29, %v6637_v29  ;;  %v5899_v9 = vpack.c.bf16 %v6637_v29, %v6635_v12  ;;  %v2923_v15 = vpop.f32.mrb[29].mxu1 }
 0x28f   : > { %5943 = vst [vmem:[%s8137_s17 + $0x68] sm:$0xff] %v5904_v32   ;;  %v6401_v41 = vpop.f32.mrb[30].mxu1 }
 0x290   : > { %v5067_v55 = vadd.f32 %v6634_v31, %v5066_v19  ;;  %v5135_v13 = vadd.f32 %v5134_v7, %v5104_v53  ;;  %5942 = vst [vmem:[%s8137_s17 + $0x60] sm:$0xff] %v5899_v9   ;;  %v6592_v38 = vpop.f32.mrb[28].mxu0  ;;  %v2926_v46 = vpop.f32.mrb[31].mxu1 }
 0x291   : > { %v6638_v22 = vadd.f32 %v6592_v38, %v6400_v63  ;;  %v4995_v44 = vpop.f32.mrb[29].mxu0 }
 0x292   : > { %v5136_v37 = vadd.f32 %v5135_v13, %v5105_v0  ;;  %v6639_v25 = vadd.f32 %v4995_v44, %v2923_v15  ;;  %v5068_v61 = vadd.f32 %v6636_v42, %v5067_v55  ;;  %v6593_v28 = vpop.f32.mrb[30].mxu0 }
 0x293   : > { %v6640_v57 = vadd.f32 %v6593_v28, %v6401_v41  ;;  %v4998_v16 = vpop.f32.mrb[31].mxu0  ;;  %v5109_v3 = vmul.f32 %v6638_v22, %v6638_v22 }
 0x294   : > { %v5069_v17 = vadd.f32 %v6639_v25, %v5068_v61  ;;  %v5107_v2 = vmul.f32 %v6639_v25, %v6639_v25  ;;  %v5137_v56 = vadd.f32 %v5136_v37, %v5106_v39  ;;  %v6641_v20 = vadd.f32 %v4998_v16, %v2926_v46 }
 0x295   : > { %v5914_v52 = vpack.c.bf16 %v6640_v57, %v6638_v22 }
 0x296   : > { %v5138_v54 = vadd.f32 %v5137_v56, %v5107_v2  ;;  %v5070_v35 = vadd.f32 %v6641_v20, %v5069_v17  ;;  %v5108_v8 = vmul.f32 %v6641_v20, %v6641_v20  ;;  %v5909_v27 = vpack.c.bf16 %v6641_v20, %v6639_v25 }
 0x297   : > { %5945 = vst [vmem:[%s8137_s17 + $0x78] sm:$0xff] %v5914_v52  }
 0x298   : > { %v5071_v58 = vadd.f32 %v6638_v22, %v5070_v35  ;;  %v5139_v30 = vadd.f32 %v5138_v54, %v5108_v8  ;;  %5944 = vst [vmem:[%s8137_s17 + $0x70] sm:$0xff] %v5909_v27  }
 0x299   : > { %7135 = shalt.err (!%p7132_p5)
}
 0x29a   : > { %s7136_s14 = scalar_lea.hbm %s8162_s28, 2048  ;;  %s7140_s27 = scalar_lea.hbm %s8252_s4, 4096 }
 0x29b   : > { %p7137_p9 = scmp.ne.s32.totalorder %s8162_s28, %s7136_s14  ;;  %p7141_p3 = scmp.lt.u32.totalorder %s8162_s28, %s8252_s4 }
 0x29c   : > { %p7142_p7 = scmp.lt.u32.totalorder %s7140_s27, %s7136_s14  ;;  %p7144_p4 = scmp.lt.u32.totalorder %s7136_s14, %s8162_s28 }
 0x29d   : > { %p7138_p1 = pnand %p7137_p9, %p7381_p10 }
 0x29e   : > { %p7143_p13 = por %p7142_p7, %p7141_p3 }
 0x29f   : > { %p7139_p2 = pneg %p7138_p1 }
 0x2a0   : > { %p7145_p6 = por %p7144_p4, %p7143_p13 }
 0x2a2   : > { %p7146_p8 = pnand %p7145_p6, %p7139_p2 }
 0x2a4   : > { %7149 = shalt.err (!%p7146_p8)
}
 0x2a5   : > { %s7249_s24 = smov 64   ;;  %s7250_s25 = smov 4   ;;  %v5110_v62 = vmul.f32 %v6640_v57, %v6640_v57  ;;  %v5072_v48 = vadd.f32 %v6640_v57, %v5071_v58  ;;  %v5140_v18 = vadd.f32 %v5139_v30, %v5109_v3  ;;  %vm5149_vm3 = vcmask 1040384   ;;  %v5148_v31 = vld [vmem:[%s8124_s6] sm:$0x3] }
 0x2a6   : > { %6872 = dma.vmem_to_hbm [thread:$0]  (%p7381_p10), %s8164_s7, 2048, %s8162_s28, %s5314_s30, %s7249_s24, %s7249_s24, %s7250_s25  }
 0x2a7   : > { %v5073_v11 = vrot.slane %v5072_v48, 4  ;;  %v5141_v50 = vadd.f32 %v5140_v18, %v5110_v62  ;;  %s5735_s7 = sshll.u32 %s7232_s21, 5  ;;  %s5351_s28 = sshll.u32 %s8124_s6, 4  ;;  %s8200_s28 = int_to_ptr.vmem [resolvable:$true] %s5351_s28 }
 0x2a8   : > { %s8198_s11 = scalar_lea.hbm %s8253_s5, %s5735_s7  ;;  %s5319_s14 = scalar_lea.sflag [#allocation10], %s7440_s12 }
 0x2a9   : > { %v5074_v21 = vadd.f32 %v5073_v11, %v5072_v48  ;;  %v5142_v45 = vrot.slane %v5141_v50, 4  ;;  %s7150_s16 = scalar_lea.vmem %s8200_s28, 32  ;;  %s7251_s21 = smov [#allocation9]  }
 0x2aa   : > { %p7151_p12 = scmp.ne.s32.totalorder %s8200_s28, %s7150_s16  ;;  %s7154_s17 = sshll.u32 %s7251_s21, 4  ;;  %s7155_s17 = int_to_ptr.vmem [resolvable:$false] %s7154_s17 }
 0x2ab   : > { %v5075_v33 = vrot.slane %v5074_v21, 2  ;;  %v5143_v26 = vadd.f32 %v5142_v45, %v5141_v50  ;;  %s7156_s27 = scalar_lea.vmem %s7155_s17, 64  ;;  %p7157_p5 = scmp.lt.s32.totalorder %s8200_s28, %s7155_s17 }
 0x2ac   : > { %p7152_p11 = pnand %p7151_p12, %p7381_p10  ;;  %p7158_p9 = scmp.lt.s32.totalorder %s7156_s27, %s7150_s16 }
 0x2ad   : > { %v5076_v51 = vadd.f32 %v5075_v33, %v5074_v21  ;;  %v5144_v60 = vrot.slane %v5143_v26, 2 }
 0x2ae   : > { %p7153_p0 = pneg %p7152_p11  ;;  %p7159_p1 = por %p7158_p9, %p7157_p5 }
 0x2af   : > { %v5077_v34 = vrot.slane %v5076_v51, 1  ;;  %v5145_v4 = vadd.f32 %v5144_v60, %v5143_v26 }
 0x2b0   : > { %p7160_p2 = pnand %p7159_p1, %p7153_p0 }
 0x2b1   : > { %v5146_v40 = vrot.slane %v5145_v4, 1  ;;  %v5078_v10 = vadd.f32 %v5077_v34, %v5076_v51 }
 0x2b3   : > { %v5147_v5 = vadd.f32 %v5146_v40, %v5145_v4 }
 0x2b5   : > { %v5150_v43 = vsel %vm5149_vm3, %v5078_v10, %v5147_v5 }
 0x2b6   : > { %v5151_v36 = vadd.f32 %v5150_v43, %v5148_v31 }
 0x2b8   : > { %5152 = vst [vmem:[%s8124_s6] sm:$0x3] %v5151_v36 }
 0x2b9   : > { %7163 = shalt.err (!%p7160_p2)
}
 0x2ba   : > { %s7164_s12 = scalar_lea.hbm %s8198_s11, 32  ;;  %s7168_s26 = scalar_lea.hbm %s8253_s5, 64 }
 0x2bb   : > { %p7165_p3 = scmp.ne.s32.totalorder %s8198_s11, %s7164_s12  ;;  %p7169_p4 = scmp.lt.u32.totalorder %s8198_s11, %s8253_s5 }
 0x2bc   : > { %p7170_p6 = scmp.lt.u32.totalorder %s7168_s26, %s7164_s12  ;;  %p7172_p12 = scmp.lt.u32.totalorder %s7164_s12, %s8198_s11 }
 0x2bd   : > { %p7166_p7 = pnand %p7165_p3, %p7381_p10 }
 0x2be   : > { %p7171_p8 = por %p7170_p6, %p7169_p4 }
 0x2bf   : > { %p7167_p13 = pneg %p7166_p7 }
 0x2c0   : > { %p7173_p11 = por %p7172_p12, %p7171_p8 }
 0x2c2   : > { %p7174_p0 = pnand %p7173_p11, %p7167_p13 }
 0x2c4   : > { %7177 = shalt.err (!%p7174_p0)
}
 0x2c5   : > { %6873 = dma.vmem_to_hbm [thread:$0]  (%p7381_p10), %s8200_s28, 32, %s8198_s11, %s5319_s14  }
 0x2c6 PF: > { %s5363_s7 = sand.u32 1, %s7220_s18   ;;  %p8273_p5 = scmp.ne.s32.totalorder %s8262_s29, 0 }
 0x2c7   : > { %p8274_p9 = scmp.ge.s32.totalorder %s7240_s23, 2  ;;  %s5364_s30 = scalar_lea.sflag [#allocation5], %s5363_s7 }
 0x2c9   : > { %p6885_p1 = pnand %p8274_p9, %p8273_p5 }
 0x2cb   : > { %7211 = dma.done.wait (!%p6885_p1), %s5364_s30, 2048  }
 0x2cc   : > { %7213 = vsyncadd (!%p6885_p1), %s5364_s30, 4294965248  ;;  %s5373_s10 = scalar_lea.sflag [#allocation10], %s5363_s7 }
 0x2cd   : > { %7215 = dma.done.wait (!%p6885_p1), %s5373_s10, 32  }
 0x2ce   : > { %7217 = vsyncadd (!%p6885_p1), %s5373_s10, 4294967264  ;;  %s26_s23 = sadd.s32 1, %s7240_s23   ;;  %s8275_s18 = smov %s7224_s19 }
 0x2cf   : > { %p23_p2 = scmp.ge.s32.totalorder %s26_s23, 4   ;;  %s8276_s19 = smov %s7228_s20 }
 0x2d0   : > { %s8277_s20 = smov %s7390_s15  ;;  %s8278_s21 = smov %s7236_s22 }
 0x2d1   : > { %s8279_s22 = smov %s8281_s9  ;;  %25 = sbr.rel (!%p23_p2) target bundleno = 9 (0x9), region = 111 }
 0x2d8   :  { %5378 = vsyncpa [#allocation4], 1 }
 0x2d9   :  { %5380 = vsyncpa [#allocation4 + $0x1], 1 }
 0x2da   :  { %5381 = vsyncpa [#allocation7], 1 }
 0x2db   :  { %5382 = vsyncpa [#allocation5], 1 }
 0x2dc   :  { %5384 = vsyncpa [#allocation5 + $0x1], 1 }
 0x2dd   :  { %5385 = vsyncpa [#allocation10], 1 }
 0x2de   :  { %5387 = vsyncpa [#allocation10 + $0x1], 1 }

</bundles_post_ra>
